<compile_context>
chip_gen: v6e
topology: v6e:2x2x1
jax: 0.10.0
libtpu: 0.0.40
codegen_flags: <defaults>
</compile_context>

<pallas_src>
import numpy as np
import jax
import jax.numpy as jnp
from jax.experimental import pallas as pl
from jax.experimental.pallas import tpu as pltpu

K = 5  # kernel size of every layer


# --------------------------------------------------------------------- helpers
def _down_len(lin):
    """Output length of Conv1d(kernel=5, stride=2, padding=2)."""
    return (lin - 1) // 2 + 1


def _sel_down_np(lout, lin):
    """0/1 matrix S (lout, lin): S[t, 2t] = 1  (stride-2 row selection)."""
    s = np.zeros((lout, lin), np.float32)
    s[np.arange(lout), 2 * np.arange(lout)] = 1.0
    return s


def _sel_up_np(lin):
    """0/1 matrices Pe/Po (2*lin, lin): even/odd row interleave."""
    pe = np.zeros((2 * lin, lin), np.float32)
    po = np.zeros((2 * lin, lin), np.float32)
    idx = np.arange(lin)
    pe[2 * idx, idx] = 1.0
    po[2 * idx + 1, idx] = 1.0
    return pe, po


# ----------------------------------------------------------------- fused kernel
def _make_unet_kernel(n_len, c_in, enc_cfg, dec_cfg, compute_dtype):
    """Builds the fused 12-layer UNet kernel.

    enc_cfg / dec_cfg: per-layer static (lin, cin, cout) tuples.
    Kernel refs: x_ref, <48 packed param refs>, o_ref, xpad_ref, tap_ref.
    Activation layout inside the kernel: rows = spatial, lanes = channels.
    """
    cdt = compute_dtype
    f32 = jnp.float32
    n_enc = len(enc_cfg)

    def kernel(x_ref, *rest):
        o_ref, xpad_ref, tap_ref = rest[-3:]
        p_refs = rest[:-3]

        # Zero the padded-activation staging buffer once per sample.
        # Rows [0, 2) are the permanent top zero margin (never written again).
        xpad_ref[...] = jnp.zeros_like(xpad_ref)

        def stage(pieces, lin):
            """Write the layer input (possibly skip-concat) into xpad rows
            [2, 2+lin) and zero the 2-row bottom margin.  Channel concat of the
            skip connection is realized as adjacent column writes."""
            col = 0
            for v in pieces:
                c = v.shape[1]
                xpad_ref[2:2 + lin, col:col + c] = v.astype(cdt)
                col += c
            xpad_ref[2 + lin:4 + lin, 0:col] = jnp.zeros((2, col), cdt)

        def conv_down(lin, cin, cout, w_ref, b_ref, s_ref):
            """relu(Conv1d(k=5, stride=2, pad=2)) as one deep dot + selection."""
            # im2col: 5 shifted taps staged contiguously -> (lin, 5*cin)
            for k in range(K):
                tap_ref[0:lin, k * cin:(k + 1) * cin] = xpad_ref[k:k + lin, 0:cin]
            z = jnp.dot(tap_ref[0:lin, 0:K * cin], w_ref[...],
                        preferred_element_type=f32)                  # (lin, cout)
            y = jnp.dot(s_ref[...], z, preferred_element_type=f32) + b_ref[...]
            return jnp.maximum(y, 0.0)                               # (lout, cout)

        def conv_up(lin, cin, cout, we_ref, wo_ref, b_ref, pe_ref, po_ref):
            """relu(ConvTranspose1d(k=5, stride=2, pad=2, out_pad=1)).
            Even/odd output positions via two deep dots, interleaved with
            constant 0/1 matmuls."""
            tap_ref[0:lin, 0:cin] = xpad_ref[3:3 + lin, 0:cin]            # x[m+1]
            tap_ref[0:lin, cin:2 * cin] = xpad_ref[2:2 + lin, 0:cin]      # x[m]
            tap_ref[0:lin, 2 * cin:3 * cin] = xpad_ref[1:1 + lin, 0:cin]  # x[m-1]
            ze = jnp.dot(tap_ref[0:lin, 0:3 * cin], we_ref[...],
                         preferred_element_type=f32)                 # (lin, cout)
            zo = jnp.dot(tap_ref[0:lin, 0:2 * cin], wo_ref[...],
                         preferred_element_type=f32)                 # (lin, cout)
            if lin == 1:  # degenerate interleave: avoid a K=1 dot
                y = pe_ref[...] * ze + po_ref[...] * zo + b_ref[...]
            else:
                y = (jnp.dot(pe_ref[...], ze, preferred_element_type=f32)
                     + jnp.dot(po_ref[...], zo, preferred_element_type=f32)
                     + b_ref[...])
            return jnp.maximum(y, 0.0)                               # (2*lin, cout)

        x_in = x_ref[0]                                              # (N, C) f32

        # ------------------------- encoder -------------------------
        h = x_in
        enc_outs = []
        for li, (lin, cin, cout) in enumerate(enc_cfg):
            w_ref, b_ref, s_ref = p_refs[3 * li:3 * li + 3]
            stage([h], lin)
            h = conv_down(lin, cin, cout, w_ref, b_ref, s_ref)
            enc_outs.append(h)                                       # h1..h6

        # ------------------------- decoder -------------------------
        d = enc_outs[-1]                                             # h6
        for li, (lin, cin, cout) in enumerate(dec_cfg):
            base = 3 * n_enc + 5 * li
            we_ref, wo_ref, b_ref, pe_ref, po_ref = p_refs[base:base + 5]
            if li == 0:
                stage([d], lin)                                      # l7(h6)
            else:
                # pad_concat(h_enc, h_dec): lengths match (N % 64 == 0)
                stage([enc_outs[n_enc - 1 - li], d], lin)
            d = conv_up(lin, cin, cout, we_ref, wo_ref, b_ref, pe_ref, po_ref)

        # final skip: concat(x, h12) along channels, written straight to HBM
        o_ref[:, :, 0:c_in] = x_ref[...].astype(o_ref.dtype)
        o_ref[:, :, c_in:2 * c_in] = d[None].astype(o_ref.dtype)

    return kernel


# ---------------------------------------------------------------------- wrapper
def unet_forward(params, x, *, compute_dtype=jnp.float32):
    """UNet forward.  x: (B, C, N) NCL float32 -> (B, 2C, N).

    compute_dtype=jnp.bfloat16 runs the MXU dots in bf16 (faster on v6e/v7x,
    looser numerics); default float32 matches the reference to ~1e-3.
    """
    B, C, N = x.shape
    assert N % (2 ** 6) == 0, "N must be divisible by 2**6 so skip lengths align"
    # TODO(synk): reflect-padding branch of pad_concat (mismatched skip lengths,
    # i.e. N not divisible by 64) is not implemented inside the fused kernel.

    enc_params = [params[f"l{i}"] for i in range(1, 7)]
    dec_params = [params[f"l{i}"] for i in range(7, 13)]

    enc_cfg, dec_cfg = [], []
    flat_inputs = []

    # ---- encoder packing: W -> (K*Cin, Cout), stride-2 selection constant ----
    lin = N
    for (w, b) in enc_params:                       # w: (Cout, Cin, K)
        cout, cin, _ = w.shape
        lout = _down_len(lin)
        wstack = jnp.concatenate([w[:, :, k].T for k in range(K)], axis=0)
        s_sel = jnp.asarray(_sel_down_np(lout, lin), dtype=compute_dtype)
        flat_inputs += [wstack.astype(compute_dtype),
                        b.reshape(1, cout).astype(jnp.float32),
                        s_sel]
        enc_cfg.append((lin, cin, cout))
        lin = lout

    # ---- decoder packing: even/odd weight stacks + interleave constants ----
    for (w, b) in dec_params:                       # w: (Cin, Cout, K)
        cin, cout, _ = w.shape
        we = jnp.concatenate([w[:, :, 0], w[:, :, 2], w[:, :, 4]], axis=0)
        wo = jnp.concatenate([w[:, :, 1], w[:, :, 3]], axis=0)
        pe_np, po_np = _sel_up_np(lin)
        flat_inputs += [we.astype(compute_dtype), wo.astype(compute_dtype),
                        b.reshape(1, cout).astype(jnp.float32),
                        jnp.asarray(pe_np, dtype=compute_dtype),
                        jnp.asarray(po_np, dtype=compute_dtype)]
        dec_cfg.append((lin, cin, cout))
        lin = 2 * lin
    assert lin == N

    # ---- VMEM scratch: padded-activation buffer + im2col tap buffer ----
    all_cfg = enc_cfg + dec_cfg
    cin_max = max(c for (_, c, _) in all_cfg)
    lin_max = max(l for (l, _, _) in all_cfg)
    tap_cols = max([K * c for (_, c, _) in enc_cfg] +
                   [3 * c for (_, c, _) in dec_cfg])
    scratch_shapes = [
        pltpu.VMEM((lin_max + 4, cin_max), compute_dtype),   # padded activation
        pltpu.VMEM((lin_max, tap_cols), compute_dtype),      # stacked taps
    ]

    # ---- specs ----
    in_specs = [pl.BlockSpec((1, N, C), lambda i: (i, 0, 0))]
    for a in flat_inputs:                            # all params are 2-D
        in_specs.append(pl.BlockSpec(a.shape, lambda i: (0, 0)))
    out_specs = pl.BlockSpec((1, N, 2 * C), lambda i: (i, 0, 0))

    # ---- advisory cost estimate (lets XLA overlap the call with neighbors) ----
    flops = 0
    for (l, ci, co) in enc_cfg:
        lo = _down_len(l)
        flops += 2 * l * (K * ci) * co + 2 * lo * l * co
    for (l, ci, co) in dec_cfg:
        flops += 2 * l * (3 * ci) * co + 2 * l * (2 * ci) * co
        if l > 1:
            flops += 2 * (2 * l) * l * co * 2
    flops *= B
    bytes_accessed = (x.size * x.dtype.itemsize
                      + B * N * 2 * C * x.dtype.itemsize
                      + sum(int(np.prod(a.shape)) * a.dtype.itemsize
                            for a in flat_inputs))
    cost = pl.CostEstimate(flops=int(flops), transcendentals=0,
                           bytes_accessed=int(bytes_accessed))

    kernel = _make_unet_kernel(N, C, enc_cfg, dec_cfg, compute_dtype)

    x_rows = jnp.transpose(x, (0, 2, 1))             # (B, N, C): rows=spatial
    out = pl.pallas_call(
        kernel,
        out_shape=jax.ShapeDtypeStruct((B, N, 2 * C), x.dtype),
        grid=(B,),
        in_specs=in_specs,
        out_specs=out_specs,
        scratch_shapes=scratch_shapes,
        compiler_params=pltpu.CompilerParams(dimension_semantics=("parallel",)),
        cost_estimate=cost,
    )(x_rows, *flat_inputs)
    return jnp.transpose(out, (0, 2, 1))             # (B, 2C, N)


# ------------------------------------------------------------------- parameters
def init_params(key, c=8):
    """Deterministic synthetic parameters matching the PyTorch module's shapes."""
    conv_shapes = [(c, c), (2 * c, c), (2 * c, 2 * c), (4 * c, 2 * c),
                   (4 * c, 4 * c), (8 * c, 4 * c)]                      # (Cout, Cin)
    convt_shapes = [(8 * c, 4 * c), (8 * c, 4 * c), (8 * c, 2 * c),
                    (4 * c, 2 * c), (4 * c, c), (2 * c, c)]             # (Cin, Cout)
    params = {}
    keys = jax.random.split(key, 12)
    for i, (cout, cin) in enumerate(conv_shapes):
        kw, kb = jax.random.split(keys[i])
        w = jax.random.normal(kw, (cout, cin, K), jnp.float32) / np.sqrt(cin * K)
        b = 0.01 * jax.random.normal(kb, (cout,), jnp.float32)
        params[f"l{i + 1}"] = (w, b)
    for i, (cin, cout) in enumerate(convt_shapes):
        kw, kb = jax.random.split(keys[6 + i])
        w = jax.random.normal(kw, (cin, cout, K), jnp.float32) / np.sqrt(cin * K)
        b = 0.01 * jax.random.normal(kb, (cout,), jnp.float32)
        params[f"l{i + 7}"] = (w, b)
    return params


# ------------------------------------------------- plain-lax reference (verify)
def pad_concat(t1, t2):
    L1, L2 = t1.shape[2], t2.shape[2]
    if L1 > L2:
        d = L1 - L2
        t2 = jnp.pad(t2, ((0, 0), (0, 0), (d // 2, d - d // 2)), mode="reflect")
    elif L2 > L1:
        d = L2 - L1
        t1 = jnp.pad(t1, ((0, 0), (0, 0), (d // 2, d - d // 2)), mode="reflect")
    return jnp.concatenate([t1, t2], axis=1)


def _conv_ref(x, w, b):
    y = jax.lax.conv_general_dilated(
        x, w, window_strides=(2,), padding=[(2, 2)],
        dimension_numbers=("NCH", "OIH", "NCH"), precision=jax.lax.Precision.HIGHEST)
    return jax.nn.relu(y + b[None, :, None])


def _convt_ref(x, w, b):
    w_conv = jnp.transpose(w, (1, 0, 2))[:, :, ::-1]
    y = jax.lax.conv_general_dilated(
        x, w_conv, window_strides=(1,), padding=[(2, 3)], lhs_dilation=(2,),
        dimension_numbers=("NCH", "OIH", "NCH"), precision=jax.lax.Precision.HIGHEST)
    return jax.nn.relu(y + b[None, :, None])


def unet_forward_ref(params, x):
    h1 = _conv_ref(x, *params["l1"])
    h2 = _conv_ref(h1, *params["l2"])
    h3 = _conv_ref(h2, *params["l3"])
    h4 = _conv_ref(h3, *params["l4"])
    h5 = _conv_ref(h4, *params["l5"])
    h6 = _conv_ref(h5, *params["l6"])
    h7 = pad_concat(h5, _convt_ref(h6, *params["l7"]))
    h8 = pad_concat(h4, _convt_ref(h7, *params["l8"]))
    h9 = pad_concat(h3, _convt_ref(h8, *params["l9"]))
    h10 = pad_concat(h2, _convt_ref(h9, *params["l10"]))
    h11 = pad_concat(h1, _convt_ref(h10, *params["l11"]))
    h12 = _convt_ref(h11, *params["l12"])
    return pad_concat(x, h12)


# ------------------------------------------------------------------------- main
if __name__ == "__main__":
    channels = 8
    B, N = 2, 64                         # N divisible by 2**6 -> skips align exactly
    key = jax.random.PRNGKey(0)
    k_params, k_x = jax.random.split(key)
    params = init_params(k_params, channels)
    x = jax.random.normal(k_x, (B, channels, N), jnp.float32)   # [B, C, N] (NCL)

    out = jax.block_until_ready(jax.jit(unet_forward)(params, x))
    assert out.shape == (B, 2 * channels, N), out.shape

    ref = jax.block_until_ready(jax.jit(unet_forward_ref)(params, x))
    np.testing.assert_allclose(np.asarray(out), np.asarray(ref), rtol=1e-3, atol=1e-3)

    print("KERNEL_OK")
</pallas_src>

<mosaic_0001>
module attributes {stable_mosaic.version = 11 : i64} {
  func.func @kernel(%arg0: i32, %arg1: memref<1x64x8xf32, #tpu.memory_space<vmem>>, %arg2: memref<40x8xf32, #tpu.memory_space<vmem>>, %arg3: memref<1x8xf32, #tpu.memory_space<vmem>>, %arg4: memref<32x64xf32, #tpu.memory_space<vmem>>, %arg5: memref<40x16xf32, #tpu.memory_space<vmem>>, %arg6: memref<1x16xf32, #tpu.memory_space<vmem>>, %arg7: memref<16x32xf32, #tpu.memory_space<vmem>>, %arg8: memref<80x16xf32, #tpu.memory_space<vmem>>, %arg9: memref<1x16xf32, #tpu.memory_space<vmem>>, %arg10: memref<8x16xf32, #tpu.memory_space<vmem>>, %arg11: memref<80x32xf32, #tpu.memory_space<vmem>>, %arg12: memref<1x32xf32, #tpu.memory_space<vmem>>, %arg13: memref<4x8xf32, #tpu.memory_space<vmem>>, %arg14: memref<160x32xf32, #tpu.memory_space<vmem>>, %arg15: memref<1x32xf32, #tpu.memory_space<vmem>>, %arg16: memref<2x4xf32, #tpu.memory_space<vmem>>, %arg17: memref<160x64xf32, #tpu.memory_space<vmem>>, %arg18: memref<1x64xf32, #tpu.memory_space<vmem>>, %arg19: memref<1x2xf32, #tpu.memory_space<vmem>>, %arg20: memref<192x32xf32, #tpu.memory_space<vmem>>, %arg21: memref<128x32xf32, #tpu.memory_space<vmem>>, %arg22: memref<1x32xf32, #tpu.memory_space<vmem>>, %arg23: memref<2x1xf32, #tpu.memory_space<vmem>>, %arg24: memref<2x1xf32, #tpu.memory_space<vmem>>, %arg25: memref<192x32xf32, #tpu.memory_space<vmem>>, %arg26: memref<128x32xf32, #tpu.memory_space<vmem>>, %arg27: memref<1x32xf32, #tpu.memory_space<vmem>>, %arg28: memref<4x2xf32, #tpu.memory_space<vmem>>, %arg29: memref<4x2xf32, #tpu.memory_space<vmem>>, %arg30: memref<192x16xf32, #tpu.memory_space<vmem>>, %arg31: memref<128x16xf32, #tpu.memory_space<vmem>>, %arg32: memref<1x16xf32, #tpu.memory_space<vmem>>, %arg33: memref<8x4xf32, #tpu.memory_space<vmem>>, %arg34: memref<8x4xf32, #tpu.memory_space<vmem>>, %arg35: memref<96x16xf32, #tpu.memory_space<vmem>>, %arg36: memref<64x16xf32, #tpu.memory_space<vmem>>, %arg37: memref<1x16xf32, #tpu.memory_space<vmem>>, %arg38: memref<16x8xf32, #tpu.memory_space<vmem>>, %arg39: memref<16x8xf32, #tpu.memory_space<vmem>>, %arg40: memref<96x8xf32, #tpu.memory_space<vmem>>, %arg41: memref<64x8xf32, #tpu.memory_space<vmem>>, %arg42: memref<1x8xf32, #tpu.memory_space<vmem>>, %arg43: memref<32x16xf32, #tpu.memory_space<vmem>>, %arg44: memref<32x16xf32, #tpu.memory_space<vmem>>, %arg45: memref<48x8xf32, #tpu.memory_space<vmem>>, %arg46: memref<32x8xf32, #tpu.memory_space<vmem>>, %arg47: memref<1x8xf32, #tpu.memory_space<vmem>>, %arg48: memref<64x32xf32, #tpu.memory_space<vmem>>, %arg49: memref<64x32xf32, #tpu.memory_space<vmem>>, %arg50: memref<1x64x16xf32, #tpu.memory_space<vmem>>, %arg51: memref<68x64xf32, #tpu.memory_space<vmem>>, %arg52: memref<64x192xf32, #tpu.memory_space<vmem>>) attributes {dimension_semantics = [#tpu.dimension_semantics<parallel>], iteration_bounds = array<i64: 2>, scalar_prefetch = 0 : i64, scratch_operands = 2 : i64, tpu.core_type = #tpu.core_type<tc>, window_params = [{transform_indices = @transform_0, window_bounds = array<i64: 1, 64, 8>}, {pipeline_mode = #tpu.pipeline_mode<synchronous>, transform_indices = @transform_1, window_bounds = array<i64: 40, 8>}, {pipeline_mode = #tpu.pipeline_mode<synchronous>, transform_indices = @transform_2, window_bounds = array<i64: 1, 8>}, {pipeline_mode = #tpu.pipeline_mode<synchronous>, transform_indices = @transform_3, window_bounds = array<i64: 32, 64>}, {pipeline_mode = #tpu.pipeline_mode<synchronous>, transform_indices = @transform_4, window_bounds = array<i64: 40, 16>}, {pipeline_mode = #tpu.pipeline_mode<synchronous>, transform_indices = @transform_5, window_bounds = array<i64: 1, 16>}, {pipeline_mode = #tpu.pipeline_mode<synchronous>, transform_indices = @transform_6, window_bounds = array<i64: 16, 32>}, {pipeline_mode = #tpu.pipeline_mode<synchronous>, transform_indices = @transform_7, window_bounds = array<i64: 80, 16>}, {pipeline_mode = #tpu.pipeline_mode<synchronous>, transform_indices = @transform_8, window_bounds = array<i64: 1, 16>}, {pipeline_mode = #tpu.pipeline_mode<synchronous>, transform_indices = @transform_9, window_bounds = array<i64: 8, 16>}, {pipeline_mode = #tpu.pipeline_mode<synchronous>, transform_indices = @transform_10, window_bounds = array<i64: 80, 32>}, {pipeline_mode = #tpu.pipeline_mode<synchronous>, transform_indices = @transform_11, window_bounds = array<i64: 1, 32>}, {pipeline_mode = #tpu.pipeline_mode<synchronous>, transform_indices = @transform_12, window_bounds = array<i64: 4, 8>}, {pipeline_mode = #tpu.pipeline_mode<synchronous>, transform_indices = @transform_13, window_bounds = array<i64: 160, 32>}, {pipeline_mode = #tpu.pipeline_mode<synchronous>, transform_indices = @transform_14, window_bounds = array<i64: 1, 32>}, {pipeline_mode = #tpu.pipeline_mode<synchronous>, transform_indices = @transform_15, window_bounds = array<i64: 2, 4>}, {pipeline_mode = #tpu.pipeline_mode<synchronous>, transform_indices = @transform_16, window_bounds = array<i64: 160, 64>}, {pipeline_mode = #tpu.pipeline_mode<synchronous>, transform_indices = @transform_17, window_bounds = array<i64: 1, 64>}, {pipeline_mode = #tpu.pipeline_mode<synchronous>, transform_indices = @transform_18, window_bounds = array<i64: 1, 2>}, {pipeline_mode = #tpu.pipeline_mode<synchronous>, transform_indices = @transform_19, window_bounds = array<i64: 192, 32>}, {pipeline_mode = #tpu.pipeline_mode<synchronous>, transform_indices = @transform_20, window_bounds = array<i64: 128, 32>}, {pipeline_mode = #tpu.pipeline_mode<synchronous>, transform_indices = @transform_21, window_bounds = array<i64: 1, 32>}, {pipeline_mode = #tpu.pipeline_mode<synchronous>, transform_indices = @transform_22, window_bounds = array<i64: 2, 1>}, {pipeline_mode = #tpu.pipeline_mode<synchronous>, transform_indices = @transform_23, window_bounds = array<i64: 2, 1>}, {pipeline_mode = #tpu.pipeline_mode<synchronous>, transform_indices = @transform_24, window_bounds = array<i64: 192, 32>}, {pipeline_mode = #tpu.pipeline_mode<synchronous>, transform_indices = @transform_25, window_bounds = array<i64: 128, 32>}, {pipeline_mode = #tpu.pipeline_mode<synchronous>, transform_indices = @transform_26, window_bounds = array<i64: 1, 32>}, {pipeline_mode = #tpu.pipeline_mode<synchronous>, transform_indices = @transform_27, window_bounds = array<i64: 4, 2>}, {pipeline_mode = #tpu.pipeline_mode<synchronous>, transform_indices = @transform_28, window_bounds = array<i64: 4, 2>}, {pipeline_mode = #tpu.pipeline_mode<synchronous>, transform_indices = @transform_29, window_bounds = array<i64: 192, 16>}, {pipeline_mode = #tpu.pipeline_mode<synchronous>, transform_indices = @transform_30, window_bounds = array<i64: 128, 16>}, {pipeline_mode = #tpu.pipeline_mode<synchronous>, transform_indices = @transform_31, window_bounds = array<i64: 1, 16>}, {pipeline_mode = #tpu.pipeline_mode<synchronous>, transform_indices = @transform_32, window_bounds = array<i64: 8, 4>}, {pipeline_mode = #tpu.pipeline_mode<synchronous>, transform_indices = @transform_33, window_bounds = array<i64: 8, 4>}, {pipeline_mode = #tpu.pipeline_mode<synchronous>, transform_indices = @transform_34, window_bounds = array<i64: 96, 16>}, {pipeline_mode = #tpu.pipeline_mode<synchronous>, transform_indices = @transform_35, window_bounds = array<i64: 64, 16>}, {pipeline_mode = #tpu.pipeline_mode<synchronous>, transform_indices = @transform_36, window_bounds = array<i64: 1, 16>}, {pipeline_mode = #tpu.pipeline_mode<synchronous>, transform_indices = @transform_37, window_bounds = array<i64: 16, 8>}, {pipeline_mode = #tpu.pipeline_mode<synchronous>, transform_indices = @transform_38, window_bounds = array<i64: 16, 8>}, {pipeline_mode = #tpu.pipeline_mode<synchronous>, transform_indices = @transform_39, window_bounds = array<i64: 96, 8>}, {pipeline_mode = #tpu.pipeline_mode<synchronous>, transform_indices = @transform_40, window_bounds = array<i64: 64, 8>}, {pipeline_mode = #tpu.pipeline_mode<synchronous>, transform_indices = @transform_41, window_bounds = array<i64: 1, 8>}, {pipeline_mode = #tpu.pipeline_mode<synchronous>, transform_indices = @transform_42, window_bounds = array<i64: 32, 16>}, {pipeline_mode = #tpu.pipeline_mode<synchronous>, transform_indices = @transform_43, window_bounds = array<i64: 32, 16>}, {pipeline_mode = #tpu.pipeline_mode<synchronous>, transform_indices = @transform_44, window_bounds = array<i64: 48, 8>}, {pipeline_mode = #tpu.pipeline_mode<synchronous>, transform_indices = @transform_45, window_bounds = array<i64: 32, 8>}, {pipeline_mode = #tpu.pipeline_mode<synchronous>, transform_indices = @transform_46, window_bounds = array<i64: 1, 8>}, {pipeline_mode = #tpu.pipeline_mode<synchronous>, transform_indices = @transform_47, window_bounds = array<i64: 64, 32>}, {pipeline_mode = #tpu.pipeline_mode<synchronous>, transform_indices = @transform_48, window_bounds = array<i64: 64, 32>}, {transform_indices = @transform_49, window_bounds = array<i64: 1, 64, 16>}]} {
    %cst = arith.constant 0.000000e+00 : f32
    %0 = vector.broadcast %cst : f32 to vector<68x64xf32>
    %c0 = arith.constant 0 : index
    %c0_0 = arith.constant 0 : index
    %1 = vector.load %arg51[%c0, %c0_0] : memref<68x64xf32, #tpu.memory_space<vmem>>, vector<68x64xf32>
    tpu.vector_store %arg51[%c0, %c0_0], %0 {strides = array<i32>} : memref<68x64xf32, #tpu.memory_space<vmem>>, vector<68x64xf32>,
    %c0_1 = arith.constant 0 : index
    %c0_2 = arith.constant 0 : index
    %c0_3 = arith.constant 0 : index
    %2 = vector.load %arg1[%c0_1, %c0_2, %c0_3] : memref<1x64x8xf32, #tpu.memory_space<vmem>>, vector<1x64x8xf32>
    %3 = vector.shape_cast %2 : vector<1x64x8xf32> to vector<64x8xf32>
    %c2 = arith.constant 2 : index
    %c0_4 = arith.constant 0 : index
    %4 = vector.load %arg51[%c2, %c0_4] : memref<68x64xf32, #tpu.memory_space<vmem>>, vector<64x8xf32>
    tpu.vector_store %arg51[%c2, %c0_4], %3 {strides = array<i32>} : memref<68x64xf32, #tpu.memory_space<vmem>>, vector<64x8xf32>,
    %cst_5 = arith.constant 0.000000e+00 : f32
    %5 = vector.broadcast %cst_5 : f32 to vector<2x8xf32>
    %c66 = arith.constant 66 : index
    %c0_6 = arith.constant 0 : index
    %6 = vector.load %arg51[%c66, %c0_6] : memref<68x64xf32, #tpu.memory_space<vmem>>, vector<2x8xf32>
    tpu.vector_store %arg51[%c66, %c0_6], %5 {strides = array<i32>} : memref<68x64xf32, #tpu.memory_space<vmem>>, vector<2x8xf32>,
    %c0_7 = arith.constant 0 : index
    %c0_8 = arith.constant 0 : index
    %7 = vector.load %arg51[%c0_7, %c0_8] : memref<68x64xf32, #tpu.memory_space<vmem>>, vector<64x8xf32>
    %c0_9 = arith.constant 0 : index
    %c0_10 = arith.constant 0 : index
    %8 = vector.load %arg52[%c0_9, %c0_10] : memref<64x192xf32, #tpu.memory_space<vmem>>, vector<64x8xf32>
    tpu.vector_store %arg52[%c0_9, %c0_10], %7 {strides = array<i32>} : memref<64x192xf32, #tpu.memory_space<vmem>>, vector<64x8xf32>,
    %c1 = arith.constant 1 : index
    %c0_11 = arith.constant 0 : index
    %9 = vector.load %arg51[%c1, %c0_11] : memref<68x64xf32, #tpu.memory_space<vmem>>, vector<64x8xf32>
    %c0_12 = arith.constant 0 : index
    %c8 = arith.constant 8 : index
    %10 = vector.load %arg52[%c0_12, %c8] : memref<64x192xf32, #tpu.memory_space<vmem>>, vector<64x8xf32>
    tpu.vector_store %arg52[%c0_12, %c8], %9 {strides = array<i32>} : memref<64x192xf32, #tpu.memory_space<vmem>>, vector<64x8xf32>,
    %c2_13 = arith.constant 2 : index
    %c0_14 = arith.constant 0 : index
    %11 = vector.load %arg51[%c2_13, %c0_14] : memref<68x64xf32, #tpu.memory_space<vmem>>, vector<64x8xf32>
    %c0_15 = arith.constant 0 : index
    %c16 = arith.constant 16 : index
    %12 = vector.load %arg52[%c0_15, %c16] : memref<64x192xf32, #tpu.memory_space<vmem>>, vector<64x8xf32>
    tpu.vector_store %arg52[%c0_15, %c16], %11 {strides = array<i32>} : memref<64x192xf32, #tpu.memory_space<vmem>>, vector<64x8xf32>,
    %c3 = arith.constant 3 : index
    %c0_16 = arith.constant 0 : index
    %13 = vector.load %arg51[%c3, %c0_16] : memref<68x64xf32, #tpu.memory_space<vmem>>, vector<64x8xf32>
    %c0_17 = arith.constant 0 : index
    %c24 = arith.constant 24 : index
    %14 = vector.load %arg52[%c0_17, %c24] : memref<64x192xf32, #tpu.memory_space<vmem>>, vector<64x8xf32>
    tpu.vector_store %arg52[%c0_17, %c24], %13 {strides = array<i32>} : memref<64x192xf32, #tpu.memory_space<vmem>>, vector<64x8xf32>,
    %c4 = arith.constant 4 : index
    %c0_18 = arith.constant 0 : index
    %15 = vector.load %arg51[%c4, %c0_18] : memref<68x64xf32, #tpu.memory_space<vmem>>, vector<64x8xf32>
    %c0_19 = arith.constant 0 : index
    %c32 = arith.constant 32 : index
    %16 = vector.load %arg52[%c0_19, %c32] : memref<64x192xf32, #tpu.memory_space<vmem>>, vector<64x8xf32>
    tpu.vector_store %arg52[%c0_19, %c32], %15 {strides = array<i32>} : memref<64x192xf32, #tpu.memory_space<vmem>>, vector<64x8xf32>,
    %c0_20 = arith.constant 0 : index
    %c0_21 = arith.constant 0 : index
    %17 = vector.load %arg52[%c0_20, %c0_21] : memref<64x192xf32, #tpu.memory_space<vmem>>, vector<64x40xf32>
    %c0_22 = arith.constant 0 : index
    %c0_23 = arith.constant 0 : index
    %18 = vector.load %arg2[%c0_22, %c0_23] : memref<40x8xf32, #tpu.memory_space<vmem>>, vector<40x8xf32>
    %cst_24 = arith.constant dense<0.000000e+00> : vector<64x8xf32>
    %19 = tpu.matmul %17, %18, %cst_24 {dimension_numbers = #tpu.dot_dimension_numbers<[1], [0], [0], [1], [0, 0, 1, 1], [], []>} : vector<64x40xf32>, vector<40x8xf32>, vector<64x8xf32> -> vector<64x8xf32>
    %c0_25 = arith.constant 0 : index
    %c0_26 = arith.constant 0 : index
    %20 = vector.load %arg4[%c0_25, %c0_26] : memref<32x64xf32, #tpu.memory_space<vmem>>, vector<32x64xf32>
    %cst_27 = arith.constant dense<0.000000e+00> : vector<32x8xf32>
    %21 = tpu.matmul %20, %19, %cst_27 {dimension_numbers = #tpu.dot_dimension_numbers<[1], [0], [0], [1], [0, 0, 1, 1], [], []>} : vector<32x64xf32>, vector<64x8xf32>, vector<32x8xf32> -> vector<32x8xf32>
    %c0_28 = arith.constant 0 : index
    %c0_29 = arith.constant 0 : index
    %22 = vector.load %arg3[%c0_28, %c0_29] : memref<1x8xf32, #tpu.memory_space<vmem>>, vector<1x8xf32>
    %23 = vector.broadcast %22 : vector<1x8xf32> to vector<32x8xf32>
    %24 = arith.addf %21, %23 : vector<32x8xf32>
    %cst_30 = arith.constant 0.000000e+00 : f32
    %25 = vector.broadcast %cst_30 : f32 to vector<32x8xf32>
    %26 = arith.maximumf %24, %25 : vector<32x8xf32>
    %c2_31 = arith.constant 2 : index
    %c0_32 = arith.constant 0 : index
    %27 = vector.load %arg51[%c2_31, %c0_32] : memref<68x64xf32, #tpu.memory_space<vmem>>, vector<32x8xf32>
    tpu.vector_store %arg51[%c2_31, %c0_32], %26 {strides = array<i32>} : memref<68x64xf32, #tpu.memory_space<vmem>>, vector<32x8xf32>,
    %cst_33 = arith.constant 0.000000e+00 : f32
    %28 = vector.broadcast %cst_33 : f32 to vector<2x8xf32>
    %c34 = arith.constant 34 : index
    %c0_34 = arith.constant 0 : index
    %29 = vector.load %arg51[%c34, %c0_34] : memref<68x64xf32, #tpu.memory_space<vmem>>, vector<2x8xf32>
    tpu.vector_store %arg51[%c34, %c0_34], %28 {strides = array<i32>} : memref<68x64xf32, #tpu.memory_space<vmem>>, vector<2x8xf32>,
    %c0_35 = arith.constant 0 : index
    %c0_36 = arith.constant 0 : index
    %30 = vector.load %arg51[%c0_35, %c0_36] : memref<68x64xf32, #tpu.memory_space<vmem>>, vector<32x8xf32>
    %c0_37 = arith.constant 0 : index
    %c0_38 = arith.constant 0 : index
    %31 = vector.load %arg52[%c0_37, %c0_38] : memref<64x192xf32, #tpu.memory_space<vmem>>, vector<32x8xf32>
    tpu.vector_store %arg52[%c0_37, %c0_38], %30 {strides = array<i32>} : memref<64x192xf32, #tpu.memory_space<vmem>>, vector<32x8xf32>,
    %c1_39 = arith.constant 1 : index
    %c0_40 = arith.constant 0 : index
    %32 = vector.load %arg51[%c1_39, %c0_40] : memref<68x64xf32, #tpu.memory_space<vmem>>, vector<32x8xf32>
    %c0_41 = arith.constant 0 : index
    %c8_42 = arith.constant 8 : index
    %33 = vector.load %arg52[%c0_41, %c8_42] : memref<64x192xf32, #tpu.memory_space<vmem>>, vector<32x8xf32>
    tpu.vector_store %arg52[%c0_41, %c8_42], %32 {strides = array<i32>} : memref<64x192xf32, #tpu.memory_space<vmem>>, vector<32x8xf32>,
    %c2_43 = arith.constant 2 : index
    %c0_44 = arith.constant 0 : index
    %34 = vector.load %arg51[%c2_43, %c0_44] : memref<68x64xf32, #tpu.memory_space<vmem>>, vector<32x8xf32>
    %c0_45 = arith.constant 0 : index
    %c16_46 = arith.constant 16 : index
    %35 = vector.load %arg52[%c0_45, %c16_46] : memref<64x192xf32, #tpu.memory_space<vmem>>, vector<32x8xf32>
    tpu.vector_store %arg52[%c0_45, %c16_46], %34 {strides = array<i32>} : memref<64x192xf32, #tpu.memory_space<vmem>>, vector<32x8xf32>,
    %c3_47 = arith.constant 3 : index
    %c0_48 = arith.constant 0 : index
    %36 = vector.load %arg51[%c3_47, %c0_48] : memref<68x64xf32, #tpu.memory_space<vmem>>, vector<32x8xf32>
    %c0_49 = arith.constant 0 : index
    %c24_50 = arith.constant 24 : index
    %37 = vector.load %arg52[%c0_49, %c24_50] : memref<64x192xf32, #tpu.memory_space<vmem>>, vector<32x8xf32>
    tpu.vector_store %arg52[%c0_49, %c24_50], %36 {strides = array<i32>} : memref<64x192xf32, #tpu.memory_space<vmem>>, vector<32x8xf32>,
    %c4_51 = arith.constant 4 : index
    %c0_52 = arith.constant 0 : index
    %38 = vector.load %arg51[%c4_51, %c0_52] : memref<68x64xf32, #tpu.memory_space<vmem>>, vector<32x8xf32>
    %c0_53 = arith.constant 0 : index
    %c32_54 = arith.constant 32 : index
    %39 = vector.load %arg52[%c0_53, %c32_54] : memref<64x192xf32, #tpu.memory_space<vmem>>, vector<32x8xf32>
    tpu.vector_store %arg52[%c0_53, %c32_54], %38 {strides = array<i32>} : memref<64x192xf32, #tpu.memory_space<vmem>>, vector<32x8xf32>,
    %c0_55 = arith.constant 0 : index
    %c0_56 = arith.constant 0 : index
    %40 = vector.load %arg52[%c0_55, %c0_56] : memref<64x192xf32, #tpu.memory_space<vmem>>, vector<32x40xf32>
    %c0_57 = arith.constant 0 : index
    %c0_58 = arith.constant 0 : index
    %41 = vector.load %arg5[%c0_57, %c0_58] : memref<40x16xf32, #tpu.memory_space<vmem>>, vector<40x16xf32>
    %cst_59 = arith.constant dense<0.000000e+00> : vector<32x16xf32>
    %42 = tpu.matmul %40, %41, %cst_59 {dimension_numbers = #tpu.dot_dimension_numbers<[1], [0], [0], [1], [0, 0, 1, 1], [], []>} : vector<32x40xf32>, vector<40x16xf32>, vector<32x16xf32> -> vector<32x16xf32>
    %c0_60 = arith.constant 0 : index
    %c0_61 = arith.constant 0 : index
    %43 = vector.load %arg7[%c0_60, %c0_61] : memref<16x32xf32, #tpu.memory_space<vmem>>, vector<16x32xf32>
    %cst_62 = arith.constant dense<0.000000e+00> : vector<16x16xf32>
    %44 = tpu.matmul %43, %42, %cst_62 {dimension_numbers = #tpu.dot_dimension_numbers<[1], [0], [0], [1], [0, 0, 1, 1], [], []>} : vector<16x32xf32>, vector<32x16xf32>, vector<16x16xf32> -> vector<16x16xf32>
    %c0_63 = arith.constant 0 : index
    %c0_64 = arith.constant 0 : index
    %45 = vector.load %arg6[%c0_63, %c0_64] : memref<1x16xf32, #tpu.memory_space<vmem>>, vector<1x16xf32>
    %46 = vector.broadcast %45 : vector<1x16xf32> to vector<16x16xf32>
    %47 = arith.addf %44, %46 : vector<16x16xf32>
    %cst_65 = arith.constant 0.000000e+00 : f32
    %48 = vector.broadcast %cst_65 : f32 to vector<16x16xf32>
    %49 = arith.maximumf %47, %48 : vector<16x16xf32>
    %c2_66 = arith.constant 2 : index
    %c0_67 = arith.constant 0 : index
    %50 = vector.load %arg51[%c2_66, %c0_67] : memref<68x64xf32, #tpu.memory_space<vmem>>, vector<16x16xf32>
    tpu.vector_store %arg51[%c2_66, %c0_67], %49 {strides = array<i32>} : memref<68x64xf32, #tpu.memory_space<vmem>>, vector<16x16xf32>,
    %cst_68 = arith.constant 0.000000e+00 : f32
    %51 = vector.broadcast %cst_68 : f32 to vector<2x16xf32>
    %c18 = arith.constant 18 : index
    %c0_69 = arith.constant 0 : index
    %52 = vector.load %arg51[%c18, %c0_69] : memref<68x64xf32, #tpu.memory_space<vmem>>, vector<2x16xf32>
    tpu.vector_store %arg51[%c18, %c0_69], %51 {strides = array<i32>} : memref<68x64xf32, #tpu.memory_space<vmem>>, vector<2x16xf32>,
    %c0_70 = arith.constant 0 : index
    %c0_71 = arith.constant 0 : index
    %53 = vector.load %arg51[%c0_70, %c0_71] : memref<68x64xf32, #tpu.memory_space<vmem>>, vector<16x16xf32>
    %c0_72 = arith.constant 0 : index
    %c0_73 = arith.constant 0 : index
    %54 = vector.load %arg52[%c0_72, %c0_73] : memref<64x192xf32, #tpu.memory_space<vmem>>, vector<16x16xf32>
    tpu.vector_store %arg52[%c0_72, %c0_73], %53 {strides = array<i32>} : memref<64x192xf32, #tpu.memory_space<vmem>>, vector<16x16xf32>,
    %c1_74 = arith.constant 1 : index
    %c0_75 = arith.constant 0 : index
    %55 = vector.load %arg51[%c1_74, %c0_75] : memref<68x64xf32, #tpu.memory_space<vmem>>, vector<16x16xf32>
    %c0_76 = arith.constant 0 : index
    %c16_77 = arith.constant 16 : index
    %56 = vector.load %arg52[%c0_76, %c16_77] : memref<64x192xf32, #tpu.memory_space<vmem>>, vector<16x16xf32>
    tpu.vector_store %arg52[%c0_76, %c16_77], %55 {strides = array<i32>} : memref<64x192xf32, #tpu.memory_space<vmem>>, vector<16x16xf32>,
    %c2_78 = arith.constant 2 : index
    %c0_79 = arith.constant 0 : index
    %57 = vector.load %arg51[%c2_78, %c0_79] : memref<68x64xf32, #tpu.memory_space<vmem>>, vector<16x16xf32>
    %c0_80 = arith.constant 0 : index
    %c32_81 = arith.constant 32 : index
    %58 = vector.load %arg52[%c0_80, %c32_81] : memref<64x192xf32, #tpu.memory_space<vmem>>, vector<16x16xf32>
    tpu.vector_store %arg52[%c0_80, %c32_81], %57 {strides = array<i32>} : memref<64x192xf32, #tpu.memory_space<vmem>>, vector<16x16xf32>,
    %c3_82 = arith.constant 3 : index
    %c0_83 = arith.constant 0 : index
    %59 = vector.load %arg51[%c3_82, %c0_83] : memref<68x64xf32, #tpu.memory_space<vmem>>, vector<16x16xf32>
    %c0_84 = arith.constant 0 : index
    %c48 = arith.constant 48 : index
    %60 = vector.load %arg52[%c0_84, %c48] : memref<64x192xf32, #tpu.memory_space<vmem>>, vector<16x16xf32>
    tpu.vector_store %arg52[%c0_84, %c48], %59 {strides = array<i32>} : memref<64x192xf32, #tpu.memory_space<vmem>>, vector<16x16xf32>,
    %c4_85 = arith.constant 4 : index
    %c0_86 = arith.constant 0 : index
    %61 = vector.load %arg51[%c4_85, %c0_86] : memref<68x64xf32, #tpu.memory_space<vmem>>, vector<16x16xf32>
    %c0_87 = arith.constant 0 : index
    %c64 = arith.constant 64 : index
    %62 = vector.load %arg52[%c0_87, %c64] : memref<64x192xf32, #tpu.memory_space<vmem>>, vector<16x16xf32>
    tpu.vector_store %arg52[%c0_87, %c64], %61 {strides = array<i32>} : memref<64x192xf32, #tpu.memory_space<vmem>>, vector<16x16xf32>,
    %c0_88 = arith.constant 0 : index
    %c0_89 = arith.constant 0 : index
    %63 = vector.load %arg52[%c0_88, %c0_89] : memref<64x192xf32, #tpu.memory_space<vmem>>, vector<16x80xf32>
    %c0_90 = arith.constant 0 : index
    %c0_91 = arith.constant 0 : index
    %64 = vector.load %arg8[%c0_90, %c0_91] : memref<80x16xf32, #tpu.memory_space<vmem>>, vector<80x16xf32>
    %cst_92 = arith.constant dense<0.000000e+00> : vector<16x16xf32>
    %65 = tpu.matmul %63, %64, %cst_92 {dimension_numbers = #tpu.dot_dimension_numbers<[1], [0], [0], [1], [0, 0, 1, 1], [], []>} : vector<16x80xf32>, vector<80x16xf32>, vector<16x16xf32> -> vector<16x16xf32>
    %c0_93 = arith.constant 0 : index
    %c0_94 = arith.constant 0 : index
    %66 = vector.load %arg10[%c0_93, %c0_94] : memref<8x16xf32, #tpu.memory_space<vmem>>, vector<8x16xf32>
    %cst_95 = arith.constant dense<0.000000e+00> : vector<8x16xf32>
    %67 = tpu.matmul %66, %65, %cst_95 {dimension_numbers = #tpu.dot_dimension_numbers<[1], [0], [0], [1], [0, 0, 1, 1], [], []>} : vector<8x16xf32>, vector<16x16xf32>, vector<8x16xf32> -> vector<8x16xf32>
    %c0_96 = arith.constant 0 : index
    %c0_97 = arith.constant 0 : index
    %68 = vector.load %arg9[%c0_96, %c0_97] : memref<1x16xf32, #tpu.memory_space<vmem>>, vector<1x16xf32>
    %69 = vector.broadcast %68 : vector<1x16xf32> to vector<8x16xf32>
    %70 = arith.addf %67, %69 : vector<8x16xf32>
    %cst_98 = arith.constant 0.000000e+00 : f32
    %71 = vector.broadcast %cst_98 : f32 to vector<8x16xf32>
    %72 = arith.maximumf %70, %71 : vector<8x16xf32>
    %c2_99 = arith.constant 2 : index
    %c0_100 = arith.constant 0 : index
    %73 = vector.load %arg51[%c2_99, %c0_100] : memref<68x64xf32, #tpu.memory_space<vmem>>, vector<8x16xf32>
    tpu.vector_store %arg51[%c2_99, %c0_100], %72 {strides = array<i32>} : memref<68x64xf32, #tpu.memory_space<vmem>>, vector<8x16xf32>,
    %cst_101 = arith.constant 0.000000e+00 : f32
    %74 = vector.broadcast %cst_101 : f32 to vector<2x16xf32>
    %c10 = arith.constant 10 : index
    %c0_102 = arith.constant 0 : index
    %75 = vector.load %arg51[%c10, %c0_102] : memref<68x64xf32, #tpu.memory_space<vmem>>, vector<2x16xf32>
    tpu.vector_store %arg51[%c10, %c0_102], %74 {strides = array<i32>} : memref<68x64xf32, #tpu.memory_space<vmem>>, vector<2x16xf32>,
    %c0_103 = arith.constant 0 : index
    %c0_104 = arith.constant 0 : index
    %76 = vector.load %arg51[%c0_103, %c0_104] : memref<68x64xf32, #tpu.memory_space<vmem>>, vector<8x16xf32>
    %c0_105 = arith.constant 0 : index
    %c0_106 = arith.constant 0 : index
    %77 = vector.load %arg52[%c0_105, %c0_106] : memref<64x192xf32, #tpu.memory_space<vmem>>, vector<8x16xf32>
    tpu.vector_store %arg52[%c0_105, %c0_106], %76 {strides = array<i32>} : memref<64x192xf32, #tpu.memory_space<vmem>>, vector<8x16xf32>,
    %c1_107 = arith.constant 1 : index
    %c0_108 = arith.constant 0 : index
    %78 = vector.load %arg51[%c1_107, %c0_108] : memref<68x64xf32, #tpu.memory_space<vmem>>, vector<8x16xf32>
    %c0_109 = arith.constant 0 : index
    %c16_110 = arith.constant 16 : index
    %79 = vector.load %arg52[%c0_109, %c16_110] : memref<64x192xf32, #tpu.memory_space<vmem>>, vector<8x16xf32>
    tpu.vector_store %arg52[%c0_109, %c16_110], %78 {strides = array<i32>} : memref<64x192xf32, #tpu.memory_space<vmem>>, vector<8x16xf32>,
    %c2_111 = arith.constant 2 : index
    %c0_112 = arith.constant 0 : index
    %80 = vector.load %arg51[%c2_111, %c0_112] : memref<68x64xf32, #tpu.memory_space<vmem>>, vector<8x16xf32>
    %c0_113 = arith.constant 0 : index
    %c32_114 = arith.constant 32 : index
    %81 = vector.load %arg52[%c0_113, %c32_114] : memref<64x192xf32, #tpu.memory_space<vmem>>, vector<8x16xf32>
    tpu.vector_store %arg52[%c0_113, %c32_114], %80 {strides = array<i32>} : memref<64x192xf32, #tpu.memory_space<vmem>>, vector<8x16xf32>,
    %c3_115 = arith.constant 3 : index
    %c0_116 = arith.constant 0 : index
    %82 = vector.load %arg51[%c3_115, %c0_116] : memref<68x64xf32, #tpu.memory_space<vmem>>, vector<8x16xf32>
    %c0_117 = arith.constant 0 : index
    %c48_118 = arith.constant 48 : index
    %83 = vector.load %arg52[%c0_117, %c48_118] : memref<64x192xf32, #tpu.memory_space<vmem>>, vector<8x16xf32>
    tpu.vector_store %arg52[%c0_117, %c48_118], %82 {strides = array<i32>} : memref<64x192xf32, #tpu.memory_space<vmem>>, vector<8x16xf32>,
    %c4_119 = arith.constant 4 : index
    %c0_120 = arith.constant 0 : index
    %84 = vector.load %arg51[%c4_119, %c0_120] : memref<68x64xf32, #tpu.memory_space<vmem>>, vector<8x16xf32>
    %c0_121 = arith.constant 0 : index
    %c64_122 = arith.constant 64 : index
    %85 = vector.load %arg52[%c0_121, %c64_122] : memref<64x192xf32, #tpu.memory_space<vmem>>, vector<8x16xf32>
    tpu.vector_store %arg52[%c0_121, %c64_122], %84 {strides = array<i32>} : memref<64x192xf32, #tpu.memory_space<vmem>>, vector<8x16xf32>,
    %c0_123 = arith.constant 0 : index
    %c0_124 = arith.constant 0 : index
    %86 = vector.load %arg52[%c0_123, %c0_124] : memref<64x192xf32, #tpu.memory_space<vmem>>, vector<8x80xf32>
    %c0_125 = arith.constant 0 : index
    %c0_126 = arith.constant 0 : index
    %87 = vector.load %arg11[%c0_125, %c0_126] : memref<80x32xf32, #tpu.memory_space<vmem>>, vector<80x32xf32>
    %cst_127 = arith.constant dense<0.000000e+00> : vector<8x32xf32>
    %88 = tpu.matmul %86, %87, %cst_127 {dimension_numbers = #tpu.dot_dimension_numbers<[1], [0], [0], [1], [0, 0, 1, 1], [], []>} : vector<8x80xf32>, vector<80x32xf32>, vector<8x32xf32> -> vector<8x32xf32>
    %c0_128 = arith.constant 0 : index
    %c0_129 = arith.constant 0 : index
    %89 = vector.load %arg13[%c0_128, %c0_129] : memref<4x8xf32, #tpu.memory_space<vmem>>, vector<4x8xf32>
    %cst_130 = arith.constant dense<0.000000e+00> : vector<4x32xf32>
    %90 = tpu.matmul %89, %88, %cst_130 {dimension_numbers = #tpu.dot_dimension_numbers<[1], [0], [0], [1], [0, 0, 1, 1], [], []>} : vector<4x8xf32>, vector<8x32xf32>, vector<4x32xf32> -> vector<4x32xf32>
    %c0_131 = arith.constant 0 : index
    %c0_132 = arith.constant 0 : index
    %91 = vector.load %arg12[%c0_131, %c0_132] : memref<1x32xf32, #tpu.memory_space<vmem>>, vector<1x32xf32>
    %92 = vector.broadcast %91 : vector<1x32xf32> to vector<4x32xf32>
    %93 = arith.addf %90, %92 : vector<4x32xf32>
    %cst_133 = arith.constant 0.000000e+00 : f32
    %94 = vector.broadcast %cst_133 : f32 to vector<4x32xf32>
    %95 = arith.maximumf %93, %94 : vector<4x32xf32>
    %c2_134 = arith.constant 2 : index
    %c0_135 = arith.constant 0 : index
    %96 = vector.load %arg51[%c2_134, %c0_135] : memref<68x64xf32, #tpu.memory_space<vmem>>, vector<4x32xf32>
    tpu.vector_store %arg51[%c2_134, %c0_135], %95 {strides = array<i32>} : memref<68x64xf32, #tpu.memory_space<vmem>>, vector<4x32xf32>,
    %cst_136 = arith.constant 0.000000e+00 : f32
    %97 = vector.broadcast %cst_136 : f32 to vector<2x32xf32>
    %c6 = arith.constant 6 : index
    %c0_137 = arith.constant 0 : index
    %98 = vector.load %arg51[%c6, %c0_137] : memref<68x64xf32, #tpu.memory_space<vmem>>, vector<2x32xf32>
    tpu.vector_store %arg51[%c6, %c0_137], %97 {strides = array<i32>} : memref<68x64xf32, #tpu.memory_space<vmem>>, vector<2x32xf32>,
    %c0_138 = arith.constant 0 : index
    %c0_139 = arith.constant 0 : index
    %99 = vector.load %arg51[%c0_138, %c0_139] : memref<68x64xf32, #tpu.memory_space<vmem>>, vector<4x32xf32>
    %c0_140 = arith.constant 0 : index
    %c0_141 = arith.constant 0 : index
    %100 = vector.load %arg52[%c0_140, %c0_141] : memref<64x192xf32, #tpu.memory_space<vmem>>, vector<4x32xf32>
    tpu.vector_store %arg52[%c0_140, %c0_141], %99 {strides = array<i32>} : memref<64x192xf32, #tpu.memory_space<vmem>>, vector<4x32xf32>,
    %c1_142 = arith.constant 1 : index
    %c0_143 = arith.constant 0 : index
    %101 = vector.load %arg51[%c1_142, %c0_143] : memref<68x64xf32, #tpu.memory_space<vmem>>, vector<4x32xf32>
    %c0_144 = arith.constant 0 : index
    %c32_145 = arith.constant 32 : index
    %102 = vector.load %arg52[%c0_144, %c32_145] : memref<64x192xf32, #tpu.memory_space<vmem>>, vector<4x32xf32>
    tpu.vector_store %arg52[%c0_144, %c32_145], %101 {strides = array<i32>} : memref<64x192xf32, #tpu.memory_space<vmem>>, vector<4x32xf32>,
    %c2_146 = arith.constant 2 : index
    %c0_147 = arith.constant 0 : index
    %103 = vector.load %arg51[%c2_146, %c0_147] : memref<68x64xf32, #tpu.memory_space<vmem>>, vector<4x32xf32>
    %c0_148 = arith.constant 0 : index
    %c64_149 = arith.constant 64 : index
    %104 = vector.load %arg52[%c0_148, %c64_149] : memref<64x192xf32, #tpu.memory_space<vmem>>, vector<4x32xf32>
    tpu.vector_store %arg52[%c0_148, %c64_149], %103 {strides = array<i32>} : memref<64x192xf32, #tpu.memory_space<vmem>>, vector<4x32xf32>,
    %c3_150 = arith.constant 3 : index
    %c0_151 = arith.constant 0 : index
    %105 = vector.load %arg51[%c3_150, %c0_151] : memref<68x64xf32, #tpu.memory_space<vmem>>, vector<4x32xf32>
    %c0_152 = arith.constant 0 : index
    %c96 = arith.constant 96 : index
    %106 = vector.load %arg52[%c0_152, %c96] : memref<64x192xf32, #tpu.memory_space<vmem>>, vector<4x32xf32>
    tpu.vector_store %arg52[%c0_152, %c96], %105 {strides = array<i32>} : memref<64x192xf32, #tpu.memory_space<vmem>>, vector<4x32xf32>,
    %c4_153 = arith.constant 4 : index
    %c0_154 = arith.constant 0 : index
    %107 = vector.load %arg51[%c4_153, %c0_154] : memref<68x64xf32, #tpu.memory_space<vmem>>, vector<4x32xf32>
    %c0_155 = arith.constant 0 : index
    %c128 = arith.constant 128 : index
    %108 = vector.load %arg52[%c0_155, %c128] : memref<64x192xf32, #tpu.memory_space<vmem>>, vector<4x32xf32>
    tpu.vector_store %arg52[%c0_155, %c128], %107 {strides = array<i32>} : memref<64x192xf32, #tpu.memory_space<vmem>>, vector<4x32xf32>,
    %c0_156 = arith.constant 0 : index
    %c0_157 = arith.constant 0 : index
    %109 = vector.load %arg52[%c0_156, %c0_157] : memref<64x192xf32, #tpu.memory_space<vmem>>, vector<4x160xf32>
    %c0_158 = arith.constant 0 : index
    %c0_159 = arith.constant 0 : index
    %110 = vector.load %arg14[%c0_158, %c0_159] : memref<160x32xf32, #tpu.memory_space<vmem>>, vector<160x32xf32>
    %cst_160 = arith.constant dense<0.000000e+00> : vector<4x32xf32>
    %111 = tpu.matmul %109, %110, %cst_160 {dimension_numbers = #tpu.dot_dimension_numbers<[1], [0], [0], [1], [0, 0, 1, 1], [], []>} : vector<4x160xf32>, vector<160x32xf32>, vector<4x32xf32> -> vector<4x32xf32>
    %c0_161 = arith.constant 0 : index
    %c0_162 = arith.constant 0 : index
    %112 = vector.load %arg16[%c0_161, %c0_162] : memref<2x4xf32, #tpu.memory_space<vmem>>, vector<2x4xf32>
    %cst_163 = arith.constant dense<0.000000e+00> : vector<2x32xf32>
    %113 = tpu.matmul %112, %111, %cst_163 {dimension_numbers = #tpu.dot_dimension_numbers<[1], [0], [0], [1], [0, 0, 1, 1], [], []>} : vector<2x4xf32>, vector<4x32xf32>, vector<2x32xf32> -> vector<2x32xf32>
    %c0_164 = arith.constant 0 : index
    %c0_165 = arith.constant 0 : index
    %114 = vector.load %arg15[%c0_164, %c0_165] : memref<1x32xf32, #tpu.memory_space<vmem>>, vector<1x32xf32>
    %115 = vector.broadcast %114 : vector<1x32xf32> to vector<2x32xf32>
    %116 = arith.addf %113, %115 : vector<2x32xf32>
    %cst_166 = arith.constant 0.000000e+00 : f32
    %117 = vector.broadcast %cst_166 : f32 to vector<2x32xf32>
    %118 = arith.maximumf %116, %117 : vector<2x32xf32>
    %c2_167 = arith.constant 2 : index
    %c0_168 = arith.constant 0 : index
    %119 = vector.load %arg51[%c2_167, %c0_168] : memref<68x64xf32, #tpu.memory_space<vmem>>, vector<2x32xf32>
    tpu.vector_store %arg51[%c2_167, %c0_168], %118 {strides = array<i32>} : memref<68x64xf32, #tpu.memory_space<vmem>>, vector<2x32xf32>,
    %cst_169 = arith.constant 0.000000e+00 : f32
    %120 = vector.broadcast %cst_169 : f32 to vector<2x32xf32>
    %c4_170 = arith.constant 4 : index
    %c0_171 = arith.constant 0 : index
    %121 = vector.load %arg51[%c4_170, %c0_171] : memref<68x64xf32, #tpu.memory_space<vmem>>, vector<2x32xf32>
    tpu.vector_store %arg51[%c4_170, %c0_171], %120 {strides = array<i32>} : memref<68x64xf32, #tpu.memory_space<vmem>>, vector<2x32xf32>,
    %c0_172 = arith.constant 0 : index
    %c0_173 = arith.constant 0 : index
    %122 = vector.load %arg51[%c0_172, %c0_173] : memref<68x64xf32, #tpu.memory_space<vmem>>, vector<2x32xf32>
    %c0_174 = arith.constant 0 : index
    %c0_175 = arith.constant 0 : index
    %123 = vector.load %arg52[%c0_174, %c0_175] : memref<64x192xf32, #tpu.memory_space<vmem>>, vector<2x32xf32>
    tpu.vector_store %arg52[%c0_174, %c0_175], %122 {strides = array<i32>} : memref<64x192xf32, #tpu.memory_space<vmem>>, vector<2x32xf32>,
    %c1_176 = arith.constant 1 : index
    %c0_177 = arith.constant 0 : index
    %124 = vector.load %arg51[%c1_176, %c0_177] : memref<68x64xf32, #tpu.memory_space<vmem>>, vector<2x32xf32>
    %c0_178 = arith.constant 0 : index
    %c32_179 = arith.constant 32 : index
    %125 = vector.load %arg52[%c0_178, %c32_179] : memref<64x192xf32, #tpu.memory_space<vmem>>, vector<2x32xf32>
    tpu.vector_store %arg52[%c0_178, %c32_179], %124 {strides = array<i32>} : memref<64x192xf32, #tpu.memory_space<vmem>>, vector<2x32xf32>,
    %c2_180 = arith.constant 2 : index
    %c0_181 = arith.constant 0 : index
    %126 = vector.load %arg51[%c2_180, %c0_181] : memref<68x64xf32, #tpu.memory_space<vmem>>, vector<2x32xf32>
    %c0_182 = arith.constant 0 : index
    %c64_183 = arith.constant 64 : index
    %127 = vector.load %arg52[%c0_182, %c64_183] : memref<64x192xf32, #tpu.memory_space<vmem>>, vector<2x32xf32>
    tpu.vector_store %arg52[%c0_182, %c64_183], %126 {strides = array<i32>} : memref<64x192xf32, #tpu.memory_space<vmem>>, vector<2x32xf32>,
    %c3_184 = arith.constant 3 : index
    %c0_185 = arith.constant 0 : index
    %128 = vector.load %arg51[%c3_184, %c0_185] : memref<68x64xf32, #tpu.memory_space<vmem>>, vector<2x32xf32>
    %c0_186 = arith.constant 0 : index
    %c96_187 = arith.constant 96 : index
    %129 = vector.load %arg52[%c0_186, %c96_187] : memref<64x192xf32, #tpu.memory_space<vmem>>, vector<2x32xf32>
    tpu.vector_store %arg52[%c0_186, %c96_187], %128 {strides = array<i32>} : memref<64x192xf32, #tpu.memory_space<vmem>>, vector<2x32xf32>,
    %c4_188 = arith.constant 4 : index
    %c0_189 = arith.constant 0 : index
    %130 = vector.load %arg51[%c4_188, %c0_189] : memref<68x64xf32, #tpu.memory_space<vmem>>, vector<2x32xf32>
    %c0_190 = arith.constant 0 : index
    %c128_191 = arith.constant 128 : index
    %131 = vector.load %arg52[%c0_190, %c128_191] : memref<64x192xf32, #tpu.memory_space<vmem>>, vector<2x32xf32>
    tpu.vector_store %arg52[%c0_190, %c128_191], %130 {strides = array<i32>} : memref<64x192xf32, #tpu.memory_space<vmem>>, vector<2x32xf32>,
    %c0_192 = arith.constant 0 : index
    %c0_193 = arith.constant 0 : index
    %132 = vector.load %arg52[%c0_192, %c0_193] : memref<64x192xf32, #tpu.memory_space<vmem>>, vector<2x160xf32>
    %c0_194 = arith.constant 0 : index
    %c0_195 = arith.constant 0 : index
    %133 = vector.load %arg17[%c0_194, %c0_195] : memref<160x64xf32, #tpu.memory_space<vmem>>, vector<160x64xf32>
    %cst_196 = arith.constant dense<0.000000e+00> : vector<2x64xf32>
    %134 = tpu.matmul %132, %133, %cst_196 {dimension_numbers = #tpu.dot_dimension_numbers<[1], [0], [0], [1], [0, 0, 1, 1], [], []>} : vector<2x160xf32>, vector<160x64xf32>, vector<2x64xf32> -> vector<2x64xf32>
    %c0_197 = arith.constant 0 : index
    %c0_198 = arith.constant 0 : index
    %135 = vector.load %arg19[%c0_197, %c0_198] : memref<1x2xf32, #tpu.memory_space<vmem>>, vector<1x2xf32>
    %cst_199 = arith.constant dense<0.000000e+00> : vector<1x64xf32>
    %136 = tpu.matmul %135, %134, %cst_199 {dimension_numbers = #tpu.dot_dimension_numbers<[1], [0], [0], [1], [0, 0, 1, 1], [], []>} : vector<1x2xf32>, vector<2x64xf32>, vector<1x64xf32> -> vector<1x64xf32>
    %c0_200 = arith.constant 0 : index
    %c0_201 = arith.constant 0 : index
    %137 = vector.load %arg18[%c0_200, %c0_201] : memref<1x64xf32, #tpu.memory_space<vmem>>, vector<1x64xf32>
    %138 = arith.addf %136, %137 : vector<1x64xf32>
    %cst_202 = arith.constant 0.000000e+00 : f32
    %139 = vector.broadcast %cst_202 : f32 to vector<1x64xf32>
    %140 = arith.maximumf %138, %139 : vector<1x64xf32>
    %c2_203 = arith.constant 2 : index
    %c0_204 = arith.constant 0 : index
    %141 = vector.load %arg51[%c2_203, %c0_204] : memref<68x64xf32, #tpu.memory_space<vmem>>, vector<1x64xf32>
    tpu.vector_store %arg51[%c2_203, %c0_204], %140 {strides = array<i32>} : memref<68x64xf32, #tpu.memory_space<vmem>>, vector<1x64xf32>,
    %cst_205 = arith.constant 0.000000e+00 : f32
    %142 = vector.broadcast %cst_205 : f32 to vector<2x64xf32>
    %c3_206 = arith.constant 3 : index
    %c0_207 = arith.constant 0 : index
    %143 = vector.load %arg51[%c3_206, %c0_207] : memref<68x64xf32, #tpu.memory_space<vmem>>, vector<2x64xf32>
    tpu.vector_store %arg51[%c3_206, %c0_207], %142 {strides = array<i32>} : memref<68x64xf32, #tpu.memory_space<vmem>>, vector<2x64xf32>,
    %c3_208 = arith.constant 3 : index
    %c0_209 = arith.constant 0 : index
    %144 = vector.load %arg51[%c3_208, %c0_209] : memref<68x64xf32, #tpu.memory_space<vmem>>, vector<1x64xf32>
    %c0_210 = arith.constant 0 : index
    %c0_211 = arith.constant 0 : index
    %145 = vector.load %arg52[%c0_210, %c0_211] : memref<64x192xf32, #tpu.memory_space<vmem>>, vector<1x64xf32>
    tpu.vector_store %arg52[%c0_210, %c0_211], %144 {strides = array<i32>} : memref<64x192xf32, #tpu.memory_space<vmem>>, vector<1x64xf32>,
    %c2_212 = arith.constant 2 : index
    %c0_213 = arith.constant 0 : index
    %146 = vector.load %arg51[%c2_212, %c0_213] : memref<68x64xf32, #tpu.memory_space<vmem>>, vector<1x64xf32>
    %c0_214 = arith.constant 0 : index
    %c64_215 = arith.constant 64 : index
    %147 = vector.load %arg52[%c0_214, %c64_215] : memref<64x192xf32, #tpu.memory_space<vmem>>, vector<1x64xf32>
    tpu.vector_store %arg52[%c0_214, %c64_215], %146 {strides = array<i32>} : memref<64x192xf32, #tpu.memory_space<vmem>>, vector<1x64xf32>,
    %c1_216 = arith.constant 1 : index
    %c0_217 = arith.constant 0 : index
    %148 = vector.load %arg51[%c1_216, %c0_217] : memref<68x64xf32, #tpu.memory_space<vmem>>, vector<1x64xf32>
    %c0_218 = arith.constant 0 : index
    %c128_219 = arith.constant 128 : index
    %149 = vector.load %arg52[%c0_218, %c128_219] : memref<64x192xf32, #tpu.memory_space<vmem>>, vector<1x64xf32>
    tpu.vector_store %arg52[%c0_218, %c128_219], %148 {strides = array<i32>} : memref<64x192xf32, #tpu.memory_space<vmem>>, vector<1x64xf32>,
    %c0_220 = arith.constant 0 : index
    %c0_221 = arith.constant 0 : index
    %150 = vector.load %arg52[%c0_220, %c0_221] : memref<64x192xf32, #tpu.memory_space<vmem>>, vector<1x192xf32>
    %c0_222 = arith.constant 0 : index
    %c0_223 = arith.constant 0 : index
    %151 = vector.load %arg20[%c0_222, %c0_223] : memref<192x32xf32, #tpu.memory_space<vmem>>, vector<192x32xf32>
    %cst_224 = arith.constant dense<0.000000e+00> : vector<1x32xf32>
    %152 = tpu.matmul %150, %151, %cst_224 {dimension_numbers = #tpu.dot_dimension_numbers<[1], [0], [0], [1], [0, 0, 1, 1], [], []>} : vector<1x192xf32>, vector<192x32xf32>, vector<1x32xf32> -> vector<1x32xf32>
    %c0_225 = arith.constant 0 : index
    %c0_226 = arith.constant 0 : index
    %153 = vector.load %arg52[%c0_225, %c0_226] : memref<64x192xf32, #tpu.memory_space<vmem>>, vector<1x128xf32>
    %c0_227 = arith.constant 0 : index
    %c0_228 = arith.constant 0 : index
    %154 = vector.load %arg21[%c0_227, %c0_228] : memref<128x32xf32, #tpu.memory_space<vmem>>, vector<128x32xf32>
    %cst_229 = arith.constant dense<0.000000e+00> : vector<1x32xf32>
    %155 = tpu.matmul %153, %154, %cst_229 {dimension_numbers = #tpu.dot_dimension_numbers<[1], [0], [0], [1], [0, 0, 1, 1], [], []>} : vector<1x128xf32>, vector<128x32xf32>, vector<1x32xf32> -> vector<1x32xf32>
    %c0_230 = arith.constant 0 : index
    %c0_231 = arith.constant 0 : index
    %156 = vector.load %arg23[%c0_230, %c0_231] : memref<2x1xf32, #tpu.memory_space<vmem>>, vector<2x1xf32>
    %157 = vector.broadcast %156 : vector<2x1xf32> to vector<2x32xf32>
    %158 = vector.broadcast %152 : vector<1x32xf32> to vector<2x32xf32>
    %159 = arith.mulf %157, %158 : vector<2x32xf32>
    %c0_232 = arith.constant 0 : index
    %c0_233 = arith.constant 0 : index
    %160 = vector.load %arg24[%c0_232, %c0_233] : memref<2x1xf32, #tpu.memory_space<vmem>>, vector<2x1xf32>
    %161 = vector.broadcast %160 : vector<2x1xf32> to vector<2x32xf32>
    %162 = vector.broadcast %155 : vector<1x32xf32> to vector<2x32xf32>
    %163 = arith.mulf %161, %162 : vector<2x32xf32>
    %164 = arith.addf %159, %163 : vector<2x32xf32>
    %c0_234 = arith.constant 0 : index
    %c0_235 = arith.constant 0 : index
    %165 = vector.load %arg22[%c0_234, %c0_235] : memref<1x32xf32, #tpu.memory_space<vmem>>, vector<1x32xf32>
    %166 = vector.broadcast %165 : vector<1x32xf32> to vector<2x32xf32>
    %167 = arith.addf %164, %166 : vector<2x32xf32>
    %cst_236 = arith.constant 0.000000e+00 : f32
    %168 = vector.broadcast %cst_236 : f32 to vector<2x32xf32>
    %169 = arith.maximumf %167, %168 : vector<2x32xf32>
    %c2_237 = arith.constant 2 : index
    %c0_238 = arith.constant 0 : index
    %170 = vector.load %arg51[%c2_237, %c0_238] : memref<68x64xf32, #tpu.memory_space<vmem>>, vector<2x32xf32>
    tpu.vector_store %arg51[%c2_237, %c0_238], %118 {strides = array<i32>} : memref<68x64xf32, #tpu.memory_space<vmem>>, vector<2x32xf32>,
    %c2_239 = arith.constant 2 : index
    %c32_240 = arith.constant 32 : index
    %171 = vector.load %arg51[%c2_239, %c32_240] : memref<68x64xf32, #tpu.memory_space<vmem>>, vector<2x32xf32>
    tpu.vector_store %arg51[%c2_239, %c32_240], %169 {strides = array<i32>} : memref<68x64xf32, #tpu.memory_space<vmem>>, vector<2x32xf32>,
    %cst_241 = arith.constant 0.000000e+00 : f32
    %172 = vector.broadcast %cst_241 : f32 to vector<2x64xf32>
    %c4_242 = arith.constant 4 : index
    %c0_243 = arith.constant 0 : index
    %173 = vector.load %arg51[%c4_242, %c0_243] : memref<68x64xf32, #tpu.memory_space<vmem>>, vector<2x64xf32>
    tpu.vector_store %arg51[%c4_242, %c0_243], %172 {strides = array<i32>} : memref<68x64xf32, #tpu.memory_space<vmem>>, vector<2x64xf32>,
    %c3_244 = arith.constant 3 : index
    %c0_245 = arith.constant 0 : index
    %174 = vector.load %arg51[%c3_244, %c0_245] : memref<68x64xf32, #tpu.memory_space<vmem>>, vector<2x64xf32>
    %c0_246 = arith.constant 0 : index
    %c0_247 = arith.constant 0 : index
    %175 = vector.load %arg52[%c0_246, %c0_247] : memref<64x192xf32, #tpu.memory_space<vmem>>, vector<2x64xf32>
    tpu.vector_store %arg52[%c0_246, %c0_247], %174 {strides = array<i32>} : memref<64x192xf32, #tpu.memory_space<vmem>>, vector<2x64xf32>,
    %c2_248 = arith.constant 2 : index
    %c0_249 = arith.constant 0 : index
    %176 = vector.load %arg51[%c2_248, %c0_249] : memref<68x64xf32, #tpu.memory_space<vmem>>, vector<2x64xf32>
    %c0_250 = arith.constant 0 : index
    %c64_251 = arith.constant 64 : index
    %177 = vector.load %arg52[%c0_250, %c64_251] : memref<64x192xf32, #tpu.memory_space<vmem>>, vector<2x64xf32>
    tpu.vector_store %arg52[%c0_250, %c64_251], %176 {strides = array<i32>} : memref<64x192xf32, #tpu.memory_space<vmem>>, vector<2x64xf32>,
    %c1_252 = arith.constant 1 : index
    %c0_253 = arith.constant 0 : index
    %178 = vector.load %arg51[%c1_252, %c0_253] : memref<68x64xf32, #tpu.memory_space<vmem>>, vector<2x64xf32>
    %c0_254 = arith.constant 0 : index
    %c128_255 = arith.constant 128 : index
    %179 = vector.load %arg52[%c0_254, %c128_255] : memref<64x192xf32, #tpu.memory_space<vmem>>, vector<2x64xf32>
    tpu.vector_store %arg52[%c0_254, %c128_255], %178 {strides = array<i32>} : memref<64x192xf32, #tpu.memory_space<vmem>>, vector<2x64xf32>,
    %c0_256 = arith.constant 0 : index
    %c0_257 = arith.constant 0 : index
    %180 = vector.load %arg52[%c0_256, %c0_257] : memref<64x192xf32, #tpu.memory_space<vmem>>, vector<2x192xf32>
    %c0_258 = arith.constant 0 : index
    %c0_259 = arith.constant 0 : index
    %181 = vector.load %arg25[%c0_258, %c0_259] : memref<192x32xf32, #tpu.memory_space<vmem>>, vector<192x32xf32>
    %cst_260 = arith.constant dense<0.000000e+00> : vector<2x32xf32>
    %182 = tpu.matmul %180, %181, %cst_260 {dimension_numbers = #tpu.dot_dimension_numbers<[1], [0], [0], [1], [0, 0, 1, 1], [], []>} : vector<2x192xf32>, vector<192x32xf32>, vector<2x32xf32> -> vector<2x32xf32>
    %c0_261 = arith.constant 0 : index
    %c0_262 = arith.constant 0 : index
    %183 = vector.load %arg52[%c0_261, %c0_262] : memref<64x192xf32, #tpu.memory_space<vmem>>, vector<2x128xf32>
    %c0_263 = arith.constant 0 : index
    %c0_264 = arith.constant 0 : index
    %184 = vector.load %arg26[%c0_263, %c0_264] : memref<128x32xf32, #tpu.memory_space<vmem>>, vector<128x32xf32>
    %cst_265 = arith.constant dense<0.000000e+00> : vector<2x32xf32>
    %185 = tpu.matmul %183, %184, %cst_265 {dimension_numbers = #tpu.dot_dimension_numbers<[1], [0], [0], [1], [0, 0, 1, 1], [], []>} : vector<2x128xf32>, vector<128x32xf32>, vector<2x32xf32> -> vector<2x32xf32>
    %c0_266 = arith.constant 0 : index
    %c0_267 = arith.constant 0 : index
    %186 = vector.load %arg28[%c0_266, %c0_267] : memref<4x2xf32, #tpu.memory_space<vmem>>, vector<4x2xf32>
    %cst_268 = arith.constant dense<0.000000e+00> : vector<4x32xf32>
    %187 = tpu.matmul %186, %182, %cst_268 {dimension_numbers = #tpu.dot_dimension_numbers<[1], [0], [0], [1], [0, 0, 1, 1], [], []>} : vector<4x2xf32>, vector<2x32xf32>, vector<4x32xf32> -> vector<4x32xf32>
    %c0_269 = arith.constant 0 : index
    %c0_270 = arith.constant 0 : index
    %188 = vector.load %arg29[%c0_269, %c0_270] : memref<4x2xf32, #tpu.memory_space<vmem>>, vector<4x2xf32>
    %cst_271 = arith.constant dense<0.000000e+00> : vector<4x32xf32>
    %189 = tpu.matmul %188, %185, %cst_271 {dimension_numbers = #tpu.dot_dimension_numbers<[1], [0], [0], [1], [0, 0, 1, 1], [], []>} : vector<4x2xf32>, vector<2x32xf32>, vector<4x32xf32> -> vector<4x32xf32>
    %190 = arith.addf %187, %189 : vector<4x32xf32>
    %c0_272 = arith.constant 0 : index
    %c0_273 = arith.constant 0 : index
    %191 = vector.load %arg27[%c0_272, %c0_273] : memref<1x32xf32, #tpu.memory_space<vmem>>, vector<1x32xf32>
    %192 = vector.broadcast %191 : vector<1x32xf32> to vector<4x32xf32>
    %193 = arith.addf %190, %192 : vector<4x32xf32>
    %cst_274 = arith.constant 0.000000e+00 : f32
    %194 = vector.broadcast %cst_274 : f32 to vector<4x32xf32>
    %195 = arith.maximumf %193, %194 : vector<4x32xf32>
    %c2_275 = arith.constant 2 : index
    %c0_276 = arith.constant 0 : index
    %196 = vector.load %arg51[%c2_275, %c0_276] : memref<68x64xf32, #tpu.memory_space<vmem>>, vector<4x32xf32>
    tpu.vector_store %arg51[%c2_275, %c0_276], %95 {strides = array<i32>} : memref<68x64xf32, #tpu.memory_space<vmem>>, vector<4x32xf32>,
    %c2_277 = arith.constant 2 : index
    %c32_278 = arith.constant 32 : index
    %197 = vector.load %arg51[%c2_277, %c32_278] : memref<68x64xf32, #tpu.memory_space<vmem>>, vector<4x32xf32>
    tpu.vector_store %arg51[%c2_277, %c32_278], %195 {strides = array<i32>} : memref<68x64xf32, #tpu.memory_space<vmem>>, vector<4x32xf32>,
    %cst_279 = arith.constant 0.000000e+00 : f32
    %198 = vector.broadcast %cst_279 : f32 to vector<2x64xf32>
    %c6_280 = arith.constant 6 : index
    %c0_281 = arith.constant 0 : index
    %199 = vector.load %arg51[%c6_280, %c0_281] : memref<68x64xf32, #tpu.memory_space<vmem>>, vector<2x64xf32>
    tpu.vector_store %arg51[%c6_280, %c0_281], %198 {strides = array<i32>} : memref<68x64xf32, #tpu.memory_space<vmem>>, vector<2x64xf32>,
    %c3_282 = arith.constant 3 : index
    %c0_283 = arith.constant 0 : index
    %200 = vector.load %arg51[%c3_282, %c0_283] : memref<68x64xf32, #tpu.memory_space<vmem>>, vector<4x64xf32>
    %c0_284 = arith.constant 0 : index
    %c0_285 = arith.constant 0 : index
    %201 = vector.load %arg52[%c0_284, %c0_285] : memref<64x192xf32, #tpu.memory_space<vmem>>, vector<4x64xf32>
    tpu.vector_store %arg52[%c0_284, %c0_285], %200 {strides = array<i32>} : memref<64x192xf32, #tpu.memory_space<vmem>>, vector<4x64xf32>,
    %c2_286 = arith.constant 2 : index
    %c0_287 = arith.constant 0 : index
    %202 = vector.load %arg51[%c2_286, %c0_287] : memref<68x64xf32, #tpu.memory_space<vmem>>, vector<4x64xf32>
    %c0_288 = arith.constant 0 : index
    %c64_289 = arith.constant 64 : index
    %203 = vector.load %arg52[%c0_288, %c64_289] : memref<64x192xf32, #tpu.memory_space<vmem>>, vector<4x64xf32>
    tpu.vector_store %arg52[%c0_288, %c64_289], %202 {strides = array<i32>} : memref<64x192xf32, #tpu.memory_space<vmem>>, vector<4x64xf32>,
    %c1_290 = arith.constant 1 : index
    %c0_291 = arith.constant 0 : index
    %204 = vector.load %arg51[%c1_290, %c0_291] : memref<68x64xf32, #tpu.memory_space<vmem>>, vector<4x64xf32>
    %c0_292 = arith.constant 0 : index
    %c128_293 = arith.constant 128 : index
    %205 = vector.load %arg52[%c0_292, %c128_293] : memref<64x192xf32, #tpu.memory_space<vmem>>, vector<4x64xf32>
    tpu.vector_store %arg52[%c0_292, %c128_293], %204 {strides = array<i32>} : memref<64x192xf32, #tpu.memory_space<vmem>>, vector<4x64xf32>,
    %c0_294 = arith.constant 0 : index
    %c0_295 = arith.constant 0 : index
    %206 = vector.load %arg52[%c0_294, %c0_295] : memref<64x192xf32, #tpu.memory_space<vmem>>, vector<4x192xf32>
    %c0_296 = arith.constant 0 : index
    %c0_297 = arith.constant 0 : index
    %207 = vector.load %arg30[%c0_296, %c0_297] : memref<192x16xf32, #tpu.memory_space<vmem>>, vector<192x16xf32>
    %cst_298 = arith.constant dense<0.000000e+00> : vector<4x16xf32>
    %208 = tpu.matmul %206, %207, %cst_298 {dimension_numbers = #tpu.dot_dimension_numbers<[1], [0], [0], [1], [0, 0, 1, 1], [], []>} : vector<4x192xf32>, vector<192x16xf32>, vector<4x16xf32> -> vector<4x16xf32>
    %c0_299 = arith.constant 0 : index
    %c0_300 = arith.constant 0 : index
    %209 = vector.load %arg52[%c0_299, %c0_300] : memref<64x192xf32, #tpu.memory_space<vmem>>, vector<4x128xf32>
    %c0_301 = arith.constant 0 : index
    %c0_302 = arith.constant 0 : index
    %210 = vector.load %arg31[%c0_301, %c0_302] : memref<128x16xf32, #tpu.memory_space<vmem>>, vector<128x16xf32>
    %cst_303 = arith.constant dense<0.000000e+00> : vector<4x16xf32>
    %211 = tpu.matmul %209, %210, %cst_303 {dimension_numbers = #tpu.dot_dimension_numbers<[1], [0], [0], [1], [0, 0, 1, 1], [], []>} : vector<4x128xf32>, vector<128x16xf32>, vector<4x16xf32> -> vector<4x16xf32>
    %c0_304 = arith.constant 0 : index
    %c0_305 = arith.constant 0 : index
    %212 = vector.load %arg33[%c0_304, %c0_305] : memref<8x4xf32, #tpu.memory_space<vmem>>, vector<8x4xf32>
    %cst_306 = arith.constant dense<0.000000e+00> : vector<8x16xf32>
    %213 = tpu.matmul %212, %208, %cst_306 {dimension_numbers = #tpu.dot_dimension_numbers<[1], [0], [0], [1], [0, 0, 1, 1], [], []>} : vector<8x4xf32>, vector<4x16xf32>, vector<8x16xf32> -> vector<8x16xf32>
    %c0_307 = arith.constant 0 : index
    %c0_308 = arith.constant 0 : index
    %214 = vector.load %arg34[%c0_307, %c0_308] : memref<8x4xf32, #tpu.memory_space<vmem>>, vector<8x4xf32>
    %cst_309 = arith.constant dense<0.000000e+00> : vector<8x16xf32>
    %215 = tpu.matmul %214, %211, %cst_309 {dimension_numbers = #tpu.dot_dimension_numbers<[1], [0], [0], [1], [0, 0, 1, 1], [], []>} : vector<8x4xf32>, vector<4x16xf32>, vector<8x16xf32> -> vector<8x16xf32>
    %216 = arith.addf %213, %215 : vector<8x16xf32>
    %c0_310 = arith.constant 0 : index
    %c0_311 = arith.constant 0 : index
    %217 = vector.load %arg32[%c0_310, %c0_311] : memref<1x16xf32, #tpu.memory_space<vmem>>, vector<1x16xf32>
    %218 = vector.broadcast %217 : vector<1x16xf32> to vector<8x16xf32>
    %219 = arith.addf %216, %218 : vector<8x16xf32>
    %cst_312 = arith.constant 0.000000e+00 : f32
    %220 = vector.broadcast %cst_312 : f32 to vector<8x16xf32>
    %221 = arith.maximumf %219, %220 : vector<8x16xf32>
    %c2_313 = arith.constant 2 : index
    %c0_314 = arith.constant 0 : index
    %222 = vector.load %arg51[%c2_313, %c0_314] : memref<68x64xf32, #tpu.memory_space<vmem>>, vector<8x16xf32>
    tpu.vector_store %arg51[%c2_313, %c0_314], %72 {strides = array<i32>} : memref<68x64xf32, #tpu.memory_space<vmem>>, vector<8x16xf32>,
    %c2_315 = arith.constant 2 : index
    %c16_316 = arith.constant 16 : index
    %223 = vector.load %arg51[%c2_315, %c16_316] : memref<68x64xf32, #tpu.memory_space<vmem>>, vector<8x16xf32>
    tpu.vector_store %arg51[%c2_315, %c16_316], %221 {strides = array<i32>} : memref<68x64xf32, #tpu.memory_space<vmem>>, vector<8x16xf32>,
    %cst_317 = arith.constant 0.000000e+00 : f32
    %224 = vector.broadcast %cst_317 : f32 to vector<2x32xf32>
    %c10_318 = arith.constant 10 : index
    %c0_319 = arith.constant 0 : index
    %225 = vector.load %arg51[%c10_318, %c0_319] : memref<68x64xf32, #tpu.memory_space<vmem>>, vector<2x32xf32>
    tpu.vector_store %arg51[%c10_318, %c0_319], %224 {strides = array<i32>} : memref<68x64xf32, #tpu.memory_space<vmem>>, vector<2x32xf32>,
    %c3_320 = arith.constant 3 : index
    %c0_321 = arith.constant 0 : index
    %226 = vector.load %arg51[%c3_320, %c0_321] : memref<68x64xf32, #tpu.memory_space<vmem>>, vector<8x32xf32>
    %c0_322 = arith.constant 0 : index
    %c0_323 = arith.constant 0 : index
    %227 = vector.load %arg52[%c0_322, %c0_323] : memref<64x192xf32, #tpu.memory_space<vmem>>, vector<8x32xf32>
    tpu.vector_store %arg52[%c0_322, %c0_323], %226 {strides = array<i32>} : memref<64x192xf32, #tpu.memory_space<vmem>>, vector<8x32xf32>,
    %c2_324 = arith.constant 2 : index
    %c0_325 = arith.constant 0 : index
    %228 = vector.load %arg51[%c2_324, %c0_325] : memref<68x64xf32, #tpu.memory_space<vmem>>, vector<8x32xf32>
    %c0_326 = arith.constant 0 : index
    %c32_327 = arith.constant 32 : index
    %229 = vector.load %arg52[%c0_326, %c32_327] : memref<64x192xf32, #tpu.memory_space<vmem>>, vector<8x32xf32>
    tpu.vector_store %arg52[%c0_326, %c32_327], %228 {strides = array<i32>} : memref<64x192xf32, #tpu.memory_space<vmem>>, vector<8x32xf32>,
    %c1_328 = arith.constant 1 : index
    %c0_329 = arith.constant 0 : index
    %230 = vector.load %arg51[%c1_328, %c0_329] : memref<68x64xf32, #tpu.memory_space<vmem>>, vector<8x32xf32>
    %c0_330 = arith.constant 0 : index
    %c64_331 = arith.constant 64 : index
    %231 = vector.load %arg52[%c0_330, %c64_331] : memref<64x192xf32, #tpu.memory_space<vmem>>, vector<8x32xf32>
    tpu.vector_store %arg52[%c0_330, %c64_331], %230 {strides = array<i32>} : memref<64x192xf32, #tpu.memory_space<vmem>>, vector<8x32xf32>,
    %c0_332 = arith.constant 0 : index
    %c0_333 = arith.constant 0 : index
    %232 = vector.load %arg52[%c0_332, %c0_333] : memref<64x192xf32, #tpu.memory_space<vmem>>, vector<8x96xf32>
    %c0_334 = arith.constant 0 : index
    %c0_335 = arith.constant 0 : index
    %233 = vector.load %arg35[%c0_334, %c0_335] : memref<96x16xf32, #tpu.memory_space<vmem>>, vector<96x16xf32>
    %cst_336 = arith.constant dense<0.000000e+00> : vector<8x16xf32>
    %234 = tpu.matmul %232, %233, %cst_336 {dimension_numbers = #tpu.dot_dimension_numbers<[1], [0], [0], [1], [0, 0, 1, 1], [], []>} : vector<8x96xf32>, vector<96x16xf32>, vector<8x16xf32> -> vector<8x16xf32>
    %c0_337 = arith.constant 0 : index
    %c0_338 = arith.constant 0 : index
    %235 = vector.load %arg52[%c0_337, %c0_338] : memref<64x192xf32, #tpu.memory_space<vmem>>, vector<8x64xf32>
    %c0_339 = arith.constant 0 : index
    %c0_340 = arith.constant 0 : index
    %236 = vector.load %arg36[%c0_339, %c0_340] : memref<64x16xf32, #tpu.memory_space<vmem>>, vector<64x16xf32>
    %cst_341 = arith.constant dense<0.000000e+00> : vector<8x16xf32>
    %237 = tpu.matmul %235, %236, %cst_341 {dimension_numbers = #tpu.dot_dimension_numbers<[1], [0], [0], [1], [0, 0, 1, 1], [], []>} : vector<8x64xf32>, vector<64x16xf32>, vector<8x16xf32> -> vector<8x16xf32>
    %c0_342 = arith.constant 0 : index
    %c0_343 = arith.constant 0 : index
    %238 = vector.load %arg38[%c0_342, %c0_343] : memref<16x8xf32, #tpu.memory_space<vmem>>, vector<16x8xf32>
    %cst_344 = arith.constant dense<0.000000e+00> : vector<16x16xf32>
    %239 = tpu.matmul %238, %234, %cst_344 {dimension_numbers = #tpu.dot_dimension_numbers<[1], [0], [0], [1], [0, 0, 1, 1], [], []>} : vector<16x8xf32>, vector<8x16xf32>, vector<16x16xf32> -> vector<16x16xf32>
    %c0_345 = arith.constant 0 : index
    %c0_346 = arith.constant 0 : index
    %240 = vector.load %arg39[%c0_345, %c0_346] : memref<16x8xf32, #tpu.memory_space<vmem>>, vector<16x8xf32>
    %cst_347 = arith.constant dense<0.000000e+00> : vector<16x16xf32>
    %241 = tpu.matmul %240, %237, %cst_347 {dimension_numbers = #tpu.dot_dimension_numbers<[1], [0], [0], [1], [0, 0, 1, 1], [], []>} : vector<16x8xf32>, vector<8x16xf32>, vector<16x16xf32> -> vector<16x16xf32>
    %242 = arith.addf %239, %241 : vector<16x16xf32>
    %c0_348 = arith.constant 0 : index
    %c0_349 = arith.constant 0 : index
    %243 = vector.load %arg37[%c0_348, %c0_349] : memref<1x16xf32, #tpu.memory_space<vmem>>, vector<1x16xf32>
    %244 = vector.broadcast %243 : vector<1x16xf32> to vector<16x16xf32>
    %245 = arith.addf %242, %244 : vector<16x16xf32>
    %cst_350 = arith.constant 0.000000e+00 : f32
    %246 = vector.broadcast %cst_350 : f32 to vector<16x16xf32>
    %247 = arith.maximumf %245, %246 : vector<16x16xf32>
    %c2_351 = arith.constant 2 : index
    %c0_352 = arith.constant 0 : index
    %248 = vector.load %arg51[%c2_351, %c0_352] : memref<68x64xf32, #tpu.memory_space<vmem>>, vector<16x16xf32>
    tpu.vector_store %arg51[%c2_351, %c0_352], %49 {strides = array<i32>} : memref<68x64xf32, #tpu.memory_space<vmem>>, vector<16x16xf32>,
    %c2_353 = arith.constant 2 : index
    %c16_354 = arith.constant 16 : index
    %249 = vector.load %arg51[%c2_353, %c16_354] : memref<68x64xf32, #tpu.memory_space<vmem>>, vector<16x16xf32>
    tpu.vector_store %arg51[%c2_353, %c16_354], %247 {strides = array<i32>} : memref<68x64xf32, #tpu.memory_space<vmem>>, vector<16x16xf32>,
    %cst_355 = arith.constant 0.000000e+00 : f32
    %250 = vector.broadcast %cst_355 : f32 to vector<2x32xf32>
    %c18_356 = arith.constant 18 : index
    %c0_357 = arith.constant 0 : index
    %251 = vector.load %arg51[%c18_356, %c0_357] : memref<68x64xf32, #tpu.memory_space<vmem>>, vector<2x32xf32>
    tpu.vector_store %arg51[%c18_356, %c0_357], %250 {strides = array<i32>} : memref<68x64xf32, #tpu.memory_space<vmem>>, vector<2x32xf32>,
    %c3_358 = arith.constant 3 : index
    %c0_359 = arith.constant 0 : index
    %252 = vector.load %arg51[%c3_358, %c0_359] : memref<68x64xf32, #tpu.memory_space<vmem>>, vector<16x32xf32>
    %c0_360 = arith.constant 0 : index
    %c0_361 = arith.constant 0 : index
    %253 = vector.load %arg52[%c0_360, %c0_361] : memref<64x192xf32, #tpu.memory_space<vmem>>, vector<16x32xf32>
    tpu.vector_store %arg52[%c0_360, %c0_361], %252 {strides = array<i32>} : memref<64x192xf32, #tpu.memory_space<vmem>>, vector<16x32xf32>,
    %c2_362 = arith.constant 2 : index
    %c0_363 = arith.constant 0 : index
    %254 = vector.load %arg51[%c2_362, %c0_363] : memref<68x64xf32, #tpu.memory_space<vmem>>, vector<16x32xf32>
    %c0_364 = arith.constant 0 : index
    %c32_365 = arith.constant 32 : index
    %255 = vector.load %arg52[%c0_364, %c32_365] : memref<64x192xf32, #tpu.memory_space<vmem>>, vector<16x32xf32>
    tpu.vector_store %arg52[%c0_364, %c32_365], %254 {strides = array<i32>} : memref<64x192xf32, #tpu.memory_space<vmem>>, vector<16x32xf32>,
    %c1_366 = arith.constant 1 : index
    %c0_367 = arith.constant 0 : index
    %256 = vector.load %arg51[%c1_366, %c0_367] : memref<68x64xf32, #tpu.memory_space<vmem>>, vector<16x32xf32>
    %c0_368 = arith.constant 0 : index
    %c64_369 = arith.constant 64 : index
    %257 = vector.load %arg52[%c0_368, %c64_369] : memref<64x192xf32, #tpu.memory_space<vmem>>, vector<16x32xf32>
    tpu.vector_store %arg52[%c0_368, %c64_369], %256 {strides = array<i32>} : memref<64x192xf32, #tpu.memory_space<vmem>>, vector<16x32xf32>,
    %c0_370 = arith.constant 0 : index
    %c0_371 = arith.constant 0 : index
    %258 = vector.load %arg52[%c0_370, %c0_371] : memref<64x192xf32, #tpu.memory_space<vmem>>, vector<16x96xf32>
    %c0_372 = arith.constant 0 : index
    %c0_373 = arith.constant 0 : index
    %259 = vector.load %arg40[%c0_372, %c0_373] : memref<96x8xf32, #tpu.memory_space<vmem>>, vector<96x8xf32>
    %cst_374 = arith.constant dense<0.000000e+00> : vector<16x8xf32>
    %260 = tpu.matmul %258, %259, %cst_374 {dimension_numbers = #tpu.dot_dimension_numbers<[1], [0], [0], [1], [0, 0, 1, 1], [], []>} : vector<16x96xf32>, vector<96x8xf32>, vector<16x8xf32> -> vector<16x8xf32>
    %c0_375 = arith.constant 0 : index
    %c0_376 = arith.constant 0 : index
    %261 = vector.load %arg52[%c0_375, %c0_376] : memref<64x192xf32, #tpu.memory_space<vmem>>, vector<16x64xf32>
    %c0_377 = arith.constant 0 : index
    %c0_378 = arith.constant 0 : index
    %262 = vector.load %arg41[%c0_377, %c0_378] : memref<64x8xf32, #tpu.memory_space<vmem>>, vector<64x8xf32>
    %cst_379 = arith.constant dense<0.000000e+00> : vector<16x8xf32>
    %263 = tpu.matmul %261, %262, %cst_379 {dimension_numbers = #tpu.dot_dimension_numbers<[1], [0], [0], [1], [0, 0, 1, 1], [], []>} : vector<16x64xf32>, vector<64x8xf32>, vector<16x8xf32> -> vector<16x8xf32>
    %c0_380 = arith.constant 0 : index
    %c0_381 = arith.constant 0 : index
    %264 = vector.load %arg43[%c0_380, %c0_381] : memref<32x16xf32, #tpu.memory_space<vmem>>, vector<32x16xf32>
    %cst_382 = arith.constant dense<0.000000e+00> : vector<32x8xf32>
    %265 = tpu.matmul %264, %260, %cst_382 {dimension_numbers = #tpu.dot_dimension_numbers<[1], [0], [0], [1], [0, 0, 1, 1], [], []>} : vector<32x16xf32>, vector<16x8xf32>, vector<32x8xf32> -> vector<32x8xf32>
    %c0_383 = arith.constant 0 : index
    %c0_384 = arith.constant 0 : index
    %266 = vector.load %arg44[%c0_383, %c0_384] : memref<32x16xf32, #tpu.memory_space<vmem>>, vector<32x16xf32>
    %cst_385 = arith.constant dense<0.000000e+00> : vector<32x8xf32>
    %267 = tpu.matmul %266, %263, %cst_385 {dimension_numbers = #tpu.dot_dimension_numbers<[1], [0], [0], [1], [0, 0, 1, 1], [], []>} : vector<32x16xf32>, vector<16x8xf32>, vector<32x8xf32> -> vector<32x8xf32>
    %268 = arith.addf %265, %267 : vector<32x8xf32>
    %c0_386 = arith.constant 0 : index
    %c0_387 = arith.constant 0 : index
    %269 = vector.load %arg42[%c0_386, %c0_387] : memref<1x8xf32, #tpu.memory_space<vmem>>, vector<1x8xf32>
    %270 = vector.broadcast %269 : vector<1x8xf32> to vector<32x8xf32>
    %271 = arith.addf %268, %270 : vector<32x8xf32>
    %cst_388 = arith.constant 0.000000e+00 : f32
    %272 = vector.broadcast %cst_388 : f32 to vector<32x8xf32>
    %273 = arith.maximumf %271, %272 : vector<32x8xf32>
    %c2_389 = arith.constant 2 : index
    %c0_390 = arith.constant 0 : index
    %274 = vector.load %arg51[%c2_389, %c0_390] : memref<68x64xf32, #tpu.memory_space<vmem>>, vector<32x8xf32>
    tpu.vector_store %arg51[%c2_389, %c0_390], %26 {strides = array<i32>} : memref<68x64xf32, #tpu.memory_space<vmem>>, vector<32x8xf32>,
    %c2_391 = arith.constant 2 : index
    %c8_392 = arith.constant 8 : index
    %275 = vector.load %arg51[%c2_391, %c8_392] : memref<68x64xf32, #tpu.memory_space<vmem>>, vector<32x8xf32>
    tpu.vector_store %arg51[%c2_391, %c8_392], %273 {strides = array<i32>} : memref<68x64xf32, #tpu.memory_space<vmem>>, vector<32x8xf32>,
    %cst_393 = arith.constant 0.000000e+00 : f32
    %276 = vector.broadcast %cst_393 : f32 to vector<2x16xf32>
    %c34_394 = arith.constant 34 : index
    %c0_395 = arith.constant 0 : index
    %277 = vector.load %arg51[%c34_394, %c0_395] : memref<68x64xf32, #tpu.memory_space<vmem>>, vector<2x16xf32>
    tpu.vector_store %arg51[%c34_394, %c0_395], %276 {strides = array<i32>} : memref<68x64xf32, #tpu.memory_space<vmem>>, vector<2x16xf32>,
    %c3_396 = arith.constant 3 : index
    %c0_397 = arith.constant 0 : index
    %278 = vector.load %arg51[%c3_396, %c0_397] : memref<68x64xf32, #tpu.memory_space<vmem>>, vector<32x16xf32>
    %c0_398 = arith.constant 0 : index
    %c0_399 = arith.constant 0 : index
    %279 = vector.load %arg52[%c0_398, %c0_399] : memref<64x192xf32, #tpu.memory_space<vmem>>, vector<32x16xf32>
    tpu.vector_store %arg52[%c0_398, %c0_399], %278 {strides = array<i32>} : memref<64x192xf32, #tpu.memory_space<vmem>>, vector<32x16xf32>,
    %c2_400 = arith.constant 2 : index
    %c0_401 = arith.constant 0 : index
    %280 = vector.load %arg51[%c2_400, %c0_401] : memref<68x64xf32, #tpu.memory_space<vmem>>, vector<32x16xf32>
    %c0_402 = arith.constant 0 : index
    %c16_403 = arith.constant 16 : index
    %281 = vector.load %arg52[%c0_402, %c16_403] : memref<64x192xf32, #tpu.memory_space<vmem>>, vector<32x16xf32>
    tpu.vector_store %arg52[%c0_402, %c16_403], %280 {strides = array<i32>} : memref<64x192xf32, #tpu.memory_space<vmem>>, vector<32x16xf32>,
    %c1_404 = arith.constant 1 : index
    %c0_405 = arith.constant 0 : index
    %282 = vector.load %arg51[%c1_404, %c0_405] : memref<68x64xf32, #tpu.memory_space<vmem>>, vector<32x16xf32>
    %c0_406 = arith.constant 0 : index
    %c32_407 = arith.constant 32 : index
    %283 = vector.load %arg52[%c0_406, %c32_407] : memref<64x192xf32, #tpu.memory_space<vmem>>, vector<32x16xf32>
    tpu.vector_store %arg52[%c0_406, %c32_407], %282 {strides = array<i32>} : memref<64x192xf32, #tpu.memory_space<vmem>>, vector<32x16xf32>,
    %c0_408 = arith.constant 0 : index
    %c0_409 = arith.constant 0 : index
    %284 = vector.load %arg52[%c0_408, %c0_409] : memref<64x192xf32, #tpu.memory_space<vmem>>, vector<32x48xf32>
    %c0_410 = arith.constant 0 : index
    %c0_411 = arith.constant 0 : index
    %285 = vector.load %arg45[%c0_410, %c0_411] : memref<48x8xf32, #tpu.memory_space<vmem>>, vector<48x8xf32>
    %cst_412 = arith.constant dense<0.000000e+00> : vector<32x8xf32>
    %286 = tpu.matmul %284, %285, %cst_412 {dimension_numbers = #tpu.dot_dimension_numbers<[1], [0], [0], [1], [0, 0, 1, 1], [], []>} : vector<32x48xf32>, vector<48x8xf32>, vector<32x8xf32> -> vector<32x8xf32>
    %c0_413 = arith.constant 0 : index
    %c0_414 = arith.constant 0 : index
    %287 = vector.load %arg52[%c0_413, %c0_414] : memref<64x192xf32, #tpu.memory_space<vmem>>, vector<32x32xf32>
    %c0_415 = arith.constant 0 : index
    %c0_416 = arith.constant 0 : index
    %288 = vector.load %arg46[%c0_415, %c0_416] : memref<32x8xf32, #tpu.memory_space<vmem>>, vector<32x8xf32>
    %cst_417 = arith.constant dense<0.000000e+00> : vector<32x8xf32>
    %289 = tpu.matmul %287, %288, %cst_417 {dimension_numbers = #tpu.dot_dimension_numbers<[1], [0], [0], [1], [0, 0, 1, 1], [], []>} : vector<32x32xf32>, vector<32x8xf32>, vector<32x8xf32> -> vector<32x8xf32>
    %c0_418 = arith.constant 0 : index
    %c0_419 = arith.constant 0 : index
    %290 = vector.load %arg48[%c0_418, %c0_419] : memref<64x32xf32, #tpu.memory_space<vmem>>, vector<64x32xf32>
    %cst_420 = arith.constant dense<0.000000e+00> : vector<64x8xf32>
    %291 = tpu.matmul %290, %286, %cst_420 {dimension_numbers = #tpu.dot_dimension_numbers<[1], [0], [0], [1], [0, 0, 1, 1], [], []>} : vector<64x32xf32>, vector<32x8xf32>, vector<64x8xf32> -> vector<64x8xf32>
    %c0_421 = arith.constant 0 : index
    %c0_422 = arith.constant 0 : index
    %292 = vector.load %arg49[%c0_421, %c0_422] : memref<64x32xf32, #tpu.memory_space<vmem>>, vector<64x32xf32>
    %cst_423 = arith.constant dense<0.000000e+00> : vector<64x8xf32>
    %293 = tpu.matmul %292, %289, %cst_423 {dimension_numbers = #tpu.dot_dimension_numbers<[1], [0], [0], [1], [0, 0, 1, 1], [], []>} : vector<64x32xf32>, vector<32x8xf32>, vector<64x8xf32> -> vector<64x8xf32>
    %294 = arith.addf %291, %293 : vector<64x8xf32>
    %c0_424 = arith.constant 0 : index
    %c0_425 = arith.constant 0 : index
    %295 = vector.load %arg47[%c0_424, %c0_425] : memref<1x8xf32, #tpu.memory_space<vmem>>, vector<1x8xf32>
    %296 = vector.broadcast %295 : vector<1x8xf32> to vector<64x8xf32>
    %297 = arith.addf %294, %296 : vector<64x8xf32>
    %cst_426 = arith.constant 0.000000e+00 : f32
    %298 = vector.broadcast %cst_426 : f32 to vector<64x8xf32>
    %299 = arith.maximumf %297, %298 : vector<64x8xf32>
    %c0_427 = arith.constant 0 : index
    %c0_428 = arith.constant 0 : index
    %c0_429 = arith.constant 0 : index
    %300 = vector.load %arg1[%c0_427, %c0_428, %c0_429] : memref<1x64x8xf32, #tpu.memory_space<vmem>>, vector<1x64x8xf32>
    %c0_430 = arith.constant 0 : index
    %c0_431 = arith.constant 0 : index
    %c0_432 = arith.constant 0 : index
    %301 = vector.load %arg50[%c0_430, %c0_431, %c0_432] : memref<1x64x16xf32, #tpu.memory_space<vmem>>, vector<1x64x8xf32>
    tpu.vector_store %arg50[%c0_430, %c0_431, %c0_432], %300 {strides = array<i32>} : memref<1x64x16xf32, #tpu.memory_space<vmem>>, vector<1x64x8xf32>,
    %302 = vector.shape_cast %299 : vector<64x8xf32> to vector<1x64x8xf32>
    %c0_433 = arith.constant 0 : index
    %c0_434 = arith.constant 0 : index
    %c8_435 = arith.constant 8 : index
    %303 = vector.load %arg50[%c0_433, %c0_434, %c8_435] : memref<1x64x16xf32, #tpu.memory_space<vmem>>, vector<1x64x8xf32>
    tpu.vector_store %arg50[%c0_433, %c0_434, %c8_435], %302 {strides = array<i32>} : memref<1x64x16xf32, #tpu.memory_space<vmem>>, vector<1x64x8xf32>,
    return
  }
  func.func @transform_0(%arg0: i32) -> (i32, i32, i32) {
    %c0_i32 = arith.constant 0 : i32
    %c0_i32_0 = arith.constant 0 : i32
    %c0_i32_1 = arith.constant 0 : i32
    return %arg0, %c0_i32, %c0_i32_0 : i32, i32, i32
  }
  func.func @transform_1(%arg0: i32) -> (i32, i32) {
    %c0_i32 = arith.constant 0 : i32
    %c0_i32_0 = arith.constant 0 : i32
    %c0_i32_1 = arith.constant 0 : i32
    return %c0_i32, %c0_i32_0 : i32, i32
  }
  func.func @transform_2(%arg0: i32) -> (i32, i32) {
    %c0_i32 = arith.constant 0 : i32
    %c0_i32_0 = arith.constant 0 : i32
    %c0_i32_1 = arith.constant 0 : i32
    return %c0_i32, %c0_i32_0 : i32, i32
  }
  func.func @transform_3(%arg0: i32) -> (i32, i32) {
    %c0_i32 = arith.constant 0 : i32
    %c0_i32_0 = arith.constant 0 : i32
    %c0_i32_1 = arith.constant 0 : i32
    return %c0_i32, %c0_i32_0 : i32, i32
  }
  func.func @transform_4(%arg0: i32) -> (i32, i32) {
    %c0_i32 = arith.constant 0 : i32
    %c0_i32_0 = arith.constant 0 : i32
    %c0_i32_1 = arith.constant 0 : i32
    return %c0_i32, %c0_i32_0 : i32, i32
  }
  func.func @transform_5(%arg0: i32) -> (i32, i32) {
    %c0_i32 = arith.constant 0 : i32
    %c0_i32_0 = arith.constant 0 : i32
    %c0_i32_1 = arith.constant 0 : i32
    return %c0_i32, %c0_i32_0 : i32, i32
  }
  func.func @transform_6(%arg0: i32) -> (i32, i32) {
    %c0_i32 = arith.constant 0 : i32
    %c0_i32_0 = arith.constant 0 : i32
    %c0_i32_1 = arith.constant 0 : i32
    return %c0_i32, %c0_i32_0 : i32, i32
  }
  func.func @transform_7(%arg0: i32) -> (i32, i32) {
    %c0_i32 = arith.constant 0 : i32
    %c0_i32_0 = arith.constant 0 : i32
    %c0_i32_1 = arith.constant 0 : i32
    return %c0_i32, %c0_i32_0 : i32, i32
  }
  func.func @transform_8(%arg0: i32) -> (i32, i32) {
    %c0_i32 = arith.constant 0 : i32
    %c0_i32_0 = arith.constant 0 : i32
    %c0_i32_1 = arith.constant 0 : i32
    return %c0_i32, %c0_i32_0 : i32, i32
  }
  func.func @transform_9(%arg0: i32) -> (i32, i32) {
    %c0_i32 = arith.constant 0 : i32
    %c0_i32_0 = arith.constant 0 : i32
    %c0_i32_1 = arith.constant 0 : i32
    return %c0_i32, %c0_i32_0 : i32, i32
  }
  func.func @transform_10(%arg0: i32) -> (i32, i32) {
    %c0_i32 = arith.constant 0 : i32
    %c0_i32_0 = arith.constant 0 : i32
    %c0_i32_1 = arith.constant 0 : i32
    return %c0_i32, %c0_i32_0 : i32, i32
  }
  func.func @transform_11(%arg0: i32) -> (i32, i32) {
    %c0_i32 = arith.constant 0 : i32
    %c0_i32_0 = arith.constant 0 : i32
    %c0_i32_1 = arith.constant 0 : i32
    return %c0_i32, %c0_i32_0 : i32, i32
  }
  func.func @transform_12(%arg0: i32) -> (i32, i32) {
    %c0_i32 = arith.constant 0 : i32
    %c0_i32_0 = arith.constant 0 : i32
    %c0_i32_1 = arith.constant 0 : i32
    return %c0_i32, %c0_i32_0 : i32, i32
  }
  func.func @transform_13(%arg0: i32) -> (i32, i32) {
    %c0_i32 = arith.constant 0 : i32
    %c0_i32_0 = arith.constant 0 : i32
    %c0_i32_1 = arith.constant 0 : i32
    return %c0_i32, %c0_i32_0 : i32, i32
  }
  func.func @transform_14(%arg0: i32) -> (i32, i32) {
    %c0_i32 = arith.constant 0 : i32
    %c0_i32_0 = arith.constant 0 : i32
    %c0_i32_1 = arith.constant 0 : i32
    return %c0_i32, %c0_i32_0 : i32, i32
  }
  func.func @transform_15(%arg0: i32) -> (i32, i32) {
    %c0_i32 = arith.constant 0 : i32
    %c0_i32_0 = arith.constant 0 : i32
    %c0_i32_1 = arith.constant 0 : i32
    return %c0_i32, %c0_i32_0 : i32, i32
  }
  func.func @transform_16(%arg0: i32) -> (i32, i32) {
    %c0_i32 = arith.constant 0 : i32
    %c0_i32_0 = arith.constant 0 : i32
    %c0_i32_1 = arith.constant 0 : i32
    return %c0_i32, %c0_i32_0 : i32, i32
  }
  func.func @transform_17(%arg0: i32) -> (i32, i32) {
    %c0_i32 = arith.constant 0 : i32
    %c0_i32_0 = arith.constant 0 : i32
    %c0_i32_1 = arith.constant 0 : i32
    return %c0_i32, %c0_i32_0 : i32, i32
  }
  func.func @transform_18(%arg0: i32) -> (i32, i32) {
    %c0_i32 = arith.constant 0 : i32
    %c0_i32_0 = arith.constant 0 : i32
    %c0_i32_1 = arith.constant 0 : i32
    return %c0_i32, %c0_i32_0 : i32, i32
  }
  func.func @transform_19(%arg0: i32) -> (i32, i32) {
    %c0_i32 = arith.constant 0 : i32
    %c0_i32_0 = arith.constant 0 : i32
    %c0_i32_1 = arith.constant 0 : i32
    return %c0_i32, %c0_i32_0 : i32, i32
  }
  func.func @transform_20(%arg0: i32) -> (i32, i32) {
    %c0_i32 = arith.constant 0 : i32
    %c0_i32_0 = arith.constant 0 : i32
    %c0_i32_1 = arith.constant 0 : i32
    return %c0_i32, %c0_i32_0 : i32, i32
  }
  func.func @transform_21(%arg0: i32) -> (i32, i32) {
    %c0_i32 = arith.constant 0 : i32
    %c0_i32_0 = arith.constant 0 : i32
    %c0_i32_1 = arith.constant 0 : i32
    return %c0_i32, %c0_i32_0 : i32, i32
  }
  func.func @transform_22(%arg0: i32) -> (i32, i32) {
    %c0_i32 = arith.constant 0 : i32
    %c0_i32_0 = arith.constant 0 : i32
    %c0_i32_1 = arith.constant 0 : i32
    return %c0_i32, %c0_i32_0 : i32, i32
  }
  func.func @transform_23(%arg0: i32) -> (i32, i32) {
    %c0_i32 = arith.constant 0 : i32
    %c0_i32_0 = arith.constant 0 : i32
    %c0_i32_1 = arith.constant 0 : i32
    return %c0_i32, %c0_i32_0 : i32, i32
  }
  func.func @transform_24(%arg0: i32) -> (i32, i32) {
    %c0_i32 = arith.constant 0 : i32
    %c0_i32_0 = arith.constant 0 : i32
    %c0_i32_1 = arith.constant 0 : i32
    return %c0_i32, %c0_i32_0 : i32, i32
  }
  func.func @transform_25(%arg0: i32) -> (i32, i32) {
    %c0_i32 = arith.constant 0 : i32
    %c0_i32_0 = arith.constant 0 : i32
    %c0_i32_1 = arith.constant 0 : i32
    return %c0_i32, %c0_i32_0 : i32, i32
  }
  func.func @transform_26(%arg0: i32) -> (i32, i32) {
    %c0_i32 = arith.constant 0 : i32
    %c0_i32_0 = arith.constant 0 : i32
    %c0_i32_1 = arith.constant 0 : i32
    return %c0_i32, %c0_i32_0 : i32, i32
  }
  func.func @transform_27(%arg0: i32) -> (i32, i32) {
    %c0_i32 = arith.constant 0 : i32
    %c0_i32_0 = arith.constant 0 : i32
    %c0_i32_1 = arith.constant 0 : i32
    return %c0_i32, %c0_i32_0 : i32, i32
  }
  func.func @transform_28(%arg0: i32) -> (i32, i32) {
    %c0_i32 = arith.constant 0 : i32
    %c0_i32_0 = arith.constant 0 : i32
    %c0_i32_1 = arith.constant 0 : i32
    return %c0_i32, %c0_i32_0 : i32, i32
  }
  func.func @transform_29(%arg0: i32) -> (i32, i32) {
    %c0_i32 = arith.constant 0 : i32
    %c0_i32_0 = arith.constant 0 : i32
    %c0_i32_1 = arith.constant 0 : i32
    return %c0_i32, %c0_i32_0 : i32, i32
  }
  func.func @transform_30(%arg0: i32) -> (i32, i32) {
    %c0_i32 = arith.constant 0 : i32
    %c0_i32_0 = arith.constant 0 : i32
    %c0_i32_1 = arith.constant 0 : i32
    return %c0_i32, %c0_i32_0 : i32, i32
  }
  func.func @transform_31(%arg0: i32) -> (i32, i32) {
    %c0_i32 = arith.constant 0 : i32
    %c0_i32_0 = arith.constant 0 : i32
    %c0_i32_1 = arith.constant 0 : i32
    return %c0_i32, %c0_i32_0 : i32, i32
  }
  func.func @transform_32(%arg0: i32) -> (i32, i32) {
    %c0_i32 = arith.constant 0 : i32
    %c0_i32_0 = arith.constant 0 : i32
    %c0_i32_1 = arith.constant 0 : i32
    return %c0_i32, %c0_i32_0 : i32, i32
  }
  func.func @transform_33(%arg0: i32) -> (i32, i32) {
    %c0_i32 = arith.constant 0 : i32
    %c0_i32_0 = arith.constant 0 : i32
    %c0_i32_1 = arith.constant 0 : i32
    return %c0_i32, %c0_i32_0 : i32, i32
  }
  func.func @transform_34(%arg0: i32) -> (i32, i32) {
    %c0_i32 = arith.constant 0 : i32
    %c0_i32_0 = arith.constant 0 : i32
    %c0_i32_1 = arith.constant 0 : i32
    return %c0_i32, %c0_i32_0 : i32, i32
  }
  func.func @transform_35(%arg0: i32) -> (i32, i32) {
    %c0_i32 = arith.constant 0 : i32
    %c0_i32_0 = arith.constant 0 : i32
    %c0_i32_1 = arith.constant 0 : i32
    return %c0_i32, %c0_i32_0 : i32, i32
  }
  func.func @transform_36(%arg0: i32) -> (i32, i32) {
    %c0_i32 = arith.constant 0 : i32
    %c0_i32_0 = arith.constant 0 : i32
    %c0_i32_1 = arith.constant 0 : i32
    return %c0_i32, %c0_i32_0 : i32, i32
  }
  func.func @transform_37(%arg0: i32) -> (i32, i32) {
    %c0_i32 = arith.constant 0 : i32
    %c0_i32_0 = arith.constant 0 : i32
    %c0_i32_1 = arith.constant 0 : i32
    return %c0_i32, %c0_i32_0 : i32, i32
  }
  func.func @transform_38(%arg0: i32) -> (i32, i32) {
    %c0_i32 = arith.constant 0 : i32
    %c0_i32_0 = arith.constant 0 : i32
    %c0_i32_1 = arith.constant 0 : i32
    return %c0_i32, %c0_i32_0 : i32, i32
  }
  func.func @transform_39(%arg0: i32) -> (i32, i32) {
    %c0_i32 = arith.constant 0 : i32
    %c0_i32_0 = arith.constant 0 : i32
    %c0_i32_1 = arith.constant 0 : i32
    return %c0_i32, %c0_i32_0 : i32, i32
  }
  func.func @transform_40(%arg0: i32) -> (i32, i32) {
    %c0_i32 = arith.constant 0 : i32
    %c0_i32_0 = arith.constant 0 : i32
    %c0_i32_1 = arith.constant 0 : i32
    return %c0_i32, %c0_i32_0 : i32, i32
  }
  func.func @transform_41(%arg0: i32) -> (i32, i32) {
    %c0_i32 = arith.constant 0 : i32
    %c0_i32_0 = arith.constant 0 : i32
    %c0_i32_1 = arith.constant 0 : i32
    return %c0_i32, %c0_i32_0 : i32, i32
  }
  func.func @transform_42(%arg0: i32) -> (i32, i32) {
    %c0_i32 = arith.constant 0 : i32
    %c0_i32_0 = arith.constant 0 : i32
    %c0_i32_1 = arith.constant 0 : i32
    return %c0_i32, %c0_i32_0 : i32, i32
  }
  func.func @transform_43(%arg0: i32) -> (i32, i32) {
    %c0_i32 = arith.constant 0 : i32
    %c0_i32_0 = arith.constant 0 : i32
    %c0_i32_1 = arith.constant 0 : i32
    return %c0_i32, %c0_i32_0 : i32, i32
  }
  func.func @transform_44(%arg0: i32) -> (i32, i32) {
    %c0_i32 = arith.constant 0 : i32
    %c0_i32_0 = arith.constant 0 : i32
    %c0_i32_1 = arith.constant 0 : i32
    return %c0_i32, %c0_i32_0 : i32, i32
  }
  func.func @transform_45(%arg0: i32) -> (i32, i32) {
    %c0_i32 = arith.constant 0 : i32
    %c0_i32_0 = arith.constant 0 : i32
    %c0_i32_1 = arith.constant 0 : i32
    return %c0_i32, %c0_i32_0 : i32, i32
  }
  func.func @transform_46(%arg0: i32) -> (i32, i32) {
    %c0_i32 = arith.constant 0 : i32
    %c0_i32_0 = arith.constant 0 : i32
    %c0_i32_1 = arith.constant 0 : i32
    return %c0_i32, %c0_i32_0 : i32, i32
  }
  func.func @transform_47(%arg0: i32) -> (i32, i32) {
    %c0_i32 = arith.constant 0 : i32
    %c0_i32_0 = arith.constant 0 : i32
    %c0_i32_1 = arith.constant 0 : i32
    return %c0_i32, %c0_i32_0 : i32, i32
  }
  func.func @transform_48(%arg0: i32) -> (i32, i32) {
    %c0_i32 = arith.constant 0 : i32
    %c0_i32_0 = arith.constant 0 : i32
    %c0_i32_1 = arith.constant 0 : i32
    return %c0_i32, %c0_i32_0 : i32, i32
  }
  func.func @transform_49(%arg0: i32) -> (i32, i32, i32) {
    %c0_i32 = arith.constant 0 : i32
    %c0_i32_0 = arith.constant 0 : i32
    %c0_i32_1 = arith.constant 0 : i32
    return %arg0, %c0_i32, %c0_i32_0 : i32, i32, i32
  }
}

</mosaic_0001>

<bundles_post_ra>
// kernel: unet_forward.1
= control target key start
LH: loop header
LB: loop body
LE: loop exit
PB: predicated region body
PF: predicated region fallthrough
CT: control target
= control target key end

     0   :  { %s6516_s6 = smov 1   ;;  %s6517_s10 = smov 2   ;;  %s7851_s0 = inlined_call_operand.smem [shape: u32[50], index: -1, kind: input, shape index: {}] }
   0x1   :  { %s6583_s5 = sld [smem:[%s7851_s0]]   ;;  %s6518_s14 = smov 3  }
   0x2   :  { %s6588_s9 = sld [smem:[%s7851_s0 + %s6516_s6]]   ;;  %s6519_s18 = smov 4  }
   0x3   :  { %s6593_s13 = sld [smem:[%s7851_s0 + %s6517_s10]]   ;;  %s6520_s22 = smov 5  }
   0x4   :  { %s6598_s17 = sld [smem:[%s7851_s0 + %s6518_s14]]   ;;  %s6521_s26 = smov 6  }
   0x5   :  { %s6603_s21 = sld [smem:[%s7851_s0 + %s6519_s18]]   ;;  %s6522_s30 = smov 7  }
   0x6   :  { %s6608_s25 = sld [smem:[%s7851_s0 + %s6520_s22]]   ;;  %s6523_s4 = smov 8  }
   0x7   :  { %7892 = sst [smem:[#allocation4_spill]] %s6583_s5  ;;  %s6524_s10 = smov 9  }
   0x8   :  { %s6613_s29 = sld [smem:[%s7851_s0 + %s6521_s26]]   ;;  %s6525_s15 = smov 10  }
   0x9   :  { %s6618_s3 = sld [smem:[%s7851_s0 + %s6522_s30]]   ;;  %s6526_s20 = smov 11  }
   0xa   :  { %s6623_s8 = sld [smem:[%s7851_s0 + %s6523_s4]]   ;;  %s6527_s26 = smov 12  }
   0xb   :  { %s6628_s14 = sld [smem:[%s7851_s0 + %s6524_s10]]   ;;  %s6528_s1 = smov 13  }
   0xc   :  { %s6633_s19 = sld [smem:[%s7851_s0 + %s6525_s15]]   ;;  %s6529_s7 = smov 14  }
   0xd   :  { %s6638_s24 = sld [smem:[%s7851_s0 + %s6526_s20]]   ;;  %s6530_s15 = smov 15  }
   0xe   :  { %s6643_s30 = sld [smem:[%s7851_s0 + %s6527_s26]]   ;;  %s6531_s22 = smov 16  }
   0xf   :  { %7893 = sst [smem:[#allocation5_spill]] %s6618_s3  ;;  %s6532_s28 = smov 17  }
  0x10   :  { %s6648_s6 = sld [smem:[%s7851_s0 + %s6528_s1]]  }
  0x11   :  { %s6653_s12 = sld [smem:[%s7851_s0 + %s6529_s7]]   ;;  %s6533_s7 = smov 18  }
  0x12   :  { %s6658_s20 = sld [smem:[%s7851_s0 + %s6530_s15]]   ;;  %s6534_s15 = smov 19  }
  0x13   :  { %s6663_s27 = sld [smem:[%s7851_s0 + %s6531_s22]]   ;;  %s6535_s22 = smov 20  }
  0x14   :  { %s6668_s4 = sld [smem:[%s7851_s0 + %s6532_s28]]   ;;  %s6536_s28 = smov 21  }
  0x17   :  { %7894 = sst [smem:[#allocation6_spill]] %s6653_s12 }
  0x18   :  { %7895 = sst [smem:[#allocation7_spill]] %s6658_s20 }
  0x19   :  { %7896 = sst [smem:[#allocation8_spill]] %s6663_s27 }
  0x1a   :  { %7897 = sst [smem:[#allocation9_spill]] %s6668_s4 }
  0x1b   :  { %s6673_s12 = sld [smem:[%s7851_s0 + %s6533_s7]]   ;;  %s6537_s7 = smov 22  }
  0x1c   :  { %s6678_s20 = sld [smem:[%s7851_s0 + %s6534_s15]]   ;;  %s6538_s15 = smov 23  }
  0x1d   :  { %s6683_s27 = sld [smem:[%s7851_s0 + %s6535_s22]]   ;;  %s6539_s22 = smov 24  }
  0x1e   :  { %s6688_s4 = sld [smem:[%s7851_s0 + %s6536_s28]]   ;;  %s6540_s28 = smov 25  }
  0x21   :  { %7898 = sst [smem:[#allocation10_spill]] %s6673_s12 }
  0x22   :  { %7899 = sst [smem:[#allocation11_spill]] %s6678_s20 }
  0x23   :  { %7900 = sst [smem:[#allocation12_spill]] %s6683_s27 }
  0x24   :  { %7901 = sst [smem:[#allocation13_spill]] %s6688_s4 }
  0x25   :  { %s6693_s12 = sld [smem:[%s7851_s0 + %s6537_s7]]   ;;  %s6541_s7 = smov 26  }
  0x26   :  { %s6698_s20 = sld [smem:[%s7851_s0 + %s6538_s15]]   ;;  %s6542_s15 = smov 27  }
  0x27   :  { %s6703_s27 = sld [smem:[%s7851_s0 + %s6539_s22]]   ;;  %s6543_s22 = smov 28  }
  0x28   :  { %s6708_s4 = sld [smem:[%s7851_s0 + %s6540_s28]]   ;;  %s6544_s28 = smov 29  }
  0x2b   :  { %7902 = sst [smem:[#allocation14_spill]] %s6693_s12 }
  0x2c   :  { %7903 = sst [smem:[#allocation15_spill]] %s6698_s20 }
  0x2d   :  { %7904 = sst [smem:[#allocation16_spill]] %s6703_s27 }
  0x2e   :  { %7905 = sst [smem:[#allocation17_spill]] %s6708_s4 }
  0x2f   :  { %s6713_s12 = sld [smem:[%s7851_s0 + %s6541_s7]]   ;;  %s6545_s7 = smov 30  }
  0x30   :  { %s6718_s20 = sld [smem:[%s7851_s0 + %s6542_s15]]   ;;  %s6546_s15 = smov 31  }
  0x31   :  { %s6723_s27 = sld [smem:[%s7851_s0 + %s6543_s22]]   ;;  %s6547_s22 = smov 32  }
  0x32   :  { %s6728_s4 = sld [smem:[%s7851_s0 + %s6544_s28]]   ;;  %s6548_s28 = smov 33  }
  0x35   :  { %7906 = sst [smem:[#allocation18_spill]] %s6713_s12 }
  0x36   :  { %7907 = sst [smem:[#allocation19_spill]] %s6718_s20 }
  0x37   :  { %7908 = sst [smem:[#allocation20_spill]] %s6723_s27 }
  0x38   :  { %7909 = sst [smem:[#allocation21_spill]] %s6728_s4 }
  0x39   :  { %s6733_s12 = sld [smem:[%s7851_s0 + %s6545_s7]]   ;;  %s6549_s7 = smov 34  }
  0x3a   :  { %s6738_s20 = sld [smem:[%s7851_s0 + %s6546_s15]]   ;;  %s6550_s15 = smov 35  }
  0x3b   :  { %s6743_s27 = sld [smem:[%s7851_s0 + %s6547_s22]]   ;;  %s6551_s22 = smov 36  }
  0x3c   :  { %s6748_s4 = sld [smem:[%s7851_s0 + %s6548_s28]]   ;;  %s6552_s28 = smov 37  }
  0x3f   :  { %7910 = sst [smem:[#allocation22_spill]] %s6733_s12 }
  0x40   :  { %7911 = sst [smem:[#allocation23_spill]] %s6738_s20 }
  0x41   :  { %7912 = sst [smem:[#allocation24_spill]] %s6743_s27 }
  0x42   :  { %7913 = sst [smem:[#allocation25_spill]] %s6748_s4 }
  0x43   :  { %s6753_s12 = sld [smem:[%s7851_s0 + %s6549_s7]]   ;;  %s6553_s7 = smov 38  }
  0x44   :  { %s6758_s20 = sld [smem:[%s7851_s0 + %s6550_s15]]   ;;  %s6554_s15 = smov 39  }
  0x45   :  { %s6763_s27 = sld [smem:[%s7851_s0 + %s6551_s22]]   ;;  %s6555_s22 = smov 40  }
  0x46   :  { %s6768_s4 = sld [smem:[%s7851_s0 + %s6552_s28]]   ;;  %s6556_s28 = smov 41  }
  0x49   :  { %7914 = sst [smem:[#allocation26_spill]] %s6753_s12 }
  0x4a   :  { %7915 = sst [smem:[#allocation27_spill]] %s6758_s20 }
  0x4b   :  { %7916 = sst [smem:[#allocation28_spill]] %s6763_s27 }
  0x4c   :  { %7917 = sst [smem:[#allocation29_spill]] %s6768_s4 }
  0x4d   :  { %s6773_s12 = sld [smem:[%s7851_s0 + %s6553_s7]]   ;;  %s6557_s7 = smov 42  }
  0x4e   :  { %s6778_s20 = sld [smem:[%s7851_s0 + %s6554_s15]]   ;;  %s6558_s15 = smov 43  }
  0x4f   :  { %s6783_s27 = sld [smem:[%s7851_s0 + %s6555_s22]]   ;;  %s6559_s22 = smov 44  }
  0x50   :  { %s6788_s4 = sld [smem:[%s7851_s0 + %s6556_s28]]   ;;  %s6560_s28 = smov 45  }
  0x53   :  { %7918 = sst [smem:[#allocation30_spill]] %s6773_s12 }
  0x54   :  { %7919 = sst [smem:[#allocation31_spill]] %s6778_s20 }
  0x55   :  { %7920 = sst [smem:[#allocation32_spill]] %s6783_s27 }
  0x56   :  { %7921 = sst [smem:[#allocation33_spill]] %s6788_s4 }
  0x57   :  { %s6793_s12 = sld [smem:[%s7851_s0 + %s6557_s7]]   ;;  %s6561_s7 = smov 46  }
  0x58   :  { %s6798_s20 = sld [smem:[%s7851_s0 + %s6558_s15]]   ;;  %s6562_s15 = smov 47  }
  0x59   :  { %s6803_s27 = sld [smem:[%s7851_s0 + %s6559_s22]]   ;;  %s6563_s22 = smov 48  }
  0x5a   :  { %s6808_s4 = sld [smem:[%s7851_s0 + %s6560_s28]]   ;;  %s6564_s28 = smov 49  }
  0x5d   :  { %7922 = sst [smem:[#allocation34_spill]] %s6793_s12 }
  0x5e   :  { %7923 = sst [smem:[#allocation35_spill]] %s6798_s20 }
  0x5f   :  { %7924 = sst [smem:[#allocation36_spill]] %s6803_s27 }
  0x60   :  { %7925 = sst [smem:[#allocation37_spill]] %s6808_s4 }
  0x61   :  { %s6813_s12 = sld [smem:[%s7851_s0 + %s6561_s7]]   ;;  %s6830_s7 = smov 0  }
  0x62   :  { %s6818_s20 = sld [smem:[%s7851_s0 + %s6562_s15]]  }
  0x63   :  { %s6823_s27 = sld [smem:[%s7851_s0 + %s6563_s22]]  }
  0x64   :  { %s6828_s4 = sld [smem:[%s7851_s0 + %s6564_s28]]  }
  0x65 LB: > { %s7926_s3 = sld [smem:[#allocation5_spill]]  ;;  %s5638_s10 = sadd.s32 4294967295, %s6514_s7   ;;  %s6514_s7 = sphi %s6830_s7, %s109_s7  }
  0x66   : > { %p5642_p0 = scmp.ge.s32.totalorder %s6514_s7, 1  ;;  %p1337_p1 = scmp.lt.s32.totalorder %s6514_s7, 3 }
  0x68   : > { %p1338_p2 = pnand %p5642_p0, %p1337_p1 }
  0x69   : > { %p6838_p3 = scmp.lt.s32.totalorder (!%p1338_p2), %s5638_s10, 1  ;;  %s7928_s5 = sld [smem:[#allocation4_spill]] (!%p1338_p2) }
  0x6a   : > { %1341 = sbr.rel (%p1338_p2) target bundleno = 7105 (0x1bc1), region = 216  ;;  %s7875_s16 = smov (!%p1338_p2), 8  }
  0x6b   : > { %s7877_s18 = smov (!%p1338_p2), 16   ;;  %s6568_s22 = smov (!%p1338_p2), 24  }
  0x6c   : > { %s7881_s23 = smov (!%p1338_p2), 32   ;;  %s6570_s26 = smov (!%p1338_p2), 48  }
  0x6d   : > { %s7879_s28 = smov (!%p1338_p2), 64   ;;  %s6573_s1 = smov (!%p1338_p2), 96  }
  0x6e   : > { %s7929_s2 = sld [smem:[#allocation7_spill]] (!%p1338_p2) }
  0x6f   : > { %vm1463_vm0 = vcmask 523264   ;;  %vm1472_vm1 = vcmask 519168   ;;  %v6565_v0 = vmov 0.0   ;;  %vm1491_vm2 = vcmask 58368   ;;  %s8026_s10 = smov (!%p6838_p3, %s5638_s10), 1  ;;  %v1717_v20 = vld [vmem:[%s6588_s9 + $0x20] sm:$0xff] }
  0x70   : > { %1464 = vst.msk [vmem:[#allocation2] sm:$0xff] %vm1463_vm0, %v6565_v0  ;;  %1465 = vst.msk [vmem:[#allocation2 + $0x8] sm:$0xff] %vm1463_vm0, %v6565_v0  ;;  %s7874_s0 = sshll.u32 %s8026_s10, 6  ;;  %vm7871_vm3 = vcmask 64512   ;;  %5981 = vmatprep.subr.mxu0 %v1717_v20  ;;  %v1716_v21 = vld [vmem:[%s6588_s9 + $0x18] sm:$0xff]  ;;  %v1715_v30 = vld [vmem:[%s6588_s9 + $0x10] sm:$0xff] }
  0x71   : > { %1466 = vst.msk [vmem:[#allocation2 + $0x10] sm:$0xff] %vm1463_vm0, %v6565_v0  ;;  %1467 = vst.msk [vmem:[#allocation2 + $0x18] sm:$0xff] %vm1463_vm0, %v6565_v0  ;;  %s6870_s15 = scalar_lea.vmem %s7928_s5, %s7874_s0  ;;  %5982 = vmatpush3.msra.mxu0 %v1717_v20  ;;  %v1714_v32 = vld [vmem:[%s6588_s9 + $0x8] sm:$0xff]  ;;  %v1713_v36 = vld [vmem:[%s6588_s9] sm:$0xff]  ;;  %vm7870_vm4 = vcmask 130112   ;;  %vm1598_vm5 = vcmask 195712  }
  0x72   : > { %1468 = vst.msk [vmem:[#allocation2 + $0x20] sm:$0xff] %vm1463_vm0, %v6565_v0  ;;  %1469 = vst.msk [vmem:[#allocation2 + $0x28] sm:$0xff] %vm1463_vm0, %v6565_v0  ;;  %v1474_v1 = vld [vmem:[%s6870_s15] sm:$0xff]  ;;  %v1475_v2 = vld [vmem:[%s6870_s15 + $0x8] sm:$0xff]  ;;  %5983 = vmatprep.subr.mxu0 %v1716_v21  ;;  %vm1647_vm6 = vcmask 261312   ;;  %vm1696_vm7 = vcmask 326912  }
  0x73   : > { %1470 = vst.msk [vmem:[#allocation2 + $0x30] sm:$0xff] %vm1463_vm0, %v6565_v0  ;;  %1471 = vst.msk [vmem:[#allocation2 + $0x38] sm:$0xff] %vm1463_vm0, %v6565_v0  ;;  %v1476_v3 = vld [vmem:[%s6870_s15 + $0x10] sm:$0xff]  ;;  %v1477_v4 = vld [vmem:[%s6870_s15 + $0x18] sm:$0xff]  ;;  %5984 = vmatpush3.msra.mxu0 %v1716_v21  ;;  %vm1718_vm8 = vcmask 326656   ;;  %vm2271_vm9 = vcmask 123904  }
  0x74   : > { %1473 = vst.msk [vmem:[#allocation2 + $0x40] sm:$0xf] %vm1472_vm1, %v6565_v0  ;;  %v1478_v5 = vld [vmem:[%s6870_s15 + $0x20] sm:$0xff]  ;;  %v1479_v6 = vld [vmem:[%s6870_s15 + $0x28] sm:$0xff]  ;;  %v1480_v7 = vld [vmem:[%s6870_s15 + $0x30] sm:$0xff]  ;;  %5985 = vmatprep.subr.mxu0 %v1715_v30  ;;  %vm7872_vm10 = vcmask 261120  }
  0x75   : > { %1492 = vst.msk [vmem:[#allocation2 + $0x42] sm:$0x3] %vm1491_vm2, %v6565_v0  ;;  %v1481_v8 = vld [vmem:[%s6870_s15 + $0x38] sm:$0xff]  ;;  %5986 = vmatpush3.msra.mxu0 %v1715_v30  ;;  %vm2268_vm11 = vcmask 130048   ;;  %vm7873_vm12 = vcmask 261248   ;;  %vm7869_vm13 = vcmask 392448  }
  0x76   : > { %1483 = vst.msk [vmem:[#allocation2 + $0x2] sm:$0xff] %vm7871_vm3, %v1474_v1  ;;  %1484 = vst.msk [vmem:[#allocation2 + $0xa] sm:$0xff] %vm7871_vm3, %v1475_v2  ;;  %5987 = vmatprep.subr.mxu0 %v1714_v32  ;;  %vm2313_vm14 = vcmask 523648   ;;  %vm2326_vm15 = vcmask 654848   ;;  %s7930_s11 = sld [smem:[#allocation8_spill]] }
  0x77   : > { %1485 = vst.msk [vmem:[#allocation2 + $0x12] sm:$0xff] %vm7871_vm3, %v1476_v3  ;;  %1486 = vst.msk [vmem:[#allocation2 + $0x1a] sm:$0xff] %vm7871_vm3, %v1477_v4  ;;  %5988 = vmatpush3.msra.mxu0 %v1714_v32  ;;  %s7940_s0 = sld [smem:[#allocation17_spill]] }
  0x78   : > { %1487 = vst.msk [vmem:[#allocation2 + $0x22] sm:$0xff] %vm7871_vm3, %v1478_v5  ;;  %1488 = vst.msk [vmem:[#allocation2 + $0x2a] sm:$0xff] %vm7871_vm3, %v1479_v6  ;;  %5989 = vmatprep.subr.mxu0 %v1713_v36  ;;  %s7964_s5 = sld [smem:[#allocation32_spill]] }
  0x79   : > { %1489 = vst.msk [vmem:[#allocation2 + $0x32] sm:$0xff] %vm7871_vm3, %v1480_v7  ;;  %1490 = vst.msk [vmem:[#allocation2 + $0x3a] sm:$0xff] %vm7871_vm3, %v1481_v8  ;;  %5990 = vmatpush3.msra.mxu0 %v1713_v36 }
  0x7d   : > { %v1509_v9 = vld [vmem:[#allocation2 + $0x1] sm:$0xff]  ;;  %v1510_v11 = vld [vmem:[#allocation2 + $0x9] sm:$0xff] }
  0x7e   : > { %v1558_v10 = vld [vmem:[#allocation2 + $0x2] sm:$0xff]  ;;  %1525 = vrot.lane.b32.xlu0 %v1509_v9, %s7875_s16  ;;  %v1559_v12 = vld [vmem:[#allocation2 + $0xa] sm:$0xff]  ;;  %v1496_v22 = vld [vmem:[#allocation2 + $0x18] sm:$0xff] }
  0x7f   : > { %1574 = vrot.lane.b32.xlu1 %v1558_v10, %s7877_s18  ;;  %v1607_v13 = vld [vmem:[#allocation2 + $0x3] sm:$0xff]  ;;  %v1608_v14 = vld [vmem:[#allocation2 + $0xb] sm:$0xff]  ;;  %v1512_v24 = vld [vmem:[#allocation2 + $0x19] sm:$0xff]  ;;  %1504 = vst.msk [vmem:[#allocation3 + $0x30] sm:$0xff] %vm7871_vm3, %v1496_v22 }
  0x80   : > { %v1656_v15 = vld [vmem:[#allocation2 + $0x4] sm:$0xff]  ;;  %v1511_v16 = vld [vmem:[#allocation2 + $0x11] sm:$0xff]  ;;  %v1610_v25 = vld [vmem:[#allocation2 + $0x1b] sm:$0xff] }
  0x81   : > { %v1493_v17 = vld [vmem:[#allocation2] sm:$0xff]  ;;  %v1494_v18 = vld [vmem:[#allocation2 + $0x8] sm:$0xff]  ;;  %v1495_v19 = vld [vmem:[#allocation2 + $0x10] sm:$0xff] }
  0x82   : > { %1527 = vrot.lane.b32.xlu0 %v1510_v11, %s7875_s16  ;;  %1501 = vst.msk [vmem:[#allocation3] sm:$0xff] %vm7871_vm3, %v1493_v17  ;;  %1502 = vst.msk [vmem:[#allocation3 + $0x10] sm:$0xff] %vm7871_vm3, %v1494_v18  ;;  %v1657_v23 = vld [vmem:[#allocation2 + $0xc] sm:$0xff]  ;;  %v1513_v26 = vld [vmem:[#allocation2 + $0x21] sm:$0xff] }
  0x83   : > { %1576 = vrot.lane.b32.xlu1 %v1559_v12, %s7877_s18  ;;  %1503 = vst.msk [vmem:[#allocation3 + $0x20] sm:$0xff] %vm7871_vm3, %v1495_v19  ;;  %v1659_v27 = vld [vmem:[#allocation2 + $0x1c] sm:$0xff]  ;;  %v1560_v33 = vld [vmem:[#allocation2 + $0x12] sm:$0xff]  ;;  %v1498_v35 = vld [vmem:[#allocation2 + $0x28] sm:$0xff] }
  0x84   : > { %v1562_v28 = vld [vmem:[#allocation2 + $0x22] sm:$0xff]  ;;  %v1561_v34 = vld [vmem:[#allocation2 + $0x1a] sm:$0xff]  ;;  %1506 = vst.msk [vmem:[#allocation3 + $0x50] sm:$0xff] %vm7871_vm3, %v1498_v35  ;;  %v1499_v40 = vld [vmem:[#allocation2 + $0x30] sm:$0xff] }
  0x85   : > { %v1611_v29 = vld [vmem:[#allocation2 + $0x23] sm:$0xff]  ;;  %v1609_v37 = vld [vmem:[#allocation2 + $0x13] sm:$0xff]  ;;  %1507 = vst.msk [vmem:[#allocation3 + $0x60] sm:$0xff] %vm7871_vm3, %v1499_v40  ;;  %v1612_v43 = vld [vmem:[#allocation2 + $0x2b] sm:$0xff] }
  0x86   : > { %1623 = vrot.lane.b32.xlu0 %v1607_v13, %s6568_s22  ;;  %v1497_v31 = vld [vmem:[#allocation2 + $0x20] sm:$0xff]  ;;  %v1658_v38 = vld [vmem:[#allocation2 + $0x14] sm:$0xff]  ;;  %v1514_v39 = vld [vmem:[#allocation2 + $0x29] sm:$0xff] }
  0x87   : > { %1625 = vrot.lane.b32.xlu1 %v1608_v14, %s6568_s22  ;;  %1505 = vst.msk [vmem:[#allocation3 + $0x40] sm:$0xff] %vm7871_vm3, %v1497_v31  ;;  %v1563_v41 = vld [vmem:[#allocation2 + $0x2a] sm:$0xff]  ;;  %v1500_v42 = vld [vmem:[#allocation2 + $0x38] sm:$0xff]  ;;  %v1848_v31 = vld [vmem:[%s6598_s17] sm:$0xff] }
  0x88   : > { %1964 = vst.msk [vmem:[#allocation2 + $0x22] sm:$0x3] %vm1491_vm2, %v6565_v0  ;;  %v1660_v44 = vld [vmem:[#allocation2 + $0x24] sm:$0xff]  ;;  %v1515_v45 = vld [vmem:[#allocation2 + $0x31] sm:$0xff]  ;;  %v1516_v47 = vld [vmem:[#allocation2 + $0x39] sm:$0xff]  ;;  %6019 = vmatprep.mubr.msk.f32.mxu1 %vm1463_vm0, %v1848_v31  ;;  %vm2341_vm2 = vcmask 654336  }
  0x89   : > { %1508 = vst.msk [vmem:[#allocation3 + $0x70] sm:$0xff] %vm7871_vm3, %v1500_v42  ;;  %v1661_v46 = vld [vmem:[#allocation2 + $0x2c] sm:$0xff]  ;;  %v1565_v49 = vld [vmem:[#allocation2 + $0x3a] sm:$0xff] }
  0x8a   : > { %1672 = vrot.lane.b32.xlu0 %v1656_v15, %s7881_s23  ;;  %v1564_v48 = vld [vmem:[#allocation2 + $0x32] sm:$0xff]  ;;  %v1614_v51 = vld [vmem:[#allocation2 + $0x3b] sm:$0xff]  ;;  %v1849_v40 = vld [vmem:[%s6598_s17 + $0x8] sm:$0xff] }
  0x8b   : > { %1529 = vrot.lane.b32.xlu1 %v1511_v16, %s7875_s16  ;;  %v1613_v50 = vld [vmem:[#allocation2 + $0x33] sm:$0xff]  ;;  %v1663_v53 = vld [vmem:[#allocation2 + $0x3c] sm:$0xff] }
  0x8c   : > { %v1662_v52 = vld [vmem:[#allocation2 + $0x34] sm:$0xff] }
  0x8d   : > { %v1851_v42 = vld [vmem:[%s6598_s17 + $0x18] sm:$0xff] }
  0x8e   : > { %1674 = vrot.lane.b32.xlu0 %v1657_v23, %s7881_s23 }
  0x8f   : > { %1531 = vrot.lane.b32.xlu1 %v1512_v24, %s7875_s16 }
  0x92   : > { %1578 = vrot.lane.b32.xlu0 %v1560_v33, %s7877_s18 }
  0x93   : > { %1580 = vrot.lane.b32.xlu1 %v1561_v34, %s7877_s18 }
  0x96   : > { %1627 = vrot.lane.b32.xlu0 %v1609_v37, %s6568_s22 }
  0x97   : > { %1629 = vrot.lane.b32.xlu1 %v1610_v25, %s6568_s22 }
  0x9a   : > { %1676 = vrot.lane.b32.xlu0 %v1658_v38, %s7881_s23 }
  0x9b   : > { %1533 = vrot.lane.b32.xlu1 %v1513_v26, %s7875_s16 }
  0x9e   : > { %1678 = vrot.lane.b32.xlu0 %v1659_v27, %s7881_s23 }
  0x9f   : > { %1535 = vrot.lane.b32.xlu1 %v1514_v39, %s7875_s16 }
  0xa2   : > { %1582 = vrot.lane.b32.xlu0 %v1562_v28, %s7877_s18 }
  0xa3   : > { %1584 = vrot.lane.b32.xlu1 %v1563_v41, %s7877_s18  ;;  %v1850_v41 = vld [vmem:[%s6598_s17 + $0x10] sm:$0xff] }
  0xa6   : > { %1631 = vrot.lane.b32.xlu0 %v1611_v29, %s6568_s22 }
  0xa7   : > { %1633 = vrot.lane.b32.xlu1 %v1612_v43, %s6568_s22  ;;  %v5655_v43 = vld [vmem:[%s6593_s13] ss:$0 sm:$0xff] }
  0xaa   : > { %1680 = vrot.lane.b32.xlu0 %v1660_v44, %s7881_s23 }
  0xab   : > { %1537 = vrot.lane.b32.xlu1 %v1515_v45, %s7875_s16 }
  0xae   : > { %1682 = vrot.lane.b32.xlu0 %v1661_v46, %s7881_s23 }
  0xaf   : > { %1539 = vrot.lane.b32.xlu1 %v1516_v47, %s7875_s16 }
  0xb2   : > { %1586 = vrot.lane.b32.xlu0 %v1564_v48, %s7877_s18 }
  0xb3   : > { %1588 = vrot.lane.b32.xlu1 %v1565_v49, %s7877_s18 }
  0xb6   : > { %1635 = vrot.lane.b32.xlu0 %v1613_v50, %s6568_s22 }
  0xb7   : > { %1637 = vrot.lane.b32.xlu1 %v1614_v51, %s6568_s22 }
  0xba   : > { %1684 = vrot.lane.b32.xlu0 %v1662_v52, %s7881_s23 }
  0xbb   : > { %1686 = vrot.lane.b32.xlu1 %v1663_v53, %s7881_s23 }
  0xf0   : > { %v1526_v54 = vpop.permute.xlu0 %1525 }
  0xf1   : > { %v1575_v55 = vpop.permute.xlu1 %1574  ;;  %1550 = vst.msk [vmem:[#allocation3] sm:$0xff] %vm7870_vm4, %v1526_v54 }
  0xf2   : > { %1599 = vst.msk [vmem:[#allocation3] sm:$0xff] %vm1598_vm5, %v1575_v55 }
  0xf4   : > { %v1528_v56 = vpop.permute.xlu0 %1527 }
  0xf5   : > { %v1577_v57 = vpop.permute.xlu1 %1576  ;;  %1551 = vst.msk [vmem:[#allocation3 + $0x10] sm:$0xff] %vm7870_vm4, %v1528_v56 }
  0xf6   : > { %1600 = vst.msk [vmem:[#allocation3 + $0x10] sm:$0xff] %vm1598_vm5, %v1577_v57 }
  0xf8   : > { %v1624_v58 = vpop.permute.xlu0 %1623 }
  0xf9   : > { %v1626_v59 = vpop.permute.xlu1 %1625  ;;  %1648 = vst.msk [vmem:[#allocation3] sm:$0xff] %vm1647_vm6, %v1624_v58 }
  0xfa   : > { %1649 = vst.msk [vmem:[#allocation3 + $0x10] sm:$0xff] %vm1647_vm6, %v1626_v59 }
  0xfc   : > { %v1673_v60 = vpop.permute.xlu0 %1672 }
  0xfd   : > { %v1530_v61 = vpop.permute.xlu1 %1529  ;;  %1697 = vst.msk [vmem:[#allocation3] sm:$0xff] %vm1696_vm7, %v1673_v60 }
  0xfe   : > { %1552 = vst.msk [vmem:[#allocation3 + $0x20] sm:$0xff] %vm7870_vm4, %v1530_v61 }
 0x100   : > { %v1675_v62 = vpop.permute.xlu0 %1674 }
 0x101   : > { %v1532_v63 = vpop.permute.xlu1 %1531  ;;  %1698 = vst.msk [vmem:[#allocation3 + $0x10] sm:$0xff] %vm1696_vm7, %v1675_v62 }
 0x102   : > { %1553 = vst.msk [vmem:[#allocation3 + $0x30] sm:$0xff] %vm7870_vm4, %v1532_v63 }
 0x104   : > { %v1579_v1 = vpop.permute.xlu0 %1578  ;;  %v1705_v3 = vld [vmem:[#allocation3] sm:$0xff] }
 0x105   : > { %v1581_v2 = vpop.permute.xlu1 %1580  ;;  %1601 = vst.msk [vmem:[#allocation3 + $0x20] sm:$0xff] %vm1598_vm5, %v1579_v1  ;;  %5991 = vmatprep.mubr.msk.f32.mxu0 %vm1718_vm8, %v1705_v3 }
 0x106   : > { %1602 = vst.msk [vmem:[#allocation3 + $0x30] sm:$0xff] %vm1598_vm5, %v1581_v2  ;;  %v2077_v2 = vld [vmem:[%s6603_s21 + $0x20] sm:$0xff] }
 0x107   : > { %6025 = vmatprep.subr.mxu0 %v2077_v2 }
 0x108   : > { %v1628_v4 = vpop.permute.xlu0 %1627  ;;  %v1706_v6 = vld [vmem:[#allocation3 + $0x10] sm:$0xff] }
 0x109   : > { %v1630_v5 = vpop.permute.xlu1 %1629  ;;  %1650 = vst.msk [vmem:[#allocation3 + $0x20] sm:$0xff] %vm1647_vm6, %v1628_v4  ;;  %5992 = vmatmul.mubr.msk.f32.vlgmr.msra.gmra.mxu0 %vm1718_vm8, %v1706_v6 }
 0x10a   : > { %1651 = vst.msk [vmem:[#allocation3 + $0x30] sm:$0xff] %vm1647_vm6, %v1630_v5  ;;  %6026 = vmatpush3.msra.mxu0 %v2077_v2 }
 0x10c   : > { %v1677_v7 = vpop.permute.xlu0 %1676 }
 0x10d   : > { %v1534_v8 = vpop.permute.xlu1 %1533  ;;  %1699 = vst.msk [vmem:[#allocation3 + $0x20] sm:$0xff] %vm1696_vm7, %v1677_v7 }
 0x10e   : > { %1554 = vst.msk [vmem:[#allocation3 + $0x40] sm:$0xff] %vm7870_vm4, %v1534_v8 }
 0x110   : > { %v1679_v9 = vpop.permute.xlu0 %1678 }
 0x111   : > { %v1536_v10 = vpop.permute.xlu1 %1535  ;;  %1700 = vst.msk [vmem:[#allocation3 + $0x30] sm:$0xff] %vm1696_vm7, %v1679_v9 }
 0x112   : > { %1555 = vst.msk [vmem:[#allocation3 + $0x50] sm:$0xff] %vm7870_vm4, %v1536_v10  ;;  %v2076_v10 = vld [vmem:[%s6603_s21 + $0x18] sm:$0xff] }
 0x113   : > { %6027 = vmatprep.subr.mxu0 %v2076_v10 }
 0x114   : > { %v1583_v11 = vpop.permute.xlu0 %1582  ;;  %v1707_v13 = vld [vmem:[#allocation3 + $0x20] sm:$0xff]  ;;  %6028 = vmatpush3.msra.mxu0 %v2076_v10 }
 0x115   : > { %v1585_v12 = vpop.permute.xlu1 %1584  ;;  %1603 = vst.msk [vmem:[#allocation3 + $0x40] sm:$0xff] %vm1598_vm5, %v1583_v11  ;;  %5994 = vmatprep.mubr.msk.f32.mxu0 %vm1718_vm8, %v1707_v13 }
 0x116   : > { %1604 = vst.msk [vmem:[#allocation3 + $0x50] sm:$0xff] %vm1598_vm5, %v1585_v12  ;;  %v2075_v12 = vld [vmem:[%s6603_s21 + $0x10] sm:$0xff] }
 0x117   : > { %6029 = vmatprep.subr.mxu0 %v2075_v12 }
 0x118   : > { %v1632_v14 = vpop.permute.xlu0 %1631  ;;  %v1708_v16 = vld [vmem:[#allocation3 + $0x30] sm:$0xff]  ;;  %6030 = vmatpush3.msra.mxu0 %v2075_v12  ;;  %v2331_v12 = vld [vmem:[%s7926_s3] sm:$0xff] }
 0x119   : > { %v1634_v15 = vpop.permute.xlu1 %1633  ;;  %1652 = vst.msk [vmem:[#allocation3 + $0x40] sm:$0xff] %vm1647_vm6, %v1632_v14  ;;  %5995 = vmatmul.mubr.msk.f32.gmra.mxu0 %vm1718_vm8, %v1708_v16 }
 0x11a   : > { %1653 = vst.msk [vmem:[#allocation3 + $0x50] sm:$0xff] %vm1647_vm6, %v1634_v15  ;;  %v2074_v15 = vld [vmem:[%s6603_s21 + $0x8] sm:$0xff] }
 0x11b   : > { %6031 = vmatprep.subr.mxu0 %v2074_v15 }
 0x11c   : > { %v1681_v17 = vpop.permute.xlu0 %1680  ;;  %6032 = vmatpush3.msra.mxu0 %v2074_v15 }
 0x11d   : > { %v1538_v18 = vpop.permute.xlu1 %1537  ;;  %1701 = vst.msk [vmem:[#allocation3 + $0x40] sm:$0xff] %vm1696_vm7, %v1681_v17  ;;  %v2073_v17 = vld [vmem:[%s6603_s21] sm:$0xff] }
 0x11e   : > { %1556 = vst.msk [vmem:[#allocation3 + $0x60] sm:$0xff] %vm7870_vm4, %v1538_v18  ;;  %6033 = vmatprep.subr.mxu0 %v2073_v17 }
 0x11f   : > { %6034 = vmatpush3.msra.mxu0 %v2073_v17 }
 0x120   : > { %v1683_v19 = vpop.permute.xlu0 %1682  ;;  %6075 = vmatprep.subr.mxu0 %v6565_v0 }
 0x121   : > { %v1540_v20 = vpop.permute.xlu1 %1539  ;;  %1702 = vst.msk [vmem:[#allocation3 + $0x50] sm:$0xff] %vm1696_vm7, %v1683_v19 }
 0x122   : > { %1557 = vst.msk [vmem:[#allocation3 + $0x70] sm:$0xff] %vm7870_vm4, %v1540_v20 }
 0x124   : > { %v1587_v21 = vpop.permute.xlu0 %1586  ;;  %v1709_v23 = vld [vmem:[#allocation3 + $0x40] sm:$0xff] }
 0x125   : > { %v1589_v22 = vpop.permute.xlu1 %1588  ;;  %1605 = vst.msk [vmem:[#allocation3 + $0x60] sm:$0xff] %vm1598_vm5, %v1587_v21  ;;  %5997 = vmatprep.mubr.msk.f32.mxu0 %vm1718_vm8, %v1709_v23 }
 0x126   : > { %1606 = vst.msk [vmem:[#allocation3 + $0x70] sm:$0xff] %vm1598_vm5, %v1589_v22 }
 0x128   : > { %v1636_v24 = vpop.permute.xlu0 %1635  ;;  %v1710_v26 = vld [vmem:[#allocation3 + $0x50] sm:$0xff] }
 0x129   : > { %v1638_v25 = vpop.permute.xlu1 %1637  ;;  %1654 = vst.msk [vmem:[#allocation3 + $0x60] sm:$0xff] %vm1647_vm6, %v1636_v24  ;;  %5998 = vmatmul.mubr.msk.f32.gmra.mxu0 %vm1718_vm8, %v1710_v26 }
 0x12a   : > { %1655 = vst.msk [vmem:[#allocation3 + $0x70] sm:$0xff] %vm1647_vm6, %v1638_v25 }
 0x12c   : > { %v1685_v27 = vpop.permute.xlu0 %1684 }
 0x12d   : > { %v1687_v28 = vpop.permute.xlu1 %1686  ;;  %1703 = vst.msk [vmem:[#allocation3 + $0x60] sm:$0xff] %vm1696_vm7, %v1685_v27 }
 0x12e   : > { %1704 = vst.msk [vmem:[#allocation3 + $0x70] sm:$0xff] %vm1696_vm7, %v1687_v28 }
 0x134   : > { %v1711_v29 = vld [vmem:[#allocation3 + $0x60] sm:$0xff] }
 0x135   : > { %v1712_v30 = vld [vmem:[#allocation3 + $0x70] sm:$0xff]  ;;  %6000 = vmatprep.mubr.msk.f32.mxu0 %vm1718_vm8, %v1711_v29 }
 0x136   : > { %6001 = vmatmul.mubr.msk.f32.gmra.mxu0 %vm1718_vm8, %v1712_v30 }
 0x1c9   : > { %v5993_v32 = vpop.f32.mrf.mxu0 }
 0x1cb   : > { %v1809_v33 = vpop.f32.mrf.mxu0 }
 0x1d9   : > { %v5996_v34 = vpop.f32.mrf.mxu0 }
 0x1db   : > { %v1819_v35 = vpop.f32.mrf.mxu0 }
 0x1e9   : > { %v5999_v36 = vpop.f32.mrf.mxu0 }
 0x1eb   : > { %v1829_v37 = vpop.f32.mrf.mxu0 }
 0x1f6   : > { %v6002_v38 = vpop.f32.mrf.mxu0 }
 0x1f7   : > { %6003 = vmatprep.subr.mxu1 %v6002_v38 }
 0x1f8   : > { %v1839_v39 = vpop.f32.mrf.mxu0  ;;  %6004 = vmatpush3.msra.mxu1 %v6002_v38  ;;  %v2175_v38 = vld [vmem:[%s6613_s29] sm:$0xff] }
 0x1f9   : > { %6005 = vmatprep.subr.mxu1 %v1839_v39 }
 0x1fa   : > { %6006 = vmatpush3.msra.mxu1 %v1839_v39 }
 0x1fb   : > { %6007 = vmatprep.subr.mxu1 %v5999_v36 }
 0x1fc   : > { %6008 = vmatpush3.msra.mxu1 %v5999_v36 }
 0x1fd   : > { %6009 = vmatprep.subr.mxu1 %v1829_v37 }
 0x1fe   : > { %6010 = vmatpush3.msra.mxu1 %v1829_v37 }
 0x1ff   : > { %6011 = vmatprep.subr.mxu1 %v5996_v34 }
 0x200   : > { %6012 = vmatpush3.msra.mxu1 %v5996_v34 }
 0x201   : > { %6013 = vmatprep.subr.mxu1 %v1819_v35 }
 0x202   : > { %6014 = vmatpush3.msra.mxu1 %v1819_v35 }
 0x203   : > { %6015 = vmatprep.subr.mxu1 %v5993_v32 }
 0x204   : > { %6016 = vmatpush3.msra.mxu1 %v5993_v32 }
 0x205   : > { %6017 = vmatprep.subr.mxu1 %v1809_v33 }
 0x206   : > { %6018 = vmatpush3.msra.mxu1 %v1809_v33 }
 0x207   : > { %6020 = vmatmul.mubr.msk.f32.vlgmr.msra.gmra.mxu1 %vm1463_vm0, %v1849_v40 }
 0x208   : > { %6022 = vmatprep.mubr.msk.f32.mxu1 %vm1463_vm0, %v1850_v41 }
 0x20b   : > { %6023 = vmatmul.mubr.msk.f32.gmra.mxu1 %vm1463_vm0, %v1851_v42 }
 0x20c   : > { %6049 = vmatprep.mubr.msk.f32.mxu1 %vm7872_vm10, %v2175_v38  ;;  %v2537_v38 = vld [vmem:[%s6633_s19 + $0x18] sm:$0xff] }
 0x2c7   : > { %v6021_v44 = vpop.f32.mrf.mxu1 }
 0x2c8   : > { %v6984_v45 = vadd.f32 %v6021_v44, %v5655_v43  ;;  %v5664_v44 = vld [vmem:[%s6608_s25] ss:$0 sm:$0xff] }
 0x2c9   : > { %v1937_v46 = vpop.f32.mrf.mxu1 }
 0x2ca   : > { %v1957_v47 = vmax.f32 %v6984_v45, 0.0  ;;  %v6987_v48 = vadd.f32 %v5655_v43, %v1937_v46 }
 0x2cb   : > { %v6024_v49 = vpop.f32.mrf.mxu1 }
 0x2cc   : > { %1961 = vst.msk [vmem:[#allocation2 + $0xa] sm:$0xff] %vm7871_vm3, %v1957_v47  ;;  %v1956_v50 = vmax.f32 %v6987_v48, 0.0  ;;  %v1953_v51 = vadd.f32 %v6024_v49, %v5655_v43 }
 0x2cd   : > { %v1947_v52 = vpop.f32.mrf.mxu1 }
 0x2ce   : > { %1960 = vst.msk [vmem:[#allocation2 + $0x2] sm:$0xff] %vm7871_vm3, %v1956_v50  ;;  %v1959_v53 = vmax.f32 %v1953_v51, 0.0  ;;  %v6996_v54 = vadd.f32 %v5655_v43, %v1947_v52  ;;  %v2176_v43 = vld [vmem:[%s6613_s29 + $0x8] sm:$0xff] }
 0x2cf   : > { %v2340_v52 = vld [vmem:[%s7926_s3 + $0x48] sm:$0xff] }
 0x2d0   : > { %1963 = vst.msk [vmem:[#allocation2 + $0x1a] sm:$0xff] %vm7871_vm3, %v1959_v53  ;;  %v1958_v55 = vmax.f32 %v6996_v54, 0.0 }
 0x2d2   : > { %1962 = vst.msk [vmem:[#allocation2 + $0x12] sm:$0xff] %vm7871_vm3, %v1958_v55 }
 0x2d3   : > { %v1998_v56 = vld [vmem:[#allocation2 + $0xa] sm:$0xff] }
 0x2d4   : > { %2007 = vrot.lane.b32.xlu1 %v1998_v56, %s7877_s18 }
 0x2d5   : > { %v1965_v57 = vld [vmem:[#allocation2] sm:$0xff]  ;;  %v1966_v59 = vld [vmem:[#allocation2 + $0x8] sm:$0xff] }
 0x2d6   : > { %v1973_v58 = vld [vmem:[#allocation2 + $0x1] sm:$0xff]  ;;  %1969 = vst.msk [vmem:[#allocation3] sm:$0xff] %vm7871_vm3, %v1965_v57  ;;  %1970 = vst.msk [vmem:[#allocation3 + $0x10] sm:$0xff] %vm7871_vm3, %v1966_v59  ;;  %v1974_v60 = vld [vmem:[#allocation2 + $0x9] sm:$0xff] }
 0x2d7   : > { %1981 = vrot.lane.b32.xlu0 %v1973_v58, %s7875_s16  ;;  %v1997_v61 = vld [vmem:[#allocation2 + $0x2] sm:$0xff]  ;;  %v2000_v62 = vld [vmem:[#allocation2 + $0x1a] sm:$0xff] }
 0x2d8   : > { %1983 = vrot.lane.b32.xlu1 %v1974_v60, %s7875_s16  ;;  %v2024_v63 = vld [vmem:[#allocation2 + $0x1b] sm:$0xff]  ;;  %v2021_v14 = vld [vmem:[#allocation2 + $0x3] sm:$0xff]  ;;  %v2337_v60 = vld [vmem:[%s7926_s3 + $0x30] sm:$0xff] }
 0x2d9   : > { %v2048_v1 = vld [vmem:[#allocation2 + $0x1c] sm:$0xff]  ;;  %v2022_v3 = vld [vmem:[#allocation2 + $0xb] sm:$0xff]  ;;  %v2023_v8 = vld [vmem:[#allocation2 + $0x13] sm:$0xff] }
 0x2da   : > { %v2046_v4 = vld [vmem:[#allocation2 + $0xc] sm:$0xff]  ;;  %4919 = vst.msk [vmem:[#allocation2 + $0x22] sm:$0x3] %vm2271_vm9, %v6565_v0  ;;  %v1976_v7 = vld [vmem:[#allocation2 + $0x19] sm:$0xff]  ;;  %v2045_v16 = vld [vmem:[#allocation2 + $0x4] sm:$0xff] }
 0x2db   : > { %v1975_v5 = vld [vmem:[#allocation2 + $0x11] sm:$0xff]  ;;  %2005 = vrot.lane.b32.xlu0 %v1997_v61, %s7877_s18  ;;  %v2339_v57 = vld [vmem:[%s7926_s3 + $0x40] sm:$0xff]  ;;  %v2336_v61 = vld [vmem:[%s7926_s3 + $0x28] sm:$0xff] }
 0x2dc   : > { %v1999_v6 = vld [vmem:[#allocation2 + $0x12] sm:$0xff]  ;;  %2011 = vrot.lane.b32.xlu1 %v2000_v62, %s7877_s18 }
 0x2dd   : > { %v2047_v9 = vld [vmem:[#allocation2 + $0x14] sm:$0xff] }
 0x2de   : > { %v1967_v11 = vld [vmem:[#allocation2 + $0x10] sm:$0xff]  ;;  %v1968_v13 = vld [vmem:[#allocation2 + $0x18] sm:$0xff] }
 0x2df   : > { %1971 = vst.msk [vmem:[#allocation3 + $0x20] sm:$0xff] %vm7871_vm3, %v1967_v11  ;;  %1972 = vst.msk [vmem:[#allocation3 + $0x30] sm:$0xff] %vm7871_vm3, %v1968_v13  ;;  %2029 = vrot.lane.b32.xlu0 %v2021_v14, %s6568_s22  ;;  %v2338_v59 = vld [vmem:[%s7926_s3 + $0x38] sm:$0xff]  ;;  %v2332_v11 = vld [vmem:[%s7926_s3 + $0x8] sm:$0xff] }
 0x2e0   : > { %2272 = vst.msk [vmem:[#allocation2 + $0x12] sm:$0x3] %vm2271_vm9, %v6565_v0  ;;  %2035 = vrot.lane.b32.xlu1 %v2024_v63, %s6568_s22  ;;  %v2335_v63 = vld [vmem:[%s7926_s3 + $0x20] sm:$0xff] }
 0x2e1   : > { %4898 = vst.msk [vmem:[#allocation2 + $0x1a] sm:$0xff] %vm7871_vm3, %v1959_v53 }
 0x2e3   : > { %2053 = vrot.lane.b32.xlu0 %v2045_v16, %s7881_s23 }
 0x2e4   : > { %2031 = vrot.lane.b32.xlu1 %v2022_v3, %s6568_s22 }
 0x2e7   : > { %2055 = vrot.lane.b32.xlu0 %v2046_v4, %s7881_s23 }
 0x2e8   : > { %1985 = vrot.lane.b32.xlu1 %v1975_v5, %s7875_s16 }
 0x2eb   : > { %2009 = vrot.lane.b32.xlu0 %v1999_v6, %s7877_s18 }
 0x2ec   : > { %1987 = vrot.lane.b32.xlu1 %v1976_v7, %s7875_s16  ;;  %s7942_s16 = sld [smem:[#allocation19_spill]] }
 0x2ef   : > { %2033 = vrot.lane.b32.xlu0 %v2023_v8, %s6568_s22  ;;  %v2334_v8 = vld [vmem:[%s7926_s3 + $0x18] sm:$0xff]  ;;  %s7931_s22 = sld [smem:[#allocation6_spill]] }
 0x2f0   : > { %2059 = vrot.lane.b32.xlu1 %v2048_v1, %s7881_s23 }
 0x2f3   : > { %2057 = vrot.lane.b32.xlu0 %v2047_v9, %s7881_s23  ;;  %v2333_v9 = vld [vmem:[%s7926_s3 + $0x10] sm:$0xff]  ;;  %s7956_s3 = sld [smem:[#allocation29_spill]] }
 0x346   : > { %v2008_v18 = vpop.permute.xlu1 %2007 }
 0x349   : > { %v1982_v19 = vpop.permute.xlu0 %1981 }
 0x34a   : > { %1993 = vst.msk [vmem:[#allocation3] sm:$0xff] %vm7870_vm4, %v1982_v19  ;;  %v1984_v20 = vpop.permute.xlu1 %1983 }
 0x34b   : > { %1994 = vst.msk [vmem:[#allocation3 + $0x10] sm:$0xff] %vm7870_vm4, %v1984_v20 }
 0x34c   : > { %2018 = vst.msk [vmem:[#allocation3 + $0x10] sm:$0xff] %vm1598_vm5, %v2008_v18 }
 0x34d   : > { %v2006_v21 = vpop.permute.xlu0 %2005 }
 0x34e   : > { %2017 = vst.msk [vmem:[#allocation3] sm:$0xff] %vm1598_vm5, %v2006_v21  ;;  %v2012_v22 = vpop.permute.xlu1 %2011 }
 0x351   : > { %v2030_v23 = vpop.permute.xlu0 %2029 }
 0x352   : > { %2041 = vst.msk [vmem:[#allocation3] sm:$0xff] %vm1647_vm6, %v2030_v23  ;;  %v2036_v24 = vpop.permute.xlu1 %2035 }
 0x355   : > { %v2054_v25 = vpop.permute.xlu0 %2053 }
 0x356   : > { %2065 = vst.msk [vmem:[#allocation3] sm:$0xff] %vm1696_vm7, %v2054_v25  ;;  %v2032_v26 = vpop.permute.xlu1 %2031  ;;  %v2423_v25 = vld [vmem:[%s6628_s14] sm:$0xff] }
 0x357   : > { %2042 = vst.msk [vmem:[#allocation3 + $0x10] sm:$0xff] %vm1647_vm6, %v2032_v26 }
 0x359   : > { %v2056_v27 = vpop.permute.xlu0 %2055 }
 0x35a   : > { %2066 = vst.msk [vmem:[#allocation3 + $0x10] sm:$0xff] %vm1696_vm7, %v2056_v27  ;;  %v1986_v28 = vpop.permute.xlu1 %1985  ;;  %v2543_v27 = vld [vmem:[%s6633_s19 + $0x48] sm:$0xff] }
 0x35b   : > { %1995 = vst.msk [vmem:[#allocation3 + $0x20] sm:$0xff] %vm7870_vm4, %v1986_v28  ;;  %v2542_v28 = vld [vmem:[%s6633_s19 + $0x40] sm:$0xff] }
 0x35d   : > { %v2010_v29 = vpop.permute.xlu0 %2009  ;;  %v2069_v30 = vld [vmem:[#allocation3] sm:$0xff] }
 0x35e   : > { %2019 = vst.msk [vmem:[#allocation3 + $0x20] sm:$0xff] %vm1598_vm5, %v2010_v29  ;;  %6035 = vmatprep.mubr.msk.f32.mxu0 %vm1718_vm8, %v2069_v30  ;;  %v1988_v31 = vpop.permute.xlu1 %1987  ;;  %v2541_v29 = vld [vmem:[%s6633_s19 + $0x38] sm:$0xff]  ;;  %v5669_v30 = vld [vmem:[%s6623_s8] ss:$0 sm:$0xff] }
 0x35f   : > { %1996 = vst.msk [vmem:[#allocation3 + $0x30] sm:$0xff] %vm7870_vm4, %v1988_v31  ;;  %vm2926_vm4 = vcmask 779776  }
 0x360   : > { %2020 = vst.msk [vmem:[#allocation3 + $0x30] sm:$0xff] %vm1598_vm5, %v2012_v22  ;;  %vm6572_vm5 = vmmov 0  }
 0x361   : > { %v2034_v32 = vpop.permute.xlu0 %2033  ;;  %v2070_v33 = vld [vmem:[#allocation3 + $0x10] sm:$0xff]  ;;  %2044 = vst.msk [vmem:[#allocation3 + $0x30] sm:$0xff] %vm1647_vm6, %v2036_v24 }
 0x362   : > { %2043 = vst.msk [vmem:[#allocation3 + $0x20] sm:$0xff] %vm1647_vm6, %v2034_v32  ;;  %6036 = vmatmul.mubr.msk.f32.vlgmr.msra.gmra.mxu0 %vm1718_vm8, %v2070_v33  ;;  %v2060_v34 = vpop.permute.xlu1 %2059  ;;  %v2540_v33 = vld [vmem:[%s6633_s19 + $0x30] sm:$0xff]  ;;  %vm2701_vm6 = vcmask 254976  }
 0x363   : > { %2068 = vst.msk [vmem:[#allocation3 + $0x30] sm:$0xff] %vm1696_vm7, %v2060_v34  ;;  %v2539_v34 = vld [vmem:[%s6633_s19 + $0x28] sm:$0xff] }
 0x365   : > { %v2058_v35 = vpop.permute.xlu0 %2057 }
 0x366   : > { %2067 = vst.msk [vmem:[#allocation3 + $0x20] sm:$0xff] %vm1696_vm7, %v2058_v35  ;;  %vm2699_vm7 = vcmask 257024  }
 0x36a   : > { %v2072_v37 = vld [vmem:[#allocation3 + $0x30] sm:$0xff] }
 0x36d   : > { %v2071_v36 = vld [vmem:[#allocation3 + $0x20] sm:$0xff] }
 0x36e   : > { %6038 = vmatprep.mubr.msk.f32.mxu0 %vm1718_vm8, %v2071_v36 }
 0x36f   : > { %6039 = vmatmul.mubr.msk.f32.gmra.mxu0 %vm1718_vm8, %v2072_v37  ;;  %v2538_v37 = vld [vmem:[%s6633_s19 + $0x20] sm:$0xff]  ;;  %vm2710_vm8 = vcmask 519424  }
 0x370   : > { %6079 = vmatprep.mubr.msk.f32.mxu0 %vm6572_vm5, %v6565_v0 }
 0x422   : > { %v6037_v39 = vpop.f32.mrf.mxu0 }
 0x424   : > { %v2156_v40 = vpop.f32.mrf.mxu0 }
 0x42f   : > { %v6040_v41 = vpop.f32.mrf.mxu0 }
 0x430   : > { %6041 = vmatprep.subr.mxu1 %v6040_v41 }
 0x431   : > { %v2166_v42 = vpop.f32.mrf.mxu0  ;;  %6042 = vmatpush3.msra.mxu1 %v6040_v41 }
 0x432   : > { %6043 = vmatprep.subr.mxu1 %v2166_v42 }
 0x433   : > { %6044 = vmatpush3.msra.mxu1 %v2166_v42 }
 0x434   : > { %6045 = vmatprep.subr.mxu1 %v6037_v39 }
 0x435   : > { %6046 = vmatpush3.msra.mxu1 %v6037_v39  ;;  %v2536_v39 = vld [vmem:[%s6633_s19 + $0x10] sm:$0xff] }
 0x436   : > { %6047 = vmatprep.subr.mxu1 %v2156_v40 }
 0x437   : > { %6048 = vmatpush3.msra.mxu1 %v2156_v40 }
 0x438   : > { %6050 = vmatmul.mubr.msk.f32.vlgmr.msra.gmra.mxu1 %vm7872_vm10, %v2176_v43  ;;  %6052 = vmatprep.subr.mxu1 %v2340_v52  ;;  %v2535_v43 = vld [vmem:[%s6633_s19 + $0x8] sm:$0xff] }
 0x439   : > { %6053 = vmatpush3.msra.mxu1 %v2340_v52 }
 0x43a   : > { %6054 = vmatprep.subr.mxu1 %v2339_v57 }
 0x43b   : > { %6055 = vmatpush3.msra.mxu1 %v2339_v57 }
 0x43c   : > { %6056 = vmatprep.subr.mxu1 %v2338_v59 }
 0x43d   : > { %6057 = vmatpush3.msra.mxu1 %v2338_v59 }
 0x43e   : > { %6058 = vmatprep.subr.mxu1 %v2337_v60 }
 0x43f   : > { %6059 = vmatpush3.msra.mxu1 %v2337_v60 }
 0x440   : > { %6060 = vmatprep.subr.mxu1 %v2336_v61 }
 0x441   : > { %6061 = vmatpush3.msra.mxu1 %v2336_v61 }
 0x442   : > { %6062 = vmatprep.subr.mxu1 %v2335_v63 }
 0x443   : > { %6063 = vmatpush3.msra.mxu1 %v2335_v63 }
 0x444   : > { %6064 = vmatprep.subr.mxu1 %v2334_v8 }
 0x445   : > { %6065 = vmatpush3.msra.mxu1 %v2334_v8  ;;  %v2739_v8 = vld [vmem:[%s6648_s6 + $0x48] sm:$0xff] }
 0x446   : > { %6066 = vmatprep.subr.mxu1 %v2333_v9 }
 0x447   : > { %6067 = vmatpush3.msra.mxu1 %v2333_v9  ;;  %v2738_v9 = vld [vmem:[%s6648_s6 + $0x40] sm:$0xff] }
 0x448   : > { %6068 = vmatprep.subr.mxu1 %v2332_v11 }
 0x449   : > { %6069 = vmatpush3.msra.mxu1 %v2332_v11  ;;  %v2736_v11 = vld [vmem:[%s6648_s6 + $0x30] sm:$0xff] }
 0x44a   : > { %6070 = vmatprep.subr.mxu1 %v2331_v12 }
 0x44b   : > { %6071 = vmatpush3.msra.mxu1 %v2331_v12  ;;  %v2735_v12 = vld [vmem:[%s6648_s6 + $0x28] sm:$0xff] }
 0x44c   : > { %6105 = vmatprep.subr.mxu1 %v6565_v0 }
 0x4f8   : > { %v6051_v46 = vpop.f32.mrf.mxu1 }
 0x4f9   : > { %v7059_v49 = vadd.f32 %v6051_v46, %v5664_v44 }
 0x4fa   : > { %v2257_v51 = vpop.f32.mrf.mxu1 }
 0x4fb   : > { %v2267_v53 = vmax.f32 %v7059_v49, 0.0  ;;  %v7063_v56 = vadd.f32 %v5664_v44, %v2257_v51  ;;  %v2534_v44 = vld [vmem:[%s6633_s19] sm:$0xff] }
 0x4fc   : > { %v4278_v49 = vld [vmem:[%s7956_s3] sm:$0xff] }
 0x4fd   : > { %v2266_v58 = vmax.f32 %v7063_v56, 0.0  ;;  %2270 = vst.msk [vmem:[#allocation2 + $0xa] sm:$0xff] %vm2268_vm11, %v2267_v53 }
 0x4ff   : > { %2269 = vst.msk [vmem:[#allocation2 + $0x2] sm:$0xff] %vm2268_vm11, %v2266_v58 }
 0x504   : > { %v2291_v62 = vld [vmem:[#allocation2 + $0xa] sm:$0xff] }
 0x505   : > { %2296 = vrot.lane.b32.xlu1 %v2291_v62, %s7881_s23  ;;  %v2304_v3 = vld [vmem:[#allocation2 + $0xb] sm:$0xff]  ;;  %v2617_v62 = vld [vmem:[%s6643_s30] sm:$0xf] }
 0x506   : > { %v2303_v1 = vld [vmem:[#allocation2 + $0x3] sm:$0xff]  ;;  %v2317_v13 = vld [vmem:[#allocation2 + $0xc] sm:$0xff] }
 0x507   : > { %v2277_v2 = vld [vmem:[#allocation2 + $0x1] sm:$0xff]  ;;  %v2278_v5 = vld [vmem:[#allocation2 + $0x9] sm:$0xff]  ;;  %4467 = vst.msk [vmem:[#allocation2 + $0x12] sm:$0x3] %vm2701_vm6, %v6565_v0 }
 0x508   : > { %v2316_v4 = vld [vmem:[#allocation2 + $0x4] sm:$0xff]  ;;  %2281 = vrot.lane.b32.xlu0 %v2277_v2, %s7877_s18  ;;  %v2745_v2 = vld [vmem:[%s6648_s6 + $0x78] sm:$0xff] }
 0x509   : > { %v2273_v6 = vld [vmem:[#allocation2] sm:$0xff]  ;;  %v2274_v7 = vld [vmem:[#allocation2 + $0x8] sm:$0xff]  ;;  %2309 = vrot.lane.b32.xlu1 %v2304_v3, %s6570_s26  ;;  %v2744_v3 = vld [vmem:[%s6648_s6 + $0x70] sm:$0xff] }
 0x50a   : > { %2275 = vst.msk [vmem:[#allocation3] sm:$0xff] %vm2268_vm11, %v2273_v6  ;;  %2276 = vst.msk [vmem:[#allocation3 + $0x10] sm:$0xff] %vm2268_vm11, %v2274_v7  ;;  %v2290_v10 = vld [vmem:[#allocation2 + $0x2] sm:$0xff]  ;;  %v2741_v6 = vld [vmem:[%s6648_s6 + $0x58] sm:$0xff] }
 0x50b   : > { %2506 = vst.msk [vmem:[#allocation2 + $0xa] sm:$0x3] %vm2271_vm9, %v6565_v0  ;;  %v2740_v7 = vld [vmem:[%s6648_s6 + $0x50] sm:$0xff]  ;;  %vm2717_vm9 = vcmask 781824  }
 0x50c   : > { %2294 = vrot.lane.b32.xlu0 %v2290_v10, %s7881_s23  ;;  %v2737_v10 = vld [vmem:[%s6648_s6 + $0x38] sm:$0xff] }
 0x50d   : > { %2283 = vrot.lane.b32.xlu1 %v2278_v5, %s7877_s18  ;;  %v2742_v5 = vld [vmem:[%s6648_s6 + $0x60] sm:$0xff] }
 0x510   : > { %2307 = vrot.lane.b32.xlu0 %v2303_v1, %s6570_s26 }
 0x511   : > { %2322 = vrot.lane.b32.xlu1 %v2317_v13, %s7879_s28  ;;  %v2734_v13 = vld [vmem:[%s6648_s6 + $0x20] sm:$0xff] }
 0x514   : > { %2320 = vrot.lane.b32.xlu0 %v2316_v4, %s7879_s28  ;;  %v2743_v4 = vld [vmem:[%s6648_s6 + $0x68] sm:$0xff] }
 0x577   : > { %v2297_v14 = vpop.permute.xlu1 %2296 }
 0x57a   : > { %v2282_v15 = vpop.permute.xlu0 %2281 }
 0x57b   : > { %2288 = vst.msk [vmem:[#allocation3] sm:$0xff] %vm7873_vm12, %v2282_v15  ;;  %v2310_v16 = vpop.permute.xlu1 %2309  ;;  %v2732_v15 = vld [vmem:[%s6648_s6 + $0x10] sm:$0xff] }
 0x57e   : > { %v2295_v17 = vpop.permute.xlu0 %2294 }
 0x57f   : > { %2301 = vst.msk [vmem:[#allocation3] sm:$0xff] %vm7869_vm13, %v2295_v17  ;;  %v2284_v18 = vpop.permute.xlu1 %2283 }
 0x580   : > { %2289 = vst.msk [vmem:[#allocation3 + $0x10] sm:$0xff] %vm7873_vm12, %v2284_v18  ;;  %v2731_v18 = vld [vmem:[%s6648_s6 + $0x8] sm:$0xff] }
 0x581   : > { %2302 = vst.msk [vmem:[#allocation3 + $0x10] sm:$0xff] %vm7869_vm13, %v2297_v14  ;;  %v2733_v14 = vld [vmem:[%s6648_s6 + $0x18] sm:$0xff] }
 0x582   : > { %v2308_v19 = vpop.permute.xlu0 %2307  ;;  %2315 = vst.msk [vmem:[#allocation3 + $0x10] sm:$0xff] %vm2313_vm14, %v2310_v16  ;;  %v5672_v16 = vld [vmem:[%s6638_s24] ss:$0 sm:$0xff] }
 0x583   : > { %2314 = vst.msk [vmem:[#allocation3] sm:$0xff] %vm2313_vm14, %v2308_v19  ;;  %v2323_v20 = vpop.permute.xlu1 %2322 }
 0x584   : > { %2328 = vst.msk [vmem:[#allocation3 + $0x10] sm:$0xff] %vm2326_vm15, %v2323_v20  ;;  %v2730_v20 = vld [vmem:[%s6648_s6] sm:$0xff] }
 0x586   : > { %v2321_v21 = vpop.permute.xlu0 %2320 }
 0x587   : > { %2327 = vst.msk [vmem:[#allocation3] sm:$0xff] %vm2326_vm15, %v2321_v21 }
 0x58b   : > { %v2330_v23 = vld [vmem:[#allocation3 + $0x10] sm:$0xff] }
 0x58e   : > { %v2329_v22 = vld [vmem:[#allocation3] sm:$0xff] }
 0x58f   : > { %6072 = vmatprep.mubr.msk.f32.mxu1 %vm2341_vm2, %v2329_v22 }
 0x590   : > { %6073 = vmatmul.mubr.msk.f32.vlgmr.msra.gmra.mxu1 %vm2341_vm2, %v2330_v23  ;;  %v2749_v23 = vld [vmem:[%s6648_s6 + $0x98] sm:$0xff] }
 0x591   : > { %6107 = vmatprep.mubr.msk.f32.mxu1 %vm6572_vm5, %v6565_v0 }
 0x650   : > { %v6074_v24 = vpop.f32.mrf.mxu1 }
 0x651   : > { %6076 = vmatpush3.msra.mxu0 %v6074_v24  ;;  %v2748_v24 = vld [vmem:[%s6648_s6 + $0x90] sm:$0xff] }
 0x652   : > { %v2414_v26 = vpop.f32.mrf.mxu1  ;;  %6077 = vmatprep.subr.mxu0 %v6565_v0 }
 0x653   : > { %6078 = vmatpush3.msra.mxu0 %v2414_v26 }
 0x654   : > { %6080 = vmatmul.mubr.msk.f32.vlgmr.msra.gmra.mxu0 %vm2268_vm11, %v2423_v25  ;;  %6082 = vmatprep.subr.mxu0 %v6565_v0  ;;  %v2747_v25 = vld [vmem:[%s6648_s6 + $0x88] sm:$0xff] }
 0x655   : > { %6102 = vmatprep.mubr.msk.f32.mxu0 %vm6572_vm5, %v6565_v0  ;;  %6083 = vmatpush3.msra.mxu0 %v2543_v27 }
 0x656   : > { %6084 = vmatprep.subr.mxu0 %v6565_v0 }
 0x657   : > { %6085 = vmatpush3.msra.mxu0 %v2542_v28 }
 0x658   : > { %6086 = vmatprep.subr.mxu0 %v6565_v0 }
 0x659   : > { %6087 = vmatpush3.msra.mxu0 %v2541_v29 }
 0x65a   : > { %6088 = vmatprep.subr.mxu0 %v6565_v0 }
 0x65b   : > { %6089 = vmatpush3.msra.mxu0 %v2540_v33 }
 0x65c   : > { %6090 = vmatprep.subr.mxu0 %v6565_v0 }
 0x65d   : > { %6091 = vmatpush3.msra.mxu0 %v2539_v34 }
 0x65e   : > { %6092 = vmatprep.subr.mxu0 %v6565_v0 }
 0x65f   : > { %6093 = vmatpush3.msra.mxu0 %v2538_v37 }
 0x660   : > { %6094 = vmatprep.subr.mxu0 %v6565_v0 }
 0x661   : > { %6095 = vmatpush3.msra.mxu0 %v2537_v38 }
 0x662   : > { %6096 = vmatprep.subr.mxu0 %v6565_v0 }
 0x663   : > { %6097 = vmatpush3.msra.mxu0 %v2536_v39  ;;  %v2912_v39 = vld [vmem:[#allocation2] sm:$0x3] }
 0x664   : > { %6098 = vmatprep.subr.mxu0 %v6565_v0 }
 0x665   : > { %6099 = vmatpush3.msra.mxu0 %v2535_v43 }
 0x666   : > { %6100 = vmatprep.subr.mxu0 %v6565_v0 }
 0x667   : > { %6101 = vmatpush3.msra.mxu0 %v2534_v44  ;;  %v2954_v44 = vld [vmem:[%s7930_s11 + $0x78] sm:$0xff] }
 0x668   : > { %6110 = vmatprep.subr.mxu0 %v6565_v0 }
 0x714   : > { %v2500_v31 = vpop.f32.mrf.mxu0 }
 0x715   : > { %v7121_v32 = vadd.f32 %v5669_v30, %v2500_v31  ;;  %v2746_v31 = vld [vmem:[%s6648_s6 + $0x80] sm:$0xff] }
 0x716   : > { %v6081_v35 = vpop.f32.mrf.mxu0 }
 0x717   : > { %v2504_v36 = vmax.f32 %v7121_v32, 0.0 }
 0x719   : > { %2505 = vst.msk [vmem:[#allocation2 + $0x2] sm:$0xff] %vm2268_vm11, %v2504_v36 }
 0x720   : > { %v2515_v40 = vld [vmem:[#allocation2 + $0x2] sm:$0xff] }
 0x721   : > { %v2509_v41 = vld [vmem:[#allocation2 + $0x1] sm:$0xff]  ;;  %2517 = vrot.lane.b32.xlu1 %v2515_v40, %s7881_s23 }
 0x722   : > { %2511 = vrot.lane.b32.xlu0 %v2509_v41, %s7877_s18  ;;  %v2507_v42 = vld [vmem:[#allocation2] sm:$0xff]  ;;  %s7943_s18 = sld [smem:[#allocation18_spill]] }
 0x723   : > { %2508 = vst.msk [vmem:[#allocation3] sm:$0xff] %vm2268_vm11, %v2507_v42  ;;  %v2527_v46 = vld [vmem:[#allocation2 + $0x4] sm:$0xff]  ;;  %v2823_v41 = vld [vmem:[%s7929_s2] sm:$0x3]  ;;  %s7933_s2 = sld [smem:[#allocation11_spill]] }
 0x724   : > { %v2521_v51 = vld [vmem:[#allocation2 + $0x3] sm:$0xff] }
 0x725   : > { %2529 = vrot.lane.b32.xlu1 %v2527_v46, %s7879_s28  ;;  %2702 = vst.msk [vmem:[#allocation2 + $0x6] sm:$0x3] %vm2701_vm6, %v6565_v0  ;;  %4094 = vst.msk [vmem:[#allocation2 + $0xa] sm:$0x3] %vm2701_vm6, %v6565_v0  ;;  %v2953_v46 = vld [vmem:[%s7930_s11 + $0x70] sm:$0xff] }
 0x726   : > { %2523 = vrot.lane.b32.xlu0 %v2521_v51, %s6570_s26  ;;  %v2952_v51 = vld [vmem:[%s7930_s11 + $0x68] sm:$0xff]  ;;  %s7932_s26 = sld [smem:[#allocation10_spill]] }
 0x793   : > { %v2518_v52 = vpop.permute.xlu1 %2517 }
 0x794   : > { %v2512_v57 = vpop.permute.xlu0 %2511 }
 0x795   : > { %2514 = vst.msk [vmem:[#allocation3] sm:$0xff] %vm7873_vm12, %v2512_v57  ;;  %v2950_v57 = vld [vmem:[%s7930_s11 + $0x58] sm:$0xff]  ;;  %vm3034_vm12 = vcmask 15360  }
 0x796   : > { %2520 = vst.msk [vmem:[#allocation3] sm:$0xff] %vm7869_vm13, %v2518_v52  ;;  %v2951_v52 = vld [vmem:[%s7930_s11 + $0x60] sm:$0xff]  ;;  %vm2919_vm13 = vcmask 517376  }
 0x797   : > { %v2530_v59 = vpop.permute.xlu1 %2529 }
 0x798   : > { %v2524_v60 = vpop.permute.xlu0 %2523 }
 0x799   : > { %2526 = vst.msk [vmem:[#allocation3] sm:$0xff] %vm2313_vm14, %v2524_v60  ;;  %vm2724_vm14 = vcmask 1044224   ;;  %v2948_v60 = vld [vmem:[%s7930_s11 + $0x48] sm:$0xff] }
 0x79a   : > { %2532 = vst.msk [vmem:[#allocation3] sm:$0xff] %vm2326_vm15, %v2530_v59  ;;  %vm2835_vm15 = vcmask 1043456   ;;  %v2949_v59 = vld [vmem:[%s7930_s11 + $0x50] sm:$0xff] }
 0x7a1   : > { %v2533_v61 = vld [vmem:[#allocation3] sm:$0xff] }
 0x7a2   : > { %6103 = vmatmul.mubr.msk.f32.vlgmr.msra.gmra.mxu0 %vm2341_vm2, %v2533_v61  ;;  %vm2831_vm2 = vcmask 31744   ;;  %v2947_v61 = vld [vmem:[%s7930_s11 + $0x40] sm:$0xff] }
 0x7a3   : > { %6112 = vmatprep.mubr.msk.f32.mxu0 %vm6572_vm5, %v6565_v0 }
 0x862   : > { %v2613_v63 = vpop.f32.mrf.mxu0 }
 0x863   : > { %6106 = vmatpush3.msra.mxu1 %v2613_v63  ;;  %v2945_v63 = vld [vmem:[%s7930_s11 + $0x30] sm:$0xff] }
 0x864   : > { %v6104_v1 = vpop.f32.mrf.mxu0  ;;  %6108 = vmatmul.mubr.msk.f32.vlgmr.msra.gmra.mxu1 %vm7871_vm3, %v2617_v62  ;;  %2753 = vmatprep.subr.mxu1 %v6565_v0  ;;  %v2946_v62 = vld [vmem:[%s7930_s11 + $0x38] sm:$0xff]  ;;  %vm2933_vm3 = vcmask 1042176  }
 0x865   : > { %2754 = vmatpush1.msra.mxu1 %v2745_v2  ;;  %v2944_v1 = vld [vmem:[%s7930_s11 + $0x28] sm:$0xff]  ;;  %v2943_v2 = vld [vmem:[%s7930_s11 + $0x20] sm:$0xff] }
 0x866   : > { %2755 = vmatprep.subr.mxu1 %v6565_v0 }
 0x867   : > { %2756 = vmatpush1.msra.mxu1 %v2744_v3  ;;  %v2942_v3 = vld [vmem:[%s7930_s11 + $0x18] sm:$0xff] }
 0x868   : > { %2757 = vmatprep.subr.mxu1 %v6565_v0 }
 0x869   : > { %2758 = vmatpush1.msra.mxu1 %v2743_v4  ;;  %v2941_v4 = vld [vmem:[%s7930_s11 + $0x10] sm:$0xff] }
 0x86a   : > { %2759 = vmatprep.subr.mxu1 %v6565_v0 }
 0x86b   : > { %2760 = vmatpush1.msra.mxu1 %v2742_v5  ;;  %v5675_v5 = vld [vmem:[%s7931_s22] ss:$0 sm:$0xff]  ;;  %s7934_s22 = sld [smem:[#allocation12_spill]] }
 0x86c   : > { %2761 = vmatprep.subr.mxu1 %v6565_v0 }
 0x86d   : > { %2762 = vmatpush1.msra.mxu1 %v2741_v6 }
 0x86e   : > { %2763 = vmatprep.subr.mxu1 %v6565_v0 }
 0x86f   : > { %2764 = vmatpush1.msra.mxu1 %v2740_v7  ;;  %v2940_v7 = vld [vmem:[%s7930_s11 + $0x8] sm:$0xff] }
 0x870   : > { %2765 = vmatprep.subr.mxu1 %v6565_v0 }
 0x871   : > { %2766 = vmatpush1.msra.mxu1 %v2739_v8 }
 0x872   : > { %2767 = vmatprep.subr.mxu1 %v6565_v0 }
 0x873   : > { %2768 = vmatpush1.msra.mxu1 %v2738_v9  ;;  %v2939_v9 = vld [vmem:[%s7930_s11] sm:$0xff] }
 0x874   : > { %2769 = vmatprep.subr.mxu1 %v6565_v0 }
 0x875   : > { %2770 = vmatpush1.msra.mxu1 %v2737_v10 }
 0x876   : > { %2771 = vmatprep.subr.mxu1 %v6565_v0 }
 0x877   : > { %2772 = vmatpush1.msra.mxu1 %v2736_v11 }
 0x878   : > { %2773 = vmatprep.subr.mxu1 %v6565_v0 }
 0x879   : > { %2774 = vmatpush1.msra.mxu1 %v2735_v12  ;;  %v2958_v12 = vld [vmem:[%s7930_s11 + $0x98] sm:$0xff] }
 0x87a   : > { %2775 = vmatprep.subr.mxu1 %v6565_v0 }
 0x87b   : > { %2776 = vmatpush1.msra.mxu1 %v2734_v13  ;;  %v2957_v13 = vld [vmem:[%s7930_s11 + $0x90] sm:$0xff] }
 0x87c   : > { %2777 = vmatprep.subr.mxu1 %v6565_v0 }
 0x87d   : > { %2778 = vmatpush1.msra.mxu1 %v2733_v14  ;;  %v2956_v14 = vld [vmem:[%s7930_s11 + $0x88] sm:$0xff] }
 0x87e   : > { %2779 = vmatprep.subr.mxu1 %v6565_v0 }
 0x87f   : > { %2780 = vmatpush1.msra.mxu1 %v2732_v15 }
 0x880   : > { %2781 = vmatprep.subr.mxu1 %v6565_v0 }
 0x881   : > { %2782 = vmatpush1.msra.mxu1 %v2731_v18  ;;  %v2955_v18 = vld [vmem:[%s7930_s11 + $0x80] sm:$0xff] }
 0x882   : > { %2783 = vmatprep.subr.mxu1 %v6565_v0 }
 0x883   : > { %2784 = vmatpush1.msra.mxu1 %v2730_v20 }
 0x884   : > { %2809 = vmatprep.subr.mxu1 %v6565_v0 }
 0x885   : > { %2810 = vmatpush2.msra.mxu1 %v2749_v23 }
 0x886   : > { %2811 = vmatprep.subr.mxu1 %v6565_v0 }
 0x887   : > { %2812 = vmatpush2.msra.mxu1 %v2748_v24 }
 0x888   : > { %2813 = vmatprep.subr.mxu1 %v6565_v0 }
 0x889   : > { %2814 = vmatpush2.msra.mxu1 %v2747_v25 }
 0x88a   : > { %2815 = vmatprep.subr.mxu1 %v6565_v0 }
 0x88b   : > { %2816 = vmatpush2.msra.mxu1 %v2746_v31  ;;  %v3144_v31 = vld [vmem:[%s7933_s2 + $0x78] sm:$0xff] }
 0x88c   : > { %6115 = vmatprep.subr.mxu1 %v6565_v0 }
 0x924   : > { %v2694_v17 = vpop.f32.mrf.mxu1 }
 0x925   : > { %v7192_v19 = vadd.f32 %v5672_v16, %v2694_v17 }
 0x926   : > { %v6109_v21 = vpop.f32.mrf.mxu1 }
 0x927   : > { %v2698_v22 = vmax.f32 %v7192_v19, 0.0  ;;  %v3126_v21 = vld [vmem:[#allocation2 + $0x1] sm:$0x1] }
 0x929   : > { %2700 = vst.msk [vmem:[#allocation2 + $0x2] sm:$0xf] %vm2699_vm7, %v2698_v22 }
 0x930   : > { %v2705_v26 = vld [vmem:[#allocation2 + $0x1] sm:$0xf] }
 0x931   : > { %v2712_v27 = vld [vmem:[#allocation2 + $0x2] sm:$0xf]  ;;  %2707 = vrot.lane.b32.xlu0 %v2705_v26, %s7881_s23 }
 0x932   : > { %v2719_v28 = vld [vmem:[#allocation2 + $0x3] sm:$0xf]  ;;  %2714 = vrot.lane.b32.xlu1 %v2712_v27, %s7879_s28 }
 0x933   : > { %v2726_v29 = vld [vmem:[#allocation2 + $0x4] sm:$0xf]  ;;  %v2703_v30 = vld [vmem:[#allocation2] sm:$0xf] }
 0x934   : > { %2727 = vst.msk [vmem:[#allocation3 + $0x8] sm:$0xf] %vm2699_vm7, %v2726_v29  ;;  %2704 = vst.msk [vmem:[#allocation3] sm:$0xf] %vm2699_vm7, %v2703_v30 }
 0x935   : > { %2911 = vst.msk [vmem:[#allocation2 + $0x4] sm:$0x3] %vm2701_vm6, %v6565_v0  ;;  %2721 = vrot.lane.b32.xlu0 %v2719_v28, %s6573_s1  ;;  %v3032_v28 = vld [vmem:[%s7932_s26] sm:$0x1]  ;;  %s7936_s26 = sld [smem:[#allocation14_spill]] }
 0x93b   : > { %v2729_v33 = vld [vmem:[#allocation3 + $0x8] sm:$0xf] }
 0x93c   : > { %v2935_v34 = vld [vmem:[#allocation2 + $0x4] sm:$0x3]  ;;  %5674 = vmatprep.mubr.msk.f32.mxu1 %vm7872_vm10, %v2729_v33  ;;  %v3143_v33 = vld [vmem:[%s7933_s2 + $0x70] sm:$0xff] }
 0x93d   : > { %2936 = vst.msk [vmem:[#allocation3 + $0x8] sm:$0x3] %vm2701_vm6, %v2935_v34  ;;  %v3142_v34 = vld [vmem:[%s7933_s2 + $0x68] sm:$0xff] }
 0x944   : > { %v2938_v20 = vld [vmem:[#allocation3 + $0x8] sm:$0x3] }
 0x9a3   : > { %v2708_v35 = vpop.permute.xlu0 %2707 }
 0x9a4   : > { %v2715_v37 = vpop.permute.xlu1 %2714  ;;  %2711 = vst.msk [vmem:[#allocation3] sm:$0xf] %vm2710_vm8, %v2708_v35  ;;  %v3251_v35 = vld [vmem:[%s7934_s22 + $0x78] sm:$0xff] }
 0x9a5   : > { %2718 = vst.msk [vmem:[#allocation3] sm:$0xf] %vm2717_vm9, %v2715_v37  ;;  %vm3115_vm9 = vcmask 517120   ;;  %v3250_v37 = vld [vmem:[%s7934_s22 + $0x70] sm:$0xff] }
 0x9a6   : > { %3727 = vst.msk [vmem:[#allocation2 + $0x6] sm:$0x3] %vm3115_vm9, %v6565_v0 }
 0x9a7   : > { %v2722_v38 = vpop.permute.xlu0 %2721 }
 0x9a8   : > { %2725 = vst.msk [vmem:[#allocation3] sm:$0xf] %vm2724_vm14, %v2722_v38  ;;  %vm3113_vm14 = vcmask 516096   ;;  %v3141_v38 = vld [vmem:[%s7933_s2 + $0x60] sm:$0xff] }
 0x9a9   : > { %3127 = vst.msk [vmem:[#allocation3 + $0x8] sm:$0x1] %vm3113_vm14, %v3126_v21  ;;  %v3148_v21 = vld [vmem:[%s7933_s2 + $0x98] sm:$0xff] }
 0x9af   : > { %v2728_v40 = vld [vmem:[#allocation3] sm:$0xf] }
 0x9b0   : > { %2913 = vst.msk [vmem:[#allocation3] sm:$0x3] %vm2701_vm6, %v2912_v39  ;;  %2818 = vmatmul.mubr.f32.vlgmr.msra.gmra.mxu1 %v2728_v40  ;;  %v3249_v39 = vld [vmem:[%s7934_s22 + $0x68] sm:$0xff]  ;;  %v3140_v40 = vld [vmem:[%s7933_s2 + $0x58] sm:$0xff] }
 0x9b1   : > { %6117 = vmatprep.mubr.msk.f32.mxu1 %vm6572_vm5, %v6565_v0 }
 0xa70   : > { %v2819_v42 = vpop.f32.mrf.mxu1 }
 0xa71   : > { %6111 = vmatpush3.msk.msra.mxu0 %vm2835_vm15, %v2819_v42  ;;  %v3139_v42 = vld [vmem:[%s7933_s2 + $0x50] sm:$0xff] }
 0xa72   : > { %v2821_v43 = vpop.f32.mrf.mxu1  ;;  %6113 = vmatmul.mubr.msk.f32.vlgmr.msra.gmra.mxu0 %vm2831_vm2, %v2823_v41  ;;  %2962 = vmatprep.subr.mxu0 %v6565_v0  ;;  %v3248_v41 = vld [vmem:[%s7934_s22 + $0x60] sm:$0xff] }
 0xa73   : > { %2963 = vmatpush1.msra.mxu0 %v2954_v44  ;;  %5678 = vmatprep.mubr.msk.f32.mxu0 %vm7872_vm10, %v2938_v20  ;;  %vm3038_vm10 = vcmask 1041408   ;;  %v3247_v43 = vld [vmem:[%s7934_s22 + $0x58] sm:$0xff]  ;;  %v3138_v44 = vld [vmem:[%s7933_s2 + $0x48] sm:$0xff] }
 0xa74   : > { %2964 = vmatprep.subr.mxu0 %v6565_v0 }
 0xa75   : > { %2965 = vmatpush1.msra.mxu0 %v2953_v46  ;;  %v3246_v46 = vld [vmem:[%s7934_s22 + $0x50] sm:$0xff] }
 0xa76   : > { %2966 = vmatprep.subr.mxu0 %v6565_v0 }
 0xa77   : > { %2967 = vmatpush1.msra.mxu0 %v2952_v51  ;;  %v3137_v51 = vld [vmem:[%s7933_s2 + $0x40] sm:$0xff] }
 0xa78   : > { %2968 = vmatprep.subr.mxu0 %v6565_v0 }
 0xa79   : > { %2969 = vmatpush1.msra.mxu0 %v2951_v52  ;;  %v3245_v52 = vld [vmem:[%s7934_s22 + $0x48] sm:$0xff] }
 0xa7a   : > { %2970 = vmatprep.subr.mxu0 %v6565_v0 }
 0xa7b   : > { %2971 = vmatpush1.msra.mxu0 %v2950_v57  ;;  %v3136_v57 = vld [vmem:[%s7933_s2 + $0x38] sm:$0xff] }
 0xa7c   : > { %2972 = vmatprep.subr.mxu0 %v6565_v0 }
 0xa7d   : > { %2973 = vmatpush1.msra.mxu0 %v2949_v59  ;;  %v3244_v59 = vld [vmem:[%s7934_s22 + $0x40] sm:$0xff] }
 0xa7e   : > { %2974 = vmatprep.subr.mxu0 %v6565_v0 }
 0xa7f   : > { %2975 = vmatpush1.msra.mxu0 %v2948_v60  ;;  %v3135_v60 = vld [vmem:[%s7933_s2 + $0x30] sm:$0xff] }
 0xa80   : > { %2976 = vmatprep.subr.mxu0 %v6565_v0 }
 0xa81   : > { %2977 = vmatpush1.msra.mxu0 %v2947_v61  ;;  %v3243_v61 = vld [vmem:[%s7934_s22 + $0x38] sm:$0xff] }
 0xa82   : > { %2978 = vmatprep.subr.mxu0 %v6565_v0 }
 0xa83   : > { %2979 = vmatpush1.msra.mxu0 %v2946_v62  ;;  %v3134_v62 = vld [vmem:[%s7933_s2 + $0x28] sm:$0xff] }
 0xa84   : > { %2980 = vmatprep.subr.mxu0 %v6565_v0 }
 0xa85   : > { %2981 = vmatpush1.msra.mxu0 %v2945_v63  ;;  %v3242_v63 = vld [vmem:[%s7934_s22 + $0x30] sm:$0xff] }
 0xa86   : > { %2982 = vmatprep.subr.mxu0 %v6565_v0 }
 0xa87   : > { %2983 = vmatpush1.msra.mxu0 %v2944_v1  ;;  %v3133_v1 = vld [vmem:[%s7933_s2 + $0x20] sm:$0xff] }
 0xa88   : > { %2984 = vmatprep.subr.mxu0 %v6565_v0 }
 0xa89   : > { %2985 = vmatpush1.msra.mxu0 %v2943_v2  ;;  %v3241_v2 = vld [vmem:[%s7934_s22 + $0x28] sm:$0xff] }
 0xa8a   : > { %2986 = vmatprep.subr.mxu0 %v6565_v0 }
 0xa8b   : > { %2987 = vmatpush1.msra.mxu0 %v2942_v3  ;;  %v3132_v3 = vld [vmem:[%s7933_s2 + $0x18] sm:$0xff] }
 0xa8c   : > { %2988 = vmatprep.subr.mxu0 %v6565_v0 }
 0xa8d   : > { %2989 = vmatpush1.msra.mxu0 %v2941_v4  ;;  %v3240_v4 = vld [vmem:[%s7934_s22 + $0x20] sm:$0xff] }
 0xa8e   : > { %2990 = vmatprep.subr.mxu0 %v6565_v0 }
 0xa8f   : > { %2991 = vmatpush1.msra.mxu0 %v2940_v7  ;;  %v3129_v7 = vld [vmem:[%s7933_s2] sm:$0xff] }
 0xa90   : > { %2992 = vmatprep.subr.mxu0 %v6565_v0 }
 0xa91   : > { %2993 = vmatpush1.msra.mxu0 %v2939_v9  ;;  %v3152_v9 = vld [vmem:[%s7933_s2 + $0xb8] sm:$0xff] }
 0xa92   : > { %3018 = vmatprep.subr.mxu0 %v6565_v0 }
 0xa93   : > { %3019 = vmatpush2.msra.mxu0 %v2958_v12 }
 0xa94   : > { %3020 = vmatprep.subr.mxu0 %v6565_v0 }
 0xa95   : > { %3021 = vmatpush2.msra.mxu0 %v2957_v13 }
 0xa96   : > { %3022 = vmatprep.subr.mxu0 %v6565_v0 }
 0xa97   : > { %3023 = vmatpush2.msra.mxu0 %v2956_v14  ;;  %v3150_v14 = vld [vmem:[%s7933_s2 + $0xa8] sm:$0xff] }
 0xa98   : > { %3024 = vmatprep.subr.mxu0 %v6565_v0 }
 0xa99   : > { %3025 = vmatpush2.msra.mxu0 %v2955_v18  ;;  %v3238_v18 = vld [vmem:[%s7934_s22 + $0x10] sm:$0xff] }
 0xa9a   : > { %6120 = vmatprep.subr.mxu0 %v6565_v0 }
 0xb32   : > { %v2905_v6 = vpop.f32.mrf.mxu0 }
 0xb33   : > { %v7256_v8 = vadd.f32 %v5675_v5, %v2905_v6  ;;  %v3131_v5 = vld [vmem:[%s7933_s2 + $0x10] sm:$0xff]  ;;  %v3130_v6 = vld [vmem:[%s7933_s2 + $0x8] sm:$0xff] }
 0xb34   : > { %v6114_v10 = vpop.f32.mrf.mxu0 }
 0xb35   : > { %v2909_v11 = vmax.f32 %v7256_v8, 0.0  ;;  %v3151_v10 = vld [vmem:[%s7933_s2 + $0xb0] sm:$0xff] }
 0xb37   : > { %2910 = vst.msk [vmem:[#allocation2 + $0x2] sm:$0x3] %vm2701_vm6, %v2909_v11 }
 0xb3e   : > { %v2914_v15 = vld [vmem:[#allocation2 + $0x1] sm:$0x3]  ;;  %v2928_v17 = vld [vmem:[#allocation2 + $0x3] sm:$0x3] }
 0xb3f   : > { %v2921_v16 = vld [vmem:[#allocation2 + $0x2] sm:$0x3]  ;;  %2916 = vrot.lane.b32.xlu1 %v2914_v15, %s7881_s23  ;;  %v3239_v15 = vld [vmem:[%s7934_s22 + $0x18] sm:$0xff] }
 0xb40   : > { %2923 = vrot.lane.b32.xlu0 %v2921_v16, %s7879_s28  ;;  %3116 = vst.msk [vmem:[#allocation2 + $0x3] sm:$0x3] %vm3115_vm9, %v6565_v0  ;;  %v3149_v16 = vld [vmem:[%s7933_s2 + $0xa0] sm:$0xff] }
 0xb41   : > { %3360 = vst.msk [vmem:[#allocation2 + $0x4] sm:$0x3] %vm3115_vm9, %v6565_v0 }
 0xb43   : > { %2930 = vrot.lane.b32.xlu1 %v2928_v17, %s6573_s1  ;;  %s7935_s1 = sld [smem:[#allocation9_spill]] }
 0xb47   : > { %v3117_v26 = vld [vmem:[#allocation2 + $0x3] sm:$0x1] }
 0xb49   : > { %v3033_v12 = vld [vmem:[%s7935_s1] sm:$0x1]  ;;  %s7937_s1 = sld [smem:[#allocation15_spill]] }
 0xbb1   : > { %v2917_v23 = vpop.permute.xlu1 %2916 }
 0xbb2   : > { %v2924_v24 = vpop.permute.xlu0 %2923  ;;  %2920 = vst.msk [vmem:[#allocation3] sm:$0x3] %vm2919_vm13, %v2917_v23  ;;  %v3237_v23 = vld [vmem:[%s7934_s22 + $0x8] sm:$0xff] }
 0xbb3   : > { %2927 = vst.msk [vmem:[#allocation3] sm:$0x3] %vm2926_vm4, %v2924_v24  ;;  %vm3368_vm4 = vcmask 1041920  }
 0xbb5   : > { %v2931_v25 = vpop.permute.xlu1 %2930 }
 0xbb6   : > { %2934 = vst.msk [vmem:[#allocation3] sm:$0x3] %vm2933_vm3, %v2931_v25  ;;  %v3147_v25 = vld [vmem:[%s7933_s2 + $0x90] sm:$0xff]  ;;  %vm3124_vm3 = vcmask 1040896  }
 0xbbd   : > { %v2937_v27 = vld [vmem:[#allocation3] sm:$0x3] }
 0xbbe   : > { %3118 = vst.msk [vmem:[#allocation3] sm:$0x1] %vm3113_vm14, %v3117_v26  ;;  %3027 = vmatmul.mubr.f32.vlgmr.msra.gmra.mxu0 %v2937_v27  ;;  %v3236_v26 = vld [vmem:[%s7934_s22] sm:$0xff]  ;;  %v3146_v27 = vld [vmem:[%s7933_s2 + $0x88] sm:$0xff] }
 0xbbf   : > { %6152 = vmatprep.mubr.msk.f32.mxu0 %vm6572_vm5, %v6565_v0  ;;  %6121 = vmatpush3.msra.mxu0 %v3251_v35 }
 0xbc0   : > { %6122 = vmatprep.subr.mxu0 %v6565_v0 }
 0xbc1   : > { %6123 = vmatpush3.msra.mxu0 %v3250_v37 }
 0xbc2   : > { %6124 = vmatprep.subr.mxu0 %v6565_v0 }
 0xbc3   : > { %6125 = vmatpush3.msra.mxu0 %v3249_v39 }
 0xbc4   : > { %6126 = vmatprep.subr.mxu0 %v6565_v0 }
 0xbc5   : > { %6127 = vmatpush3.msra.mxu0 %v3248_v41 }
 0xbc6   : > { %6128 = vmatprep.subr.mxu0 %v6565_v0 }
 0xbc7   : > { %6129 = vmatpush3.msra.mxu0 %v3247_v43 }
 0xbc8   : > { %6130 = vmatprep.subr.mxu0 %v6565_v0 }
 0xbc9   : > { %6131 = vmatpush3.msra.mxu0 %v3246_v46 }
 0xbca   : > { %6132 = vmatprep.subr.mxu0 %v6565_v0 }
 0xbcb   : > { %6133 = vmatpush3.msra.mxu0 %v3245_v52 }
 0xbcc   : > { %6134 = vmatprep.subr.mxu0 %v6565_v0 }
 0xbcd   : > { %6135 = vmatpush3.msra.mxu0 %v3244_v59 }
 0xbce   : > { %6136 = vmatprep.subr.mxu0 %v6565_v0 }
 0xbcf   : > { %6137 = vmatpush3.msra.mxu0 %v3243_v61 }
 0xbd0   : > { %6138 = vmatprep.subr.mxu0 %v6565_v0 }
 0xbd1   : > { %6139 = vmatpush3.msra.mxu0 %v3242_v63 }
 0xbd2   : > { %6140 = vmatprep.subr.mxu0 %v6565_v0 }
 0xbd3   : > { %6141 = vmatpush3.msra.mxu0 %v3241_v2 }
 0xbd4   : > { %6142 = vmatprep.subr.mxu0 %v6565_v0 }
 0xbd5   : > { %6143 = vmatpush3.msra.mxu0 %v3240_v4 }
 0xbd6   : > { %6144 = vmatprep.subr.mxu0 %v6565_v0 }
 0xbd7   : > { %6145 = vmatpush3.msra.mxu0 %v3239_v15  ;;  %v3483_v15 = vld [vmem:[%s7940_s0 + $0x58] sm:$0xff] }
 0xbd8   : > { %6146 = vmatprep.subr.mxu0 %v6565_v0 }
 0xbd9   : > { %6147 = vmatpush3.msra.mxu0 %v3238_v18 }
 0xbda   : > { %6148 = vmatprep.subr.mxu0 %v6565_v0 }
 0xbdb   : > { %6149 = vmatpush3.msra.mxu0 %v3237_v23  ;;  %v3480_v23 = vld [vmem:[%s7940_s0 + $0x40] sm:$0xff] }
 0xbdc   : > { %6150 = vmatprep.subr.mxu0 %v6565_v0 }
 0xbdd   : > { %6151 = vmatpush3.msra.mxu0 %v3236_v26 }
 0xbde   : > { %3401 = vmatprep.subr.mxu0 %v6565_v0 }
 0xc7e   : > { %v3028_v29 = vpop.f32.mrf.mxu0 }
 0xc7f   : > { %6116 = vmatpush3.msk.msra.mxu1 %vm3038_vm10, %v3028_v29  ;;  %v3322_v29 = vld [vmem:[%s7936_s26] sm:$0x3]  ;;  %s7938_s26 = sld [smem:[#allocation13_spill]] }
 0xc80   : > { %v3030_v30 = vpop.f32.mrf.mxu0  ;;  %6118 = vmatmul.mubr.msk.f32.vlgmr.msra.gmra.mxu1 %vm3034_vm12, %v3032_v28  ;;  %3165 = vmatprep.subr.mxu1 %v6565_v0  ;;  %v3145_v28 = vld [vmem:[%s7933_s2 + $0x80] sm:$0xff]  ;;  %s7951_s2 = sld [smem:[#allocation27_spill]] }
 0xc81   : > { %3166 = vmatpush1.msra.mxu1 %v3144_v31  ;;  %v6574_v31 = vmov 0  }
 0xc82   : > { %3167 = vmatprep.subr.mxu1 %v6565_v0  ;;  %6507 = vset.pattern.permute.xlu0 %v6574_v31 }
 0xc83   : > { %3168 = vmatpush1.msra.mxu1 %v3143_v33  ;;  %6506 = vset.pattern.permute.xlu1 %v6574_v31  ;;  %v3333_v33 = vld [vmem:[%s7937_s1] sm:$0x3]  ;;  %s7939_s1 = sld [smem:[#allocation16_spill]] }
 0xc84   : > { %3169 = vmatprep.subr.mxu1 %v6565_v0  ;;  %3325 = vperm.xlu1 %6506, %v3322_v29   ;;  %v3477_v29 = vld [vmem:[%s7940_s0 + $0x28] sm:$0xff]  ;;  %v3476_v31 = vld [vmem:[%s7940_s0 + $0x20] sm:$0xff] }
 0xc85   : > { %3170 = vmatpush1.msra.mxu1 %v3142_v34  ;;  %v3154_v34 = vlaneseq }
 0xc86   : > { %3171 = vmatprep.subr.mxu1 %v6565_v0 }
 0xc87   : > { %3172 = vmatpush1.msra.mxu1 %v3141_v38  ;;  %v3155_v37 = vshrl.u32 %v3154_v34, 7 }
 0xc88   : > { %3173 = vmatprep.subr.mxu1 %v6565_v0 }
 0xc89   : > { %3174 = vmatpush1.msra.mxu1 %v3140_v40  ;;  %v3160_v38 = vsub.s32 1, %v3155_v37  ;;  %v3156_v39 = vsub.s32 0, %v3155_v37  ;;  %v3388_v4 = vld [vmem:[%s7939_s1 + $0x70] sm:$0xff]  ;;  %v3382_v18 = vld [vmem:[%s7939_s1 + $0x40] sm:$0xff]  ;;  %v3379_v26 = vld [vmem:[%s7939_s1 + $0x28] sm:$0xff] }
 0xc8a   : > { %3175 = vmatprep.subr.mxu1 %v6565_v0  ;;  %v3375_v34 = vld [vmem:[%s7939_s1 + $0x8] sm:$0xff]  ;;  %v3397_v37 = vld [vmem:[%s7939_s1 + $0xb8] sm:$0xff] }
 0xc8b   : > { %3176 = vmatpush1.msra.mxu1 %v3139_v42 }
 0xc8c   : > { %3177 = vmatprep.subr.mxu1 %v6565_v0 }
 0xc8d   : > { %3178 = vmatpush1.msra.mxu1 %v3138_v44 }
 0xc8e   : > { %3179 = vmatprep.subr.mxu1 %v6565_v0 }
 0xc8f   : > { %3180 = vmatpush1.msra.mxu1 %v3137_v51 }
 0xc90   : > { %3181 = vmatprep.subr.mxu1 %v6565_v0 }
 0xc91   : > { %3182 = vmatpush1.msra.mxu1 %v3136_v57 }
 0xc92   : > { %3183 = vmatprep.subr.mxu1 %v6565_v0 }
 0xc93   : > { %3184 = vmatpush1.msra.mxu1 %v3135_v60 }
 0xc94   : > { %3185 = vmatprep.subr.mxu1 %v6565_v0 }
 0xc95   : > { %3186 = vmatpush1.msra.mxu1 %v3134_v62  ;;  %v5682_v62 = vld [vmem:[%s7938_s26] ss:$0 sm:$0xff]  ;;  %s7941_s26 = sld [smem:[#allocation20_spill]] }
 0xc96   : > { %3187 = vmatprep.subr.mxu1 %v6565_v0 }
 0xc97   : > { %3188 = vmatpush1.msra.mxu1 %v3133_v1 }
 0xc98   : > { %3189 = vmatprep.subr.mxu1 %v6565_v0 }
 0xc99   : > { %3190 = vmatpush1.msra.mxu1 %v3132_v3  ;;  %v3389_v3 = vld [vmem:[%s7939_s1 + $0x78] sm:$0xff] }
 0xc9a   : > { %3191 = vmatprep.subr.mxu1 %v6565_v0 }
 0xc9b   : > { %3192 = vmatpush1.msra.mxu1 %v3131_v5  ;;  %v3387_v5 = vld [vmem:[%s7939_s1 + $0x68] sm:$0xff] }
 0xc9c   : > { %3193 = vmatprep.subr.mxu1 %v6565_v0 }
 0xc9d   : > { %3194 = vmatpush1.msra.mxu1 %v3130_v6  ;;  %v3487_v6 = vld [vmem:[%s7940_s0 + $0x78] sm:$0xff] }
 0xc9e   : > { %3195 = vmatprep.subr.mxu1 %v6565_v0 }
 0xc9f   : > { %3196 = vmatpush1.msra.mxu1 %v3129_v7  ;;  %v3486_v7 = vld [vmem:[%s7940_s0 + $0x70] sm:$0xff] }
 0xca0   : > { %3213 = vmatprep.subr.mxu1 %v6565_v0 }
 0xca1   : > { %3214 = vmatpush2.msra.mxu1 %v3152_v9  ;;  %v3386_v9 = vld [vmem:[%s7939_s1 + $0x60] sm:$0xff] }
 0xca2   : > { %3215 = vmatprep.subr.mxu1 %v6565_v0 }
 0xca3   : > { %3216 = vmatpush2.msra.mxu1 %v3151_v10  ;;  %v3485_v10 = vld [vmem:[%s7940_s0 + $0x68] sm:$0xff] }
 0xca4   : > { %3217 = vmatprep.subr.mxu1 %v6565_v0 }
 0xca5   : > { %3218 = vmatpush2.msra.mxu1 %v3150_v14  ;;  %v3384_v14 = vld [vmem:[%s7939_s1 + $0x50] sm:$0xff] }
 0xca6   : > { %3219 = vmatprep.subr.mxu1 %v6565_v0 }
 0xca7   : > { %3220 = vmatpush2.msra.mxu1 %v3149_v16  ;;  %v3383_v16 = vld [vmem:[%s7939_s1 + $0x48] sm:$0xff] }
 0xca8   : > { %3221 = vmatprep.subr.mxu1 %v6565_v0 }
 0xca9   : > { %3222 = vmatpush2.msra.mxu1 %v3148_v21  ;;  %v3381_v21 = vld [vmem:[%s7939_s1 + $0x38] sm:$0xff] }
 0xcaa   : > { %3223 = vmatprep.subr.mxu1 %v6565_v0 }
 0xcab   : > { %3224 = vmatpush2.msra.mxu1 %v3147_v25  ;;  %v3479_v25 = vld [vmem:[%s7940_s0 + $0x38] sm:$0xff] }
 0xcac   : > { %3225 = vmatprep.subr.mxu1 %v6565_v0 }
 0xcad   : > { %3226 = vmatpush2.msra.mxu1 %v3146_v27  ;;  %v3478_v27 = vld [vmem:[%s7940_s0 + $0x30] sm:$0xff] }
 0xcae   : > { %3227 = vmatprep.subr.mxu1 %v6565_v0 }
 0xcaf   : > { %3228 = vmatpush2.msra.mxu1 %v3145_v28  ;;  %v3378_v28 = vld [vmem:[%s7939_s1 + $0x20] sm:$0xff] }
 0xcb0   : > { %6155 = vmatprep.subr.mxu1 %v6565_v0 }
 0xcff   : > { %v3326_v52 = vpop.permute.xlu1 %3325 }
 0xd40   : > { %v3108_v13 = vpop.f32.mrf.mxu1 }
 0xd41   : > { %v3109_v17 = vadd.f32 %v3108_v13, %v3033_v12  ;;  %v3385_v12 = vld [vmem:[%s7939_s1 + $0x58] sm:$0xff]  ;;  %v3484_v13 = vld [vmem:[%s7940_s0 + $0x60] sm:$0xff] }
 0xd42   : > { %v6119_v20 = vpop.f32.mrf.mxu1 }
 0xd43   : > { %v3112_v24 = vmax.f32 %v3109_v17, 0.0  ;;  %v3482_v17 = vld [vmem:[%s7940_s0 + $0x50] sm:$0xff]  ;;  %v3481_v20 = vld [vmem:[%s7940_s0 + $0x48] sm:$0xff] }
 0xd45   : > { %3114 = vst.msk [vmem:[#allocation2 + $0x2] sm:$0x1] %vm3113_vm14, %v3112_v24  ;;  %v3380_v24 = vld [vmem:[%s7939_s1 + $0x30] sm:$0xff] }
 0xd4c   : > { %v3119_v30 = vld [vmem:[#allocation2 + $0x2] sm:$0x1] }
 0xd4d   : > { %3121 = vrot.lane.b32.xlu0 %v3119_v30, %s7879_s28  ;;  %3354 = vst.msk [vmem:[#allocation2 + $0x2] sm:$0x3] %vm2701_vm6, %v2909_v11  ;;  %v3377_v30 = vld [vmem:[%s7939_s1 + $0x18] sm:$0xff]  ;;  %vm4124_vm6 = vcmask 785408  }
 0xd51   : > { %3336 = vperm.xlu0 %6507, %v3333_v33   ;;  %v3376_v33 = vld [vmem:[%s7939_s1 + $0x10] sm:$0xff] }
 0xdbf   : > { %v3122_v35 = vpop.permute.xlu0 %3121 }
 0xdc0   : > { %3125 = vst.msk [vmem:[#allocation3] sm:$0x1] %vm3124_vm3, %v3122_v35  ;;  %v3374_v35 = vld [vmem:[%s7939_s1] sm:$0xff] }
 0xdc7   : > { %v3235_v40 = vld [vmem:[#allocation3] ss:$0 sm:$0xff] }
 0xdc8   : > { %v3128_v41 = vld [vmem:[#allocation3] ss:$8 sm:$0x3]  ;;  %6153 = vmatmul.mubr.f32.vlgmr.msra.gmra.mxu0 %v3235_v40  ;;  %v3394_v40 = vld [vmem:[%s7939_s1 + $0xa0] sm:$0xff] }
 0xdc9   : > { %v3161_v42 = vrot.slane %v3128_v41, %v3160_v38  ;;  %v3157_v8 = vrot.slane %v3128_v41, %v3156_v39  ;;  %3402 = vmatpush1.msra.mxu0 %v3389_v3  ;;  %v3396_v38 = vld [vmem:[%s7939_s1 + $0xb0] sm:$0xff]  ;;  %v3393_v41 = vld [vmem:[%s7939_s1 + $0x98] sm:$0xff] }
 0xdca   : > { %3403 = vmatprep.subr.mxu0 %v6565_v0 }
 0xdcb   : > { %5681 = vmatprep.mubr.msk.f32.mxu1 %vm1463_vm0, %v3161_v42  ;;  %3404 = vmatpush1.msra.mxu0 %v3388_v4  ;;  %v3475_v42 = vld [vmem:[%s7940_s0 + $0x18] sm:$0xff] }
 0xdcc   : > { %3230 = vmatmul.mubr.f32.vlgmr.msra.gmra.mxu1 %v3157_v8  ;;  %v3337_v46 = vpop.permute.xlu0 %3336  ;;  %3405 = vmatprep.subr.mxu0 %v6565_v0  ;;  %v3392_v8 = vld [vmem:[%s7939_s1 + $0x90] sm:$0xff] }
 0xdcd   : > { %6187 = vmatprep.mubr.msk.f32.mxu1 %vm6572_vm5, %v6565_v0  ;;  %6156 = vmatpush3.msra.mxu1 %v3487_v6 }
 0xdce   : > { %3406 = vmatpush1.msra.mxu0 %v3387_v5  ;;  %6157 = vmatprep.subr.mxu1 %v6565_v0  ;;  %v3558_v5 = vld [vmem:[%s7942_s16] sm:$0xf]  ;;  %s7946_s16 = smov 64  }
 0xdcf   : > { %3407 = vmatprep.subr.mxu0 %v6565_v0  ;;  %6158 = vmatpush3.msra.mxu1 %v3486_v7 }
 0xdd0   : > { %3408 = vmatpush1.msra.mxu0 %v3386_v9  ;;  %6159 = vmatprep.subr.mxu1 %v6565_v0 }
 0xdd1   : > { %3409 = vmatprep.subr.mxu0 %v6565_v0  ;;  %6160 = vmatpush3.msra.mxu1 %v3485_v10  ;;  %v5688_v10 = vld [vmem:[%s7943_s18] ss:$0 sm:$0xff]  ;;  %s7947_s18 = sld [smem:[#allocation25_spill]] }
 0xdd2   : > { %3410 = vmatpush1.msra.mxu0 %v3385_v12  ;;  %6161 = vmatprep.subr.mxu1 %v6565_v0 }
 0xdd3   : > { %3411 = vmatprep.subr.mxu0 %v6565_v0  ;;  %6162 = vmatpush3.msra.mxu1 %v3484_v13 }
 0xdd4   : > { %3412 = vmatpush1.msra.mxu0 %v3384_v14  ;;  %6163 = vmatprep.subr.mxu1 %v6565_v0 }
 0xdd5   : > { %3413 = vmatprep.subr.mxu0 %v6565_v0  ;;  %6164 = vmatpush3.msra.mxu1 %v3483_v15 }
 0xdd6   : > { %3414 = vmatpush1.msra.mxu0 %v3383_v16  ;;  %6165 = vmatprep.subr.mxu1 %v6565_v0 }
 0xdd7   : > { %3415 = vmatprep.subr.mxu0 %v6565_v0  ;;  %6166 = vmatpush3.msra.mxu1 %v3482_v17  ;;  %v3926_v32 = vld [vmem:[%s7947_s18] sm:$0xff]  ;;  %s7955_s18 = smov 32  }
 0xdd8   : > { %3416 = vmatpush1.msra.mxu0 %v3382_v18  ;;  %6167 = vmatprep.subr.mxu1 %v6565_v0 }
 0xdd9   : > { %3417 = vmatprep.subr.mxu0 %v6565_v0  ;;  %6168 = vmatpush3.msra.mxu1 %v3481_v20 }
 0xdda   : > { %3418 = vmatpush1.msra.mxu0 %v3381_v21  ;;  %6169 = vmatprep.subr.mxu1 %v6565_v0 }
 0xddb   : > { %3419 = vmatprep.subr.mxu0 %v6565_v0  ;;  %6170 = vmatpush3.msra.mxu1 %v3480_v23 }
 0xddc   : > { %3420 = vmatpush1.msra.mxu0 %v3380_v24  ;;  %6171 = vmatprep.subr.mxu1 %v6565_v0 }
 0xddd   : > { %3421 = vmatprep.subr.mxu0 %v6565_v0  ;;  %6172 = vmatpush3.msra.mxu1 %v3479_v25 }
 0xdde   : > { %3422 = vmatpush1.msra.mxu0 %v3379_v26  ;;  %6173 = vmatprep.subr.mxu1 %v6565_v0 }
 0xddf   : > { %3423 = vmatprep.subr.mxu0 %v6565_v0  ;;  %6174 = vmatpush3.msra.mxu1 %v3478_v27 }
 0xde0   : > { %3424 = vmatpush1.msra.mxu0 %v3378_v28  ;;  %6175 = vmatprep.subr.mxu1 %v6565_v0 }
 0xde1   : > { %3425 = vmatprep.subr.mxu0 %v6565_v0  ;;  %6176 = vmatpush3.msra.mxu1 %v3477_v29 }
 0xde2   : > { %3426 = vmatpush1.msra.mxu0 %v3377_v30  ;;  %6177 = vmatprep.subr.mxu1 %v6565_v0 }
 0xde3   : > { %3427 = vmatprep.subr.mxu0 %v6565_v0  ;;  %6178 = vmatpush3.msra.mxu1 %v3476_v31 }
 0xde4   : > { %3428 = vmatpush1.msra.mxu0 %v3376_v33  ;;  %6179 = vmatprep.subr.mxu1 %v6565_v0 }
 0xde5   : > { %3429 = vmatprep.subr.mxu0 %v6565_v0  ;;  %6180 = vmatpush3.msra.mxu1 %v3475_v42 }
 0xde6   : > { %3430 = vmatpush1.msra.mxu0 %v3375_v34  ;;  %6181 = vmatprep.subr.mxu1 %v6565_v0 }
 0xde7   : > { %3431 = vmatprep.subr.mxu0 %v6565_v0 }
 0xde8   : > { %3432 = vmatpush1.msra.mxu0 %v3374_v35 }
 0xde9   : > { %3449 = vmatprep.subr.mxu0 %v6565_v0 }
 0xdea   : > { %3450 = vmatpush2.msra.mxu0 %v3397_v37 }
 0xdeb   : > { %3451 = vmatprep.subr.mxu0 %v6565_v0 }
 0xdec   : > { %3452 = vmatpush2.msra.mxu0 %v3396_v38 }
 0xded   : > { %3453 = vmatprep.subr.mxu0 %v6565_v0 }
 0xe88   : > { %v3318_v11 = vpop.f32.mrf.mxu0 }
 0xe89   : > { %v3342_v43 = vrot.slane %v3318_v11, %v3156_v39  ;;  %v3474_v11 = vld [vmem:[%s7940_s0 + $0x10] sm:$0xff] }
 0xe8a   : > { %v6154_v44 = vpop.f32.mrf.mxu0  ;;  %6182 = vmatpush3.msra.mxu1 %v3474_v11 }
 0xe8b   : > { %v3343_v60 = vmul.f32 %v3342_v43, %v3337_v46  ;;  %v3391_v43 = vld [vmem:[%s7939_s1 + $0x88] sm:$0xff]  ;;  %6183 = vmatprep.subr.mxu1 %v6565_v0 }
 0xe8c   : > { %v3231_v51 = vpop.f32.mrf.mxu1  ;;  %v3473_v44 = vld [vmem:[%s7940_s0 + $0x8] sm:$0xff] }
 0xe8d   : > { %v3331_v57 = vrot.slane %v3231_v51, %v3156_v39  ;;  %v3395_v39 = vld [vmem:[%s7939_s1 + $0xa8] sm:$0xff]  ;;  %v3390_v51 = vld [vmem:[%s7939_s1 + $0x80] sm:$0xff]  ;;  %6184 = vmatpush3.msra.mxu1 %v3473_v44  ;;  %s7950_s1 = sld [smem:[#allocation26_spill]] }
 0xe8e   : > { %v3233_v59 = vpop.f32.mrf.mxu1  ;;  %3454 = vmatpush2.msra.mxu0 %v3395_v39  ;;  %6185 = vmatprep.subr.mxu1 %v6565_v0 }
 0xe8f   : > { %v3332_v61 = vmul.f32 %v3331_v57, %v3326_v52  ;;  %3455 = vmatprep.subr.mxu0 %v6565_v0  ;;  %v3472_v52 = vld [vmem:[%s7940_s0] sm:$0xff]  ;;  %s7949_s0 = sld [smem:[#allocation23_spill]] }
 0xe90   : > { %3456 = vmatpush2.msra.mxu0 %v3394_v40  ;;  %6186 = vmatpush3.msra.mxu1 %v3472_v52 }
 0xe91   : > { %v3344_v63 = vadd.f32 %v3343_v60, %v3332_v61  ;;  %3457 = vmatprep.subr.mxu0 %v6565_v0  ;;  %6190 = vmatprep.subr.mxu1 %v6565_v0 }
 0xe92   : > { %3458 = vmatpush2.msra.mxu0 %v3393_v41 }
 0xe93   : > { %v3352_v1 = vadd.f32 %v5682_v62, %v3344_v63  ;;  %3459 = vmatprep.subr.mxu0 %v6565_v0 }
 0xe94   : > { %3460 = vmatpush2.msra.mxu0 %v3392_v8 }
 0xe95   : > { %v3353_v2 = vmax.f32 %v3352_v1, 0.0  ;;  %3461 = vmatprep.subr.mxu0 %v6565_v0 }
 0xe96   : > { %3462 = vmatpush2.msra.mxu0 %v3391_v43 }
 0xe97   : > { %3356 = vrot.lane.b32.xlu1 %v3353_v2, %s7881_s23  ;;  %3463 = vmatprep.subr.mxu0 %v6565_v0  ;;  %v3559_v2 = vld [vmem:[%s7941_s26] sm:$0xf]  ;;  %s7945_s26 = sld [smem:[#allocation22_spill]] }
 0xe98   : > { %3464 = vmatpush2.msra.mxu0 %v3390_v51 }
 0xe99   : > { %3768 = vmatprep.subr.mxu0 %v6565_v0 }
 0xe9d   : > { %v3854_v20 = vld [vmem:[%s7945_s26 + $0x78] sm:$0xff]  ;;  %v3853_v21 = vld [vmem:[%s7945_s26 + $0x70] sm:$0xff]  ;;  %v3852_v24 = vld [vmem:[%s7945_s26 + $0x68] sm:$0xff] }
 0xe9e   : > { %v3851_v26 = vld [vmem:[%s7945_s26 + $0x60] sm:$0xff]  ;;  %v3850_v28 = vld [vmem:[%s7945_s26 + $0x58] sm:$0xff]  ;;  %v3849_v30 = vld [vmem:[%s7945_s26 + $0x50] sm:$0xff] }
 0xe9f   : > { %v3848_v33 = vld [vmem:[%s7945_s26 + $0x48] sm:$0xff]  ;;  %v3847_v35 = vld [vmem:[%s7945_s26 + $0x40] sm:$0xff]  ;;  %v3846_v38 = vld [vmem:[%s7945_s26 + $0x38] sm:$0xff] }
 0xea0   : > { %v3845_v40 = vld [vmem:[%s7945_s26 + $0x30] sm:$0xff]  ;;  %v3844_v42 = vld [vmem:[%s7945_s26 + $0x28] sm:$0xff]  ;;  %v3843_v11 = vld [vmem:[%s7945_s26 + $0x20] sm:$0xff] }
 0xf09   : > { %v3357_v46 = vpop.permute.xlu1 %3356 }
 0xf0a   : > { %3359 = vst.msk [vmem:[#allocation2 + $0x2] sm:$0x3] %vm2919_vm13, %v3357_v46  ;;  %vm4102_vm13 = vcmask 523520  }
 0xf11   : > { %v3363_v57 = vld [vmem:[#allocation2 + $0x2] sm:$0x3] }
 0xf12   : > { %v3370_v59 = vld [vmem:[#allocation2 + $0x1] sm:$0x3]  ;;  %v3361_v60 = vld [vmem:[#allocation2 + $0x3] sm:$0x3]  ;;  %3365 = vrot.lane.b32.xlu1 %v3363_v57, %s7879_s28  ;;  %s7944_s28 = sld [smem:[#allocation21_spill]] }
 0xf13   : > { %3371 = vst.msk [vmem:[#allocation3 + $0x8] sm:$0x3] %vm3115_vm9, %v3370_v59  ;;  %3362 = vst.msk [vmem:[#allocation3] sm:$0x3] %vm3115_vm9, %v3361_v60 }
 0xf14   : > { %3721 = vst.msk [vmem:[#allocation2 + $0x2] sm:$0xf] %vm2699_vm7, %v2698_v22  ;;  %vm7958_vm7 = vcmask 64512  }
 0xf18   : > { %v3756_v16 = vld [vmem:[%s7944_s28 + $0x78] sm:$0xff]  ;;  %v3755_v17 = vld [vmem:[%s7944_s28 + $0x70] sm:$0xff]  ;;  %v3754_v18 = vld [vmem:[%s7944_s28 + $0x68] sm:$0xff] }
 0xf19   : > { %v3753_v23 = vld [vmem:[%s7944_s28 + $0x60] sm:$0xff]  ;;  %v3752_v25 = vld [vmem:[%s7944_s28 + $0x58] sm:$0xff]  ;;  %v3751_v27 = vld [vmem:[%s7944_s28 + $0x50] sm:$0xff] }
 0xf1a   : > { %v3373_v61 = vld [vmem:[#allocation3 + $0x8] sm:$0x3]  ;;  %v3750_v29 = vld [vmem:[%s7944_s28 + $0x48] sm:$0xff]  ;;  %v3749_v31 = vld [vmem:[%s7944_s28 + $0x40] sm:$0xff] }
 0xf1b   : > { %5683 = vmatprep.mubr.msk.f32.mxu0 %vm1463_vm0, %v3373_v61  ;;  %v3748_v34 = vld [vmem:[%s7944_s28 + $0x38] sm:$0xff]  ;;  %v3747_v37 = vld [vmem:[%s7944_s28 + $0x30] sm:$0xff]  ;;  %v3746_v39 = vld [vmem:[%s7944_s28 + $0x28] sm:$0xff] }
 0xf1c   : > { %v3745_v41 = vld [vmem:[%s7944_s28 + $0x20] sm:$0xff]  ;;  %v3744_v8 = vld [vmem:[%s7944_s28 + $0x18] sm:$0xff]  ;;  %v3743_v43 = vld [vmem:[%s7944_s28 + $0x10] sm:$0xff] }
 0xf1d   : > { %v3742_v44 = vld [vmem:[%s7944_s28 + $0x8] sm:$0xff]  ;;  %v3741_v46 = vld [vmem:[%s7944_s28] sm:$0xff]  ;;  %v3764_v51 = vld [vmem:[%s7944_s28 + $0xb8] sm:$0xff] }
 0xf1e   : > { %v3763_v52 = vld [vmem:[%s7944_s28 + $0xb0] sm:$0xff]  ;;  %v3762_v57 = vld [vmem:[%s7944_s28 + $0xa8] sm:$0xff]  ;;  %v3761_v59 = vld [vmem:[%s7944_s28 + $0xa0] sm:$0xff] }
 0xf1f   : > { %v3760_v60 = vld [vmem:[%s7944_s28 + $0x98] sm:$0xff] }
 0xf20   : > { %v3842_v61 = vld [vmem:[%s7945_s26 + $0x18] sm:$0xff] }
 0xf84   : > { %v3366_v62 = vpop.permute.xlu1 %3365 }
 0xf85   : > { %3369 = vst.msk [vmem:[#allocation3] sm:$0x3] %vm3368_vm4, %v3366_v62  ;;  %v3759_v62 = vld [vmem:[%s7944_s28 + $0x90] sm:$0xff] }
 0xf8c   : > { %v3372_v63 = vld [vmem:[#allocation3] sm:$0x3] }
 0xf8d   : > { %v3471_v1 = vld [vmem:[#allocation3] sm:$0x3]  ;;  %3466 = vmatmul.mubr.f32.vlgmr.msra.gmra.mxu0 %v3372_v63  ;;  %v3841_v63 = vld [vmem:[%s7945_s26 + $0x10] sm:$0xff] }
 0xf8e   : > { %6188 = vmatmul.mubr.f32.vlgmr.msra.gmra.mxu1 %v3471_v1  ;;  %3769 = vmatpush1.msra.mxu0 %v3756_v16  ;;  %v3758_v1 = vld [vmem:[%s7944_s28 + $0x88] sm:$0xff] }
 0xf8f   : > { %6192 = vmatprep.mubr.msk.f32.mxu1 %vm6572_vm5, %v6565_v0  ;;  %3770 = vmatprep.subr.mxu0 %v6565_v0 }
 0xf90   : > { %3771 = vmatpush1.msra.mxu0 %v3755_v17 }
 0xf91   : > { %3772 = vmatprep.subr.mxu0 %v6565_v0 }
 0xf92   : > { %3773 = vmatpush1.msra.mxu0 %v3754_v18 }
 0xf93   : > { %3774 = vmatprep.subr.mxu0 %v6565_v0 }
 0xf94   : > { %3775 = vmatpush1.msra.mxu0 %v3753_v23 }
 0xf95   : > { %3776 = vmatprep.subr.mxu0 %v6565_v0 }
 0xf96   : > { %3777 = vmatpush1.msra.mxu0 %v3752_v25  ;;  %v4123_v25 = vld [vmem:[%s7950_s1 + $0x58] sm:$0xff] }
 0xf97   : > { %3778 = vmatprep.subr.mxu0 %v6565_v0 }
 0xf98   : > { %3779 = vmatpush1.msra.mxu0 %v3751_v27 }
 0xf99   : > { %3780 = vmatprep.subr.mxu0 %v6565_v0 }
 0xf9a   : > { %3781 = vmatpush1.msra.mxu0 %v3750_v29  ;;  %v4121_v29 = vld [vmem:[%s7950_s1 + $0x48] sm:$0xff] }
 0xf9b   : > { %3782 = vmatprep.subr.mxu0 %v6565_v0 }
 0xf9c   : > { %3783 = vmatpush1.msra.mxu0 %v3749_v31 }
 0xf9d   : > { %3784 = vmatprep.subr.mxu0 %v6565_v0 }
 0xf9e   : > { %3785 = vmatpush1.msra.mxu0 %v3748_v34  ;;  %v4203_v34 = vld [vmem:[%s7951_s2 + $0x28] sm:$0xff] }
 0xf9f   : > { %3786 = vmatprep.subr.mxu0 %v6565_v0 }
 0xfa0   : > { %3787 = vmatpush1.msra.mxu0 %v3747_v37  ;;  %v4118_v37 = vld [vmem:[%s7950_s1 + $0x30] sm:$0xff] }
 0xfa1   : > { %3788 = vmatprep.subr.mxu0 %v6565_v0 }
 0xfa2   : > { %3789 = vmatpush1.msra.mxu0 %v3746_v39  ;;  %v4116_v39 = vld [vmem:[%s7950_s1 + $0x20] sm:$0xff] }
 0xfa3   : > { %3790 = vmatprep.subr.mxu0 %v6565_v0 }
 0xfa4   : > { %3791 = vmatpush1.msra.mxu0 %v3745_v41  ;;  %v4115_v41 = vld [vmem:[%s7950_s1 + $0x18] sm:$0xff] }
 0xfa5   : > { %3792 = vmatprep.subr.mxu0 %v6565_v0 }
 0xfa6   : > { %3793 = vmatpush1.msra.mxu0 %v3744_v8  ;;  %v4114_v8 = vld [vmem:[%s7950_s1 + $0x10] sm:$0xff] }
 0xfa7   : > { %3794 = vmatprep.subr.mxu0 %v6565_v0 }
 0xfa8   : > { %3795 = vmatpush1.msra.mxu0 %v3743_v43 }
 0xfa9   : > { %3796 = vmatprep.subr.mxu0 %v6565_v0 }
 0xfaa   : > { %3797 = vmatpush1.msra.mxu0 %v3742_v44  ;;  %v4113_v44 = vld [vmem:[%s7950_s1 + $0x8] sm:$0xff] }
 0xfab   : > { %3798 = vmatprep.subr.mxu0 %v6565_v0 }
 0xfac   : > { %3799 = vmatpush1.msra.mxu0 %v3741_v46  ;;  %v4199_v46 = vld [vmem:[%s7951_s2 + $0x8] sm:$0xff] }
 0xfad   : > { %3816 = vmatprep.subr.mxu0 %v6565_v0 }
 0xfae   : > { %3817 = vmatpush2.msra.mxu0 %v3764_v51  ;;  %v4112_v51 = vld [vmem:[%s7950_s1] sm:$0xff] }
 0xfaf   : > { %3818 = vmatprep.subr.mxu0 %v6565_v0 }
 0xfb0   : > { %3819 = vmatpush2.msra.mxu0 %v3763_v52  ;;  %v4198_v52 = vld [vmem:[%s7951_s2] sm:$0xff] }
 0xfb1   : > { %3820 = vmatprep.subr.mxu0 %v6565_v0 }
 0xfb2   : > { %3821 = vmatpush2.msra.mxu0 %v3762_v57 }
 0xfb3   : > { %3822 = vmatprep.subr.mxu0 %v6565_v0 }
 0xfb4   : > { %3823 = vmatpush2.msra.mxu0 %v3761_v59 }
 0xfb5   : > { %3824 = vmatprep.subr.mxu0 %v6565_v0 }
 0xfb6   : > { %3825 = vmatpush2.msra.mxu0 %v3760_v60 }
 0xfb7   : > { %3826 = vmatprep.subr.mxu0 %v6565_v0 }
 0xfb8   : > { %3827 = vmatpush2.msra.mxu0 %v3759_v62 }
 0xfb9   : > { %3828 = vmatprep.subr.mxu0 %v6565_v0 }
 0xfba   : > { %3829 = vmatpush2.msra.mxu0 %v3758_v1  ;;  %v4279_v1 = vld [vmem:[%s7956_s3 + $0x8] sm:$0xff]  ;;  %s7975_s3 = sld [smem:[#allocation36_spill]] }
 0xfbb   : > { %3830 = vmatprep.subr.mxu0 %v6565_v0 }
0x104d   : > { %v3467_v3 = vpop.f32.mrf.mxu0 }
0x104e   : > { %v3554_v19 = vpop.f32.mrf.mxu1 }
0x104f   : > { %6191 = vmatpush3.msk.msra.mxu1 %vm3038_vm10, %v3554_v19  ;;  %v3469_v22 = vpop.f32.mrf.mxu0  ;;  %v3757_v19 = vld [vmem:[%s7944_s28 + $0x80] sm:$0xff] }
0x1050   : > { %v6189_v4 = vpop.f32.mrf.mxu1  ;;  %6193 = vmatmul.mubr.msk.f32.vlgmr.msra.gmra.mxu1 %vm3034_vm12, %v3559_v2  ;;  %6195 = vmatprep.subr.mxu1 %v6565_v0  ;;  %v3840_v2 = vld [vmem:[%s7945_s26 + $0x8] sm:$0xff]  ;;  %v3839_v22 = vld [vmem:[%s7945_s26] sm:$0xff] }
0x1051   : > { %6196 = vmatpush3.msk.msra.mxu1 %vm3038_vm10, %v3467_v3  ;;  %6197 = vmatprep.mubr.msk.f32.mxu1 %vm6572_vm5, %v6565_v0  ;;  %vm3735_vm10 = vcmask 1043968  }
0x1052   : > { %6200 = vmatprep.subr.mxu1 %v6565_v0  ;;  %3831 = vmatpush2.msra.mxu0 %v3757_v19 }
0x1053   : > { %6272 = vmatprep.subr.mxu0 %v6565_v0 }
0x1054   : > { %6198 = vmatmul.mubr.msk.f32.vlgmr.msra.gmra.mxu1 %vm3034_vm12, %v3558_v5  ;;  %vm7957_vm12 = vcmask 261120  }
0x1055   : > { %6232 = vmatprep.mubr.msk.f32.mxu1 %vm6572_vm5, %v6565_v0  ;;  %6201 = vmatpush3.msra.mxu1 %v3854_v20  ;;  %vm7967_vm3 = vmmov %vm7957_vm12 }
0x1056   : > { %6202 = vmatprep.subr.mxu1 %v6565_v0 }
0x1057   : > { %6203 = vmatpush3.msra.mxu1 %v3853_v21  ;;  %v5694_v21 = vld [vmem:[%s7949_s0] ss:$0 sm:$0xff]  ;;  %s7952_s0 = smov 16  }
0x1058   : > { %6204 = vmatprep.subr.mxu1 %v6565_v0 }
0x1059   : > { %6205 = vmatpush3.msra.mxu1 %v3852_v24 }
0x105a   : > { %6206 = vmatprep.subr.mxu1 %v6565_v0 }
0x105b   : > { %6207 = vmatpush3.msra.mxu1 %v3851_v26  ;;  %v4122_v26 = vld [vmem:[%s7950_s1 + $0x50] sm:$0xff] }
0x105c   : > { %6208 = vmatprep.subr.mxu1 %v6565_v0 }
0x105d   : > { %6209 = vmatpush3.msra.mxu1 %v3850_v28  ;;  %v4205_v28 = vld [vmem:[%s7951_s2 + $0x38] sm:$0xff] }
0x105e   : > { %6210 = vmatprep.subr.mxu1 %v6565_v0 }
0x105f   : > { %6211 = vmatpush3.msra.mxu1 %v3849_v30  ;;  %v4204_v30 = vld [vmem:[%s7951_s2 + $0x30] sm:$0xff] }
0x1060   : > { %6212 = vmatprep.subr.mxu1 %v6565_v0 }
0x1061   : > { %6213 = vmatpush3.msra.mxu1 %v3848_v33  ;;  %v4120_v33 = vld [vmem:[%s7950_s1 + $0x40] sm:$0xff] }
0x1062   : > { %6214 = vmatprep.subr.mxu1 %v6565_v0 }
0x1063   : > { %6215 = vmatpush3.msra.mxu1 %v3847_v35  ;;  %v4119_v35 = vld [vmem:[%s7950_s1 + $0x38] sm:$0xff] }
0x1064   : > { %6216 = vmatprep.subr.mxu1 %v6565_v0 }
0x1065   : > { %6217 = vmatpush3.msra.mxu1 %v3846_v38  ;;  %v4117_v38 = vld [vmem:[%s7950_s1 + $0x28] sm:$0xff]  ;;  %s7960_s1 = sld [smem:[#allocation28_spill]] }
0x1066   : > { %6218 = vmatprep.subr.mxu1 %v6565_v0 }
0x1067   : > { %6219 = vmatpush3.msra.mxu1 %v3845_v40  ;;  %v4202_v40 = vld [vmem:[%s7951_s2 + $0x20] sm:$0xff] }
0x1068   : > { %6220 = vmatprep.subr.mxu1 %v6565_v0 }
0x1069   : > { %6221 = vmatpush3.msra.mxu1 %v3844_v42  ;;  %v4201_v42 = vld [vmem:[%s7951_s2 + $0x18] sm:$0xff] }
0x106a   : > { %6222 = vmatprep.subr.mxu1 %v6565_v0 }
0x106b   : > { %6223 = vmatpush3.msra.mxu1 %v3843_v11  ;;  %v4200_v11 = vld [vmem:[%s7951_s2 + $0x10] sm:$0xff]  ;;  %s7961_s2 = sld [smem:[#allocation31_spill]] }
0x106c   : > { %6224 = vmatprep.subr.mxu1 %v6565_v0 }
0x106d   : > { %6225 = vmatpush3.msra.mxu1 %v3842_v61 }
0x106e   : > { %6226 = vmatprep.subr.mxu1 %v6565_v0 }
0x106f   : > { %6227 = vmatpush3.msra.mxu1 %v3841_v63 }
0x1070   : > { %6228 = vmatprep.subr.mxu1 %v6565_v0 }
0x1071   : > { %6229 = vmatpush3.msra.mxu1 %v3840_v2 }
0x1072   : > { %6230 = vmatprep.subr.mxu1 %v6565_v0 }
0x1073   : > { %6231 = vmatpush3.msra.mxu1 %v3839_v22 }
0x1074   : > { %6235 = vmatprep.subr.mxu1 %v6565_v0 }
0x1110   : > { %v3632_v6 = vpop.f32.mrf.mxu1 }
0x1112   : > { %v6194_v7 = vpop.f32.mrf.mxu1 }
0x1114   : > { %v3708_v9 = vpop.f32.mrf.mxu1 }
0x1115   : > { %v3709_v12 = vadd.f32 %v3708_v9, %v3632_v6 }
0x1116   : > { %v6199_v13 = vpop.f32.mrf.mxu1 }
0x1117   : > { %v3719_v14 = vadd.f32 %v5688_v10, %v3709_v12 }
0x1119   : > { %v3720_v15 = vmax.f32 %v3719_v14, 0.0 }
0x111b   : > { %3723 = vrot.lane.b32.xlu0 %v3720_v15, %s7881_s23  ;;  %s7948_s23 = sld [smem:[#allocation24_spill]] }
0x1121   : > { %v3925_v16 = vld [vmem:[%s7948_s23] sm:$0xff]  ;;  %s7954_s23 = sld [smem:[#allocation30_spill]] }
0x1127   : > { %v4280_v56 = vld [vmem:[%s7954_s23] sm:$0xff]  ;;  %v4281_v63 = vld [vmem:[%s7954_s23 + $0x8] sm:$0xff] }
0x118d   : > { %v3724_v3 = vpop.permute.xlu0 %3723 }
0x118e   : > { %3726 = vst.msk [vmem:[#allocation2 + $0x2] sm:$0xf] %vm2710_vm8, %v3724_v3  ;;  %vm7959_vm8 = vmmov %vm7958_vm7 }
0x1195   : > { %v3730_v4 = vld [vmem:[#allocation2 + $0x2] sm:$0xf] }
0x1196   : > { %v3737_v5 = vld [vmem:[#allocation2 + $0x1] sm:$0xf]  ;;  %3732 = vrot.lane.b32.xlu1 %v3730_v4, %s7946_s16  ;;  %v5701_v4 = vld [vmem:[%s7960_s1] ss:$0 sm:$0xff]  ;;  %s7972_s1 = sld [smem:[#allocation35_spill]] }
0x1197   : > { %v3728_v6 = vld [vmem:[#allocation2 + $0x3] sm:$0xf]  ;;  %3738 = vst.msk [vmem:[#allocation3 + $0x8] sm:$0xf] %vm1472_vm1, %v3737_v5 }
0x1198   : > { %3729 = vst.msk [vmem:[#allocation3] sm:$0xf] %vm1472_vm1, %v3728_v6  ;;  %vm7953_vm1 = vcmask 261248  }
0x1199   : > { %4088 = vst.msk [vmem:[#allocation2 + $0x2] sm:$0xff] %vm2268_vm11, %v2504_v36  ;;  %vm7965_vm9 = vmmov %vm7953_vm1 }
0x119a   : > { %vm7966_vm14 = vmmov %vm7953_vm1 }
0x119e   : > { %v3740_v7 = vld [vmem:[#allocation3 + $0x8] sm:$0xf] }
0x119f   : > { %5689 = vmatprep.mubr.msk.f32.mxu0 %vm1463_vm0, %v3740_v7 }
0x1208   : > { %v3733_v9 = vpop.permute.xlu1 %3732 }
0x1209   : > { %3736 = vst.msk [vmem:[#allocation3] sm:$0xf] %vm3735_vm10, %v3733_v9  ;;  %vm7969_vm10 = vmmov %vm7967_vm3 }
0x1210   : > { %v3739_v10 = vld [vmem:[#allocation3] sm:$0xf] }
0x1211   : > { %v3838_v12 = vld [vmem:[#allocation3] sm:$0xf]  ;;  %3833 = vmatmul.mubr.f32.vlgmr.msra.gmra.mxu0 %v3739_v10 }
0x1212   : > { %6233 = vmatmul.mubr.f32.vlgmr.msra.gmra.mxu1 %v3838_v12  ;;  %6288 = vmatprep.mubr.msk.f32.mxu0 %vm6572_vm5, %v6565_v0 }
0x1213   : > { %6237 = vmatprep.mubr.msk.f32.mxu1 %vm6572_vm5, %v6565_v0  ;;  %6273 = vmatpush3.msra.mxu0 %v4205_v28 }
0x1214   : > { %6274 = vmatprep.subr.mxu0 %v6565_v0 }
0x1215   : > { %6275 = vmatpush3.msra.mxu0 %v4204_v30  ;;  %v4594_v30 = vld [vmem:[%s7964_s5 + $0x18] sm:$0xff] }
0x1216   : > { %6276 = vmatprep.subr.mxu0 %v6565_v0 }
0x1217   : > { %6277 = vmatpush3.msra.mxu0 %v4203_v34  ;;  %v4499_v34 = vld [vmem:[%s7961_s2 + $0x8] sm:$0xff] }
0x1218   : > { %6278 = vmatprep.subr.mxu0 %v6565_v0 }
0x1219   : > { %6279 = vmatpush3.msra.mxu0 %v4202_v40 }
0x121a   : > { %6280 = vmatprep.subr.mxu0 %v6565_v0 }
0x121b   : > { %6281 = vmatpush3.msra.mxu0 %v4201_v42 }
0x121c   : > { %6282 = vmatprep.subr.mxu0 %v6565_v0 }
0x121d   : > { %6283 = vmatpush3.msra.mxu0 %v4200_v11 }
0x121e   : > { %6284 = vmatprep.subr.mxu0 %v6565_v0 }
0x121f   : > { %6285 = vmatpush3.msra.mxu0 %v4199_v46 }
0x1220   : > { %6286 = vmatprep.subr.mxu0 %v6565_v0 }
0x1221   : > { %6287 = vmatpush3.msra.mxu0 %v4198_v52 }
0x12d1   : > { %v3834_v13 = vpop.f32.mrf.mxu0 }
0x12d2   : > { %v3921_v36 = vpop.f32.mrf.mxu1 }
0x12d3   : > { %6236 = vmatpush3.msk.msra.mxu1 %vm2835_vm15, %v3921_v36  ;;  %v3836_v14 = vpop.f32.mrf.mxu0  ;;  %v4509_v36 = vld [vmem:[%s7961_s2 + $0x58] sm:$0xff] }
0x12d4   : > { %v6234_v15 = vpop.f32.mrf.mxu1  ;;  %6238 = vmatmul.mubr.msk.f32.vlgmr.msra.gmra.mxu1 %vm2831_vm2, %v3926_v32  ;;  %6240 = vmatprep.subr.mxu1 %v6565_v0  ;;  %v4508_v14 = vld [vmem:[%s7961_s2 + $0x50] sm:$0xff] }
0x12d5   : > { %6241 = vmatpush3.msk.msra.mxu1 %vm2835_vm15, %v3834_v13  ;;  %6242 = vmatprep.mubr.msk.f32.mxu1 %vm6572_vm5, %v6565_v0  ;;  %vm7962_vm15 = vmmov %vm7958_vm7  ;;  %v4598_v15 = vld [vmem:[%s7964_s5 + $0x38] sm:$0xff] }
0x12d6   : > { %6245 = vmatprep.subr.mxu1 %v6565_v0 }
0x12d8   : > { %6243 = vmatmul.mubr.msk.f32.vlgmr.msra.gmra.mxu1 %vm2831_vm2, %v3925_v16  ;;  %vm7963_vm2 = vmmov %vm7958_vm7  ;;  %v4507_v16 = vld [vmem:[%s7961_s2 + $0x48] sm:$0xff] }
0x12d9   : > { %6269 = vmatprep.mubr.msk.f32.mxu1 %vm6572_vm5, %v6565_v0  ;;  %6246 = vmatpush3.msra.mxu1 %v4123_v25  ;;  %vm4109_vm5 = vcmask 785920   ;;  %vm7968_vm4 = vmmov %vm7963_vm2 }
0x12da   : > { %6247 = vmatprep.subr.mxu1 %v6565_v0 }
0x12db   : > { %6248 = vmatpush3.msra.mxu1 %v4122_v26  ;;  %v4502_v26 = vld [vmem:[%s7961_s2 + $0x20] sm:$0xff] }
0x12dc   : > { %6249 = vmatprep.subr.mxu1 %v6565_v0 }
0x12dd   : > { %6250 = vmatpush3.msra.mxu1 %v4121_v29  ;;  %v4501_v29 = vld [vmem:[%s7961_s2 + $0x18] sm:$0xff] }
0x12de   : > { %6251 = vmatprep.subr.mxu1 %v6565_v0 }
0x12df   : > { %6252 = vmatpush3.msra.mxu1 %v4120_v33  ;;  %v4593_v33 = vld [vmem:[%s7964_s5 + $0x10] sm:$0xff] }
0x12e0   : > { %6253 = vmatprep.subr.mxu1 %v6565_v0 }
0x12e1   : > { %6254 = vmatpush3.msra.mxu1 %v4119_v35  ;;  %v4592_v35 = vld [vmem:[%s7964_s5 + $0x8] sm:$0xff] }
0x12e2   : > { %6255 = vmatprep.subr.mxu1 %v6565_v0 }
0x12e3   : > { %6256 = vmatpush3.msra.mxu1 %v4118_v37  ;;  %v4498_v37 = vld [vmem:[%s7961_s2] sm:$0xff] }
0x12e4   : > { %6257 = vmatprep.subr.mxu1 %v6565_v0 }
0x12e5   : > { %6258 = vmatpush3.msra.mxu1 %v4117_v38  ;;  %v4591_v38 = vld [vmem:[%s7964_s5] sm:$0xff] }
0x12e6   : > { %6259 = vmatprep.subr.mxu1 %v6565_v0 }
0x12e7   : > { %6260 = vmatpush3.msra.mxu1 %v4116_v39 }
0x12e8   : > { %6261 = vmatprep.subr.mxu1 %v6565_v0 }
0x12e9   : > { %6262 = vmatpush3.msra.mxu1 %v4115_v41 }
0x12ea   : > { %6263 = vmatprep.subr.mxu1 %v6565_v0 }
0x12eb   : > { %6264 = vmatpush3.msra.mxu1 %v4114_v8 }
0x12ec   : > { %6265 = vmatprep.subr.mxu1 %v6565_v0 }
0x12ed   : > { %6266 = vmatpush3.msra.mxu1 %v4113_v44 }
0x12ee   : > { %6267 = vmatprep.subr.mxu1 %v6565_v0 }
0x12ef   : > { %6268 = vmatpush3.msra.mxu1 %v4112_v51 }
0x1394   : > { %v3999_v17 = vpop.f32.mrf.mxu1 }
0x1396   : > { %v6239_v18 = vpop.f32.mrf.mxu1 }
0x1397   : > { %v4505_v18 = vld [vmem:[%s7961_s2 + $0x38] sm:$0xff] }
0x1398   : > { %v4075_v20 = vpop.f32.mrf.mxu1 }
0x1399   : > { %v4076_v23 = vadd.f32 %v4075_v20, %v3999_v17  ;;  %v4506_v17 = vld [vmem:[%s7961_s2 + $0x40] sm:$0xff]  ;;  %v4504_v20 = vld [vmem:[%s7961_s2 + $0x30] sm:$0xff] }
0x139a   : > { %v6244_v24 = vpop.f32.mrf.mxu1 }
0x139b   : > { %v4086_v27 = vadd.f32 %v5694_v21, %v4076_v23  ;;  %v4597_v21 = vld [vmem:[%s7964_s5 + $0x30] sm:$0xff]  ;;  %v4503_v23 = vld [vmem:[%s7961_s2 + $0x28] sm:$0xff] }
0x139c   : > { %v4596_v24 = vld [vmem:[%s7964_s5 + $0x28] sm:$0xff] }
0x139d   : > { %v4087_v31 = vmax.f32 %v4086_v27, 0.0  ;;  %v4595_v27 = vld [vmem:[%s7964_s5 + $0x20] sm:$0xff] }
0x139f   : > { %4090 = vrot.lane.b32.xlu0 %v4087_v31, %s7952_s0  ;;  %v4500_v31 = vld [vmem:[%s7961_s2 + $0x10] sm:$0xff]  ;;  %s7973_s2 = sld [smem:[#allocation34_spill]] }
0x13a5   : > { %v4678_v44 = vld [vmem:[%s7973_s2] sm:$0xff] }
0x1411   : > { %v4091_v43 = vpop.permute.xlu0 %4090 }
0x1412   : > { %4093 = vst.msk [vmem:[#allocation2 + $0x2] sm:$0xff] %vm7953_vm1, %v4091_v43  ;;  %vm7970_vm1 = vmmov %vm7963_vm2 }
0x1419   : > { %v4104_v57 = vld [vmem:[#allocation2 + $0x1] sm:$0xff] }
0x141a   : > { %v4097_v59 = vld [vmem:[#allocation2 + $0x2] sm:$0xff]  ;;  %4106 = vrot.lane.b32.xlu0 %v4104_v57, %s7946_s16 }
0x141b   : > { %v4095_v60 = vld [vmem:[#allocation2 + $0x3] sm:$0xff]  ;;  %4099 = vrot.lane.b32.xlu1 %v4097_v59, %s7955_s18 }
0x141c   : > { %4096 = vst.msk [vmem:[#allocation3] sm:$0xff] %vm7957_vm12, %v4095_v60  ;;  %vm7971_vm12 = vmmov %vm7970_vm1  ;;  %v4683_v59 = vld [vmem:[%s7972_s1 + $0x8] sm:$0xff] }
0x141d   : > { %4455 = vst.msk [vmem:[#allocation2 + $0x2] sm:$0xff] %vm2268_vm11, %v2266_v58  ;;  %4456 = vst.msk [vmem:[#allocation2 + $0xa] sm:$0xff] %vm2268_vm11, %v2267_v53  ;;  %v4679_v60 = vld [vmem:[%s7973_s2 + $0x8] sm:$0xff] }
0x148c   : > { %v4107_v0 = vpop.permute.xlu0 %4106 }
0x148d   : > { %v4100_v61 = vpop.permute.xlu1 %4099 }
0x148e   : > { %4103 = vst.msk [vmem:[#allocation3] sm:$0xff] %vm4102_vm13, %v4100_v61  ;;  %v4680_v61 = vld [vmem:[%s7973_s2 + $0x10] sm:$0xff] }
0x148f   : > { %4110 = vst.msk [vmem:[#allocation3] sm:$0xff] %vm4109_vm5, %v4107_v0  ;;  %v4684_v0 = vld [vmem:[%s7972_s1 + $0x10] sm:$0xff] }
0x1496   : > { %v4111_v62 = vld [vmem:[#allocation3] sm:$0xff] }
0x1497   : > { %6270 = vmatmul.mubr.msk.f32.vlgmr.msra.gmra.mxu1 %vm4124_vm6, %v4111_v62  ;;  %6289 = vmatmul.mubr.msk.f32.vlgmr.msra.gmra.mxu0 %vm1463_vm0, %v4111_v62  ;;  %v4685_v62 = vld [vmem:[%s7972_s1 + $0x18] sm:$0xff] }
0x1498   : > { %6293 = vmatprep.mubr.msk.f32.mxu0 %vm7958_vm7, %v4280_v56  ;;  %6298 = vmatprep.mubr.msk.f32.mxu1 %vm7959_vm8, %v4278_v49  ;;  %v4681_v56 = vld [vmem:[%s7973_s2 + $0x18] sm:$0xff]  ;;  %vm7982_vm7 = vmmov %vm7965_vm9 }
0x1499   : > { %vm7983_vm8 = vmmov %vm7982_vm7 }
0x1557   : > { %v4194_v53 = vpop.f32.mrf.mxu1  ;;  %v4274_v58 = vpop.f32.mrf.mxu0 }
0x1558   : > { %6291 = vmatprep.subr.mxu0 %v4274_v58  ;;  %6296 = vmatprep.subr.mxu1 %v4194_v53 }
0x1559   : > { %v6271_v2 = vpop.f32.mrf.mxu1  ;;  %v6290_v3 = vpop.f32.mrf.mxu0  ;;  %6292 = vmatpush3.msra.mxu0 %v4274_v58  ;;  %6297 = vmatpush3.msra.mxu1 %v4194_v53 }
0x155a   : > { %6294 = vmatmul.mubr.msk.f32.vlgmr.msra.gmra.mxu0 %vm7962_vm15, %v4281_v63  ;;  %6299 = vmatmul.mubr.msk.f32.vlgmr.msra.gmra.mxu1 %vm7963_vm2, %v4279_v1  ;;  %vm7984_vm15 = vcmask 392448   ;;  %vm7986_vm2 = vmmov %vm7982_vm7 }
0x155b   : > { %6301 = vmatprep.subr.mxu0 %v4509_v36  ;;  %6328 = vmatprep.subr.mxu1 %v4598_v15 }
0x155c   : > { %6302 = vmatpush3.msra.mxu0 %v4509_v36  ;;  %6329 = vmatpush3.msra.mxu1 %v4598_v15 }
0x155d   : > { %6303 = vmatprep.subr.mxu0 %v4508_v14  ;;  %6330 = vmatprep.subr.mxu1 %v4597_v21 }
0x155e   : > { %6304 = vmatpush3.msra.mxu0 %v4508_v14  ;;  %6331 = vmatpush3.msra.mxu1 %v4597_v21  ;;  %v4983_v21 = vld [vmem:[%s7975_s3 + $0x18] sm:$0xff] }
0x155f   : > { %6305 = vmatprep.subr.mxu0 %v4507_v16  ;;  %6332 = vmatprep.subr.mxu1 %v4596_v24 }
0x1560   : > { %6306 = vmatpush3.msra.mxu0 %v4507_v16  ;;  %6333 = vmatpush3.msra.mxu1 %v4596_v24  ;;  %v4985_v16 = vld [vmem:[%s7975_s3 + $0x28] sm:$0xff] }
0x1561   : > { %6307 = vmatprep.subr.mxu0 %v4506_v17  ;;  %6334 = vmatprep.subr.mxu1 %v4595_v27 }
0x1562   : > { %6308 = vmatpush3.msra.mxu0 %v4506_v17  ;;  %6335 = vmatpush3.msra.mxu1 %v4595_v27 }
0x1563   : > { %6309 = vmatprep.subr.mxu0 %v4505_v18  ;;  %6336 = vmatprep.subr.mxu1 %v4594_v30 }
0x1564   : > { %6310 = vmatpush3.msra.mxu0 %v4505_v18  ;;  %6337 = vmatpush3.msra.mxu1 %v4594_v30  ;;  %v4984_v18 = vld [vmem:[%s7975_s3 + $0x20] sm:$0xff] }
0x1565   : > { %6311 = vmatprep.subr.mxu0 %v4504_v20  ;;  %6338 = vmatprep.subr.mxu1 %v4593_v33 }
0x1566   : > { %6312 = vmatpush3.msra.mxu0 %v4504_v20  ;;  %6339 = vmatpush3.msra.mxu1 %v4593_v33 }
0x1567   : > { %6313 = vmatprep.subr.mxu0 %v4503_v23  ;;  %6340 = vmatprep.subr.mxu1 %v4592_v35 }
0x1568   : > { %6314 = vmatpush3.msra.mxu0 %v4503_v23  ;;  %6341 = vmatpush3.msra.mxu1 %v4592_v35 }
0x1569   : > { %6315 = vmatprep.subr.mxu0 %v4502_v26  ;;  %6342 = vmatprep.subr.mxu1 %v4591_v38 }
0x156a   : > { %6316 = vmatpush3.msra.mxu0 %v4502_v26  ;;  %6343 = vmatpush3.msra.mxu1 %v4591_v38 }
0x156b   : > { %6317 = vmatprep.subr.mxu0 %v4501_v29 }
0x156c   : > { %6318 = vmatpush3.msra.mxu0 %v4501_v29 }
0x156d   : > { %6319 = vmatprep.subr.mxu0 %v4500_v31 }
0x156e   : > { %6320 = vmatpush3.msra.mxu0 %v4500_v31  ;;  %v4980_v31 = vld [vmem:[%s7975_s3] sm:$0xff] }
0x156f   : > { %6321 = vmatprep.subr.mxu0 %v4499_v34 }
0x1570   : > { %6322 = vmatpush3.msra.mxu0 %v4499_v34 }
0x1571   : > { %6323 = vmatprep.subr.mxu0 %v4498_v37 }
0x1572   : > { %6324 = vmatpush3.msra.mxu0 %v4498_v37 }
0x161a   : > { %v6295_v19 = vpop.f32.mrf.mxu0  ;;  %v6300_v22 = vpop.f32.mrf.mxu1 }
0x161b   : > { %v4441_v5 = vadd.f32 %v6300_v22, %v6295_v19 }
0x161c   : > { %v4354_v6 = vpop.f32.mrf.mxu0  ;;  %v4435_v7 = vpop.f32.mrf.mxu1 }
0x161d   : > { %v4452_v9 = vadd.f32 %v5701_v4, %v4441_v5  ;;  %v4436_v10 = vadd.f32 %v4435_v7, %v4354_v6 }
0x161f   : > { %v4454_v12 = vmax.f32 %v4452_v9, 0.0  ;;  %v4451_v32 = vadd.f32 %v5701_v4, %v4436_v10 }
0x1621   : > { %v4453_v13 = vmax.f32 %v4451_v32, 0.0  ;;  %4461 = vrot.lane.b32.xlu0 %v4454_v12, %s7952_s0 }
0x1623   : > { %4459 = vrot.lane.b32.xlu1 %v4453_v13, %s7952_s0 }
0x1693   : > { %v4462_v25 = vpop.permute.xlu0 %4461 }
0x1694   : > { %4466 = vst.msk [vmem:[#allocation2 + $0xa] sm:$0xff] %vm7965_vm9, %v4462_v25  ;;  %v4982_v25 = vld [vmem:[%s7975_s3 + $0x10] sm:$0xff]  ;;  %vm7987_vm9 = vmmov %vm7986_vm2 }
0x1695   : > { %v4460_v28 = vpop.permute.xlu1 %4459 }
0x1696   : > { %4465 = vst.msk [vmem:[#allocation2 + $0x2] sm:$0xff] %vm7966_vm14, %v4460_v28  ;;  %v4981_v28 = vld [vmem:[%s7975_s3 + $0x8] sm:$0xff]  ;;  %vm4986_vm14 = vcmask 392192  }
0x169b   : > { %v4473_v39 = vld [vmem:[#allocation2 + $0xa] sm:$0xff] }
0x169c   : > { %v4469_v40 = vld [vmem:[#allocation2 + $0xb] sm:$0xff]  ;;  %4478 = vrot.lane.b32.xlu0 %v4473_v39, %s7955_s18 }
0x169d   : > { %4471 = vst.msk [vmem:[#allocation3 + $0x10] sm:$0xff] %vm7967_vm3, %v4469_v40  ;;  %v4472_v41 = vld [vmem:[#allocation2 + $0x2] sm:$0xff] }
0x169e   : > { %4897 = vst.msk [vmem:[#allocation2 + $0x12] sm:$0xff] %vm7968_vm4, %v1958_v55  ;;  %v4485_v42 = vld [vmem:[#allocation2 + $0x9] sm:$0xff]  ;;  %v4484_v8 = vld [vmem:[#allocation2 + $0x1] sm:$0xff]  ;;  %4476 = vrot.lane.b32.xlu1 %v4472_v41, %s7955_s18 }
0x169f   : > { %v4468_v11 = vld [vmem:[#allocation2 + $0x3] sm:$0xff] }
0x16a0   : > { %4470 = vst.msk [vmem:[#allocation3] sm:$0xff] %vm7969_vm10, %v4468_v11  ;;  %4490 = vrot.lane.b32.xlu0 %v4485_v42, %s7946_s16 }
0x16a1   : > { %4895 = vst.msk [vmem:[#allocation2 + $0x2] sm:$0xff] %vm7970_vm1, %v1956_v50  ;;  %v4682_v50 = vld [vmem:[%s7972_s1] sm:$0xff]  ;;  %s7976_s1 = smov 8   ;;  %vm7990_vm1 = vmmov %vm7969_vm10 }
0x16a2   : > { %4896 = vst.msk [vmem:[#allocation2 + $0xa] sm:$0xff] %vm7971_vm12, %v1957_v47  ;;  %4488 = vrot.lane.b32.xlu1 %v4484_v8, %s7946_s16  ;;  %s7974_s16 = sld [smem:[#allocation33_spill]]  ;;  %vm7991_vm12 = vmmov %vm7990_vm1 }
0x16a8   : > { %v5714_v58 = vld [vmem:[%s7974_s16] ss:$0 sm:$0xff]  ;;  %s7977_s16 = sld [smem:[#allocation37_spill]] }
0x16ae   : > { %v5087_v23 = vld [vmem:[%s7977_s16 + $0x18] sm:$0xff]  ;;  %v5086_v26 = vld [vmem:[%s7977_s16 + $0x10] sm:$0xff]  ;;  %v5085_v29 = vld [vmem:[%s7977_s16 + $0x8] sm:$0xff] }
0x16af   : > { %v5084_v33 = vld [vmem:[%s7977_s16] sm:$0xff] }
0x170e   : > { %v4479_v54 = vpop.permute.xlu0 %4478 }
0x170f   : > { %4483 = vst.msk [vmem:[#allocation3 + $0x10] sm:$0xff] %vm4102_vm13, %v4479_v54 }
0x1710   : > { %v4477_v55 = vpop.permute.xlu1 %4476 }
0x1711   : > { %4482 = vst.msk [vmem:[#allocation3] sm:$0xff] %vm4102_vm13, %v4477_v55 }
0x1712   : > { %v4491_v43 = vpop.permute.xlu0 %4490 }
0x1713   : > { %4495 = vst.msk [vmem:[#allocation3 + $0x10] sm:$0xff] %vm4109_vm5, %v4491_v43 }
0x1714   : > { %v4489_v48 = vpop.permute.xlu1 %4488 }
0x1715   : > { %4494 = vst.msk [vmem:[#allocation3] sm:$0xff] %vm4109_vm5, %v4489_v48 }
0x171a   : > { %v4497_v47 = vld [vmem:[#allocation3 + $0x10] sm:$0xff] }
0x171c   : > { %v4496_v45 = vld [vmem:[#allocation3] sm:$0xff] }
0x171d   : > { %6325 = vmatprep.mubr.msk.f32.mxu0 %vm4124_vm6, %v4496_v45  ;;  %6344 = vmatprep.mubr.msk.f32.mxu1 %vm1463_vm0, %v4496_v45 }
0x171e   : > { %6326 = vmatmul.mubr.msk.f32.vlgmr.msra.gmra.mxu0 %vm4124_vm6, %v4497_v47  ;;  %6345 = vmatmul.mubr.msk.f32.vlgmr.msra.gmra.mxu1 %vm1463_vm0, %v4497_v47  ;;  %vm7978_vm0 = vcmask 130112  }
0x171f   : > { %6351 = vmatprep.mubr.msk.f32.mxu1 %vm2268_vm11, %v4682_v50  ;;  %6361 = vmatprep.mubr.msk.f32.mxu0 %vm2268_vm11, %v4678_v44  ;;  %vm7979_vm13 = vmmov %vm7978_vm0 }
0x1720   : > { %vm7980_vm5 = vmmov %vm7978_vm0 }
0x1721   : > { %vm7981_vm6 = vmmov %vm7978_vm0 }
0x17de   : > { %v6327_v46 = vpop.f32.mrf.mxu0  ;;  %v6346_v51 = vpop.f32.mrf.mxu1 }
0x17df   : > { %6347 = vmatprep.subr.mxu1 %v6346_v51  ;;  %6357 = vmatprep.subr.mxu0 %v6327_v46 }
0x17e0   : > { %v4582_v52 = vpop.f32.mrf.mxu0  ;;  %v4669_v57 = vpop.f32.mrf.mxu1  ;;  %6348 = vmatpush3.msra.mxu1 %v6346_v51  ;;  %6358 = vmatpush3.msra.mxu0 %v6327_v46 }
0x17e1   : > { %6349 = vmatprep.subr.mxu1 %v4669_v57  ;;  %6359 = vmatprep.subr.mxu0 %v4582_v52 }
0x17e2   : > { %6350 = vmatpush3.msra.mxu1 %v4669_v57  ;;  %6360 = vmatpush3.msra.mxu0 %v4582_v52 }
0x17e3   : > { %6352 = vmatmul.mubr.msk.f32.vlgmr.msra.gmra.mxu1 %vm2268_vm11, %v4683_v59  ;;  %6362 = vmatmul.mubr.msk.f32.vlgmr.msra.gmra.mxu0 %vm2268_vm11, %v4679_v60  ;;  %v5189_v60 = vld [vmem:[%s6823_s27] sm:$0xff] }
0x17e4   : > { %6354 = vmatprep.mubr.msk.f32.mxu1 %vm2268_vm11, %v4684_v0  ;;  %6364 = vmatprep.mubr.msk.f32.mxu0 %vm2268_vm11, %v4680_v61  ;;  %v5181_v0 = vld [vmem:[%s6818_s20] sm:$0xff] }
0x17e5   : > { %6367 = vmatprep.subr.mxu1 %v4985_v16  ;;  %6385 = vmatprep.subr.mxu0 %v5087_v23 }
0x17e6   : > { %6368 = vmatpush3.msra.mxu1 %v4985_v16  ;;  %6386 = vmatpush3.msra.mxu0 %v5087_v23  ;;  %v5481_v16 = vld [vmem:[%s6870_s15 + $0x18] sm:$0xff]  ;;  %v5483_v23 = vld [vmem:[%s6870_s15 + $0x28] sm:$0xff] }
0x17e7   : > { %6355 = vmatmul.mubr.msk.f32.gmra.mxu1 %vm2268_vm11, %v4685_v62  ;;  %6365 = vmatmul.mubr.msk.f32.gmra.mxu0 %vm2268_vm11, %v4681_v56 }
0x17e8   : > { %6369 = vmatprep.subr.mxu1 %v4984_v18  ;;  %6387 = vmatprep.subr.mxu0 %v5086_v26 }
0x17e9   : > { %6370 = vmatpush3.msra.mxu1 %v4984_v18  ;;  %6388 = vmatpush3.msra.mxu0 %v5086_v26 }
0x17ea   : > { %6371 = vmatprep.subr.mxu1 %v4983_v21  ;;  %6389 = vmatprep.subr.mxu0 %v5085_v29 }
0x17eb   : > { %6372 = vmatpush3.msra.mxu1 %v4983_v21  ;;  %6390 = vmatpush3.msra.mxu0 %v5085_v29  ;;  %v5739_v21 = vld [vmem:[%s6813_s12] ss:$0 sm:$0xff] }
0x17ec   : > { %6373 = vmatprep.subr.mxu1 %v4982_v25  ;;  %6391 = vmatprep.subr.mxu0 %v5084_v33 }
0x17ed   : > { %6374 = vmatpush3.msra.mxu1 %v4982_v25  ;;  %6392 = vmatpush3.msra.mxu0 %v5084_v33  ;;  %v5485_v33 = vld [vmem:[%s6870_s15 + $0x38] sm:$0xff] }
0x17ee   : > { %6375 = vmatprep.subr.mxu1 %v4981_v28 }
0x17ef   : > { %6376 = vmatpush3.msra.mxu1 %v4981_v28 }
0x17f0   : > { %6377 = vmatprep.subr.mxu1 %v4980_v31 }
0x17f1   : > { %6378 = vmatpush3.msra.mxu1 %v4980_v31 }
0x18a3   : > { %v6353_v49 = vpop.f32.mrf.mxu1  ;;  %v6363_v53 = vpop.f32.mrf.mxu0 }
0x18a4   : > { %v4867_v63 = vadd.f32 %v6363_v53, %v6353_v49 }
0x18a5   : > { %v4764_v1 = vpop.f32.mrf.mxu1  ;;  %v4861_v2 = vpop.f32.mrf.mxu0 }
0x18a6   : > { %v4888_v3 = vadd.f32 %v5714_v58, %v4867_v63  ;;  %v4862_v19 = vadd.f32 %v4861_v2, %v4764_v1  ;;  %v5190_v2 = vld [vmem:[%s6823_s27 + $0x8] sm:$0xff] }
0x18a7   : > { %v6356_v22 = vpop.f32.mrf.mxu1  ;;  %v6366_v4 = vpop.f32.mrf.mxu0 }
0x18a8   : > { %v4892_v5 = vmax.f32 %v4888_v3, 0.0  ;;  %v4887_v6 = vadd.f32 %v5714_v58, %v4862_v19  ;;  %v4877_v7 = vadd.f32 %v6366_v4, %v6356_v22  ;;  %v5182_v3 = vld [vmem:[%s6818_s20 + $0x8] sm:$0xff]  ;;  %v5191_v19 = vld [vmem:[%s6823_s27 + $0x10] sm:$0xff]  ;;  %v5192_v4 = vld [vmem:[%s6823_s27 + $0x18] sm:$0xff] }
0x18a9   : > { %v4774_v9 = vpop.f32.mrf.mxu1  ;;  %v4871_v10 = vpop.f32.mrf.mxu0  ;;  %v5183_v22 = vld [vmem:[%s6818_s20 + $0x10] sm:$0xff] }
0x18aa   : > { %v4891_v12 = vmax.f32 %v4887_v6, 0.0  ;;  %v4890_v32 = vadd.f32 %v5714_v58, %v4877_v7  ;;  %v4872_v13 = vadd.f32 %v4871_v10, %v4774_v9  ;;  %4905 = vrot.lane.b32.xlu0 %v4892_v5, %s7976_s1  ;;  %v5184_v5 = vld [vmem:[%s6818_s20 + $0x18] sm:$0xff]  ;;  %v5193_v6 = vld [vmem:[%s6823_s27 + $0x20] sm:$0xff]  ;;  %v5194_v9 = vld [vmem:[%s6823_s27 + $0x28] sm:$0xff] }
0x18ab   : > { %v5185_v7 = vld [vmem:[%s6818_s20 + $0x20] sm:$0xff]  ;;  %v5186_v10 = vld [vmem:[%s6818_s20 + $0x28] sm:$0xff] }
0x18ac   : > { %v4894_v36 = vmax.f32 %v4890_v32, 0.0  ;;  %v4889_v14 = vadd.f32 %v5714_v58, %v4872_v13  ;;  %4903 = vrot.lane.b32.xlu1 %v4891_v12, %s7976_s1  ;;  %v5195_v12 = vld [vmem:[%s6823_s27 + $0x30] sm:$0xff]  ;;  %v5196_v13 = vld [vmem:[%s6823_s27 + $0x38] sm:$0xff] }
0x18ad   : > { %v5187_v32 = vld [vmem:[%s6818_s20 + $0x30] sm:$0xff] }
0x18ae   : > { %v4893_v15 = vmax.f32 %v4889_v14, 0.0  ;;  %4909 = vrot.lane.b32.xlu0 %v4894_v36, %s7976_s1  ;;  %v5188_v36 = vld [vmem:[%s6818_s20 + $0x38] sm:$0xff]  ;;  %v5479_v14 = vld [vmem:[%s6870_s15 + $0x8] sm:$0xff] }
0x18b0   : > { %4907 = vrot.lane.b32.xlu1 %v4893_v15, %s7976_s1  ;;  %v5478_v15 = vld [vmem:[%s6870_s15] sm:$0xff] }
0x191c   : > { %v4906_v17 = vpop.permute.xlu0 %4905 }
0x191d   : > { %4916 = vst.msk [vmem:[#allocation2 + $0xa] sm:$0xff] %vm7978_vm0, %v4906_v17  ;;  %vm7992_vm0 = vmmov %vm7990_vm1  ;;  %v5480_v17 = vld [vmem:[%s6870_s15 + $0x10] sm:$0xff] }
0x191e   : > { %v4904_v20 = vpop.permute.xlu1 %4903 }
0x191f   : > { %4915 = vst.msk [vmem:[#allocation2 + $0x2] sm:$0xff] %vm7979_vm13, %v4904_v20  ;;  %vm7993_vm13 = vmmov %vm7992_vm0 }
0x1920   : > { %v4910_v24 = vpop.permute.xlu0 %4909 }
0x1921   : > { %4918 = vst.msk [vmem:[#allocation2 + $0x1a] sm:$0xff] %vm7980_vm5, %v4910_v24  ;;  %vm7994_vm5 = vmmov %vm7992_vm0 }
0x1922   : > { %v4908_v27 = vpop.permute.xlu1 %4907 }
0x1923   : > { %4917 = vst.msk [vmem:[#allocation2 + $0x12] sm:$0xff] %vm7981_vm6, %v4908_v27  ;;  %vm7995_vm6 = vmmov %vm7992_vm0  ;;  %v5482_v27 = vld [vmem:[%s6870_s15 + $0x20] sm:$0xff] }
0x1924   : > { %v4929_v30 = vld [vmem:[#allocation2 + $0xa] sm:$0xff] }
0x1925   : > { %4938 = vrot.lane.b32.xlu0 %v4929_v30, %s7952_s0 }
0x1926   : > { %v4928_v34 = vld [vmem:[#allocation2 + $0x2] sm:$0xff] }
0x1927   : > { %4936 = vrot.lane.b32.xlu1 %v4928_v34, %s7952_s0  ;;  %v4920_v35 = vld [vmem:[#allocation2 + $0x3] sm:$0xff] }
0x1928   : > { %v4953_v37 = vld [vmem:[#allocation2 + $0x9] sm:$0xff]  ;;  %4924 = vst.msk [vmem:[#allocation3] sm:$0xff] %vm2268_vm11, %v4920_v35  ;;  %v4923_v38 = vld [vmem:[#allocation2 + $0x1b] sm:$0xff] }
0x1929   : > { %4962 = vrot.lane.b32.xlu0 %v4953_v37, %s7955_s18  ;;  %4927 = vst.msk [vmem:[#allocation3 + $0x30] sm:$0xff] %vm2268_vm11, %v4923_v38  ;;  %v4952_v39 = vld [vmem:[#allocation2 + $0x1] sm:$0xff] }
0x192a   : > { %v4931_v40 = vld [vmem:[#allocation2 + $0x1a] sm:$0xff]  ;;  %v4921_v41 = vld [vmem:[#allocation2 + $0xb] sm:$0xff] }
0x192b   : > { %4960 = vrot.lane.b32.xlu1 %v4952_v39, %s7955_s18  ;;  %v4922_v42 = vld [vmem:[#allocation2 + $0x13] sm:$0xff]  ;;  %4925 = vst.msk [vmem:[#allocation3 + $0x10] sm:$0xff] %vm2268_vm11, %v4921_v41 }
0x192c   : > { %4926 = vst.msk [vmem:[#allocation3 + $0x20] sm:$0xff] %vm2268_vm11, %v4922_v42  ;;  %v4930_v8 = vld [vmem:[#allocation2 + $0x12] sm:$0xff]  ;;  %vm7985_vm11 = vmmov %vm7984_vm15 }
0x192d   : > { %4942 = vrot.lane.b32.xlu0 %v4931_v40, %s7952_s0  ;;  %v4955_v11 = vld [vmem:[#allocation2 + $0x19] sm:$0xff]  ;;  %v4954_v54 = vld [vmem:[#allocation2 + $0x11] sm:$0xff]  ;;  %vm7988_vm3 = vmmov %vm7985_vm11 }
0x192e   : > { %vm7989_vm4 = vmmov %vm7988_vm3  ;;  %v5484_v40 = vld [vmem:[%s6870_s15 + $0x30] sm:$0xff] }
0x192f   : > { %4940 = vrot.lane.b32.xlu1 %v4930_v8, %s7952_s0  ;;  %s8008_s0 = sshll.u32 %s8026_s10, 6 }
0x1931   : > { %4966 = vrot.lane.b32.xlu0 %v4955_v11, %s7955_s18 }
0x1933   : > { %4964 = vrot.lane.b32.xlu1 %v4954_v54, %s7955_s18  ;;  %s7797_s18 = scalar_lea.vmem %s6828_s4, %s8008_s0 }
0x1997   : > { %v4939_v55 = vpop.permute.xlu0 %4938 }
0x1998   : > { %4949 = vst.msk [vmem:[#allocation3 + $0x10] sm:$0xff] %vm7982_vm7, %v4939_v55  ;;  %vm7996_vm7 = vmmov %vm7992_vm0 }
0x1999   : > { %v4937_v43 = vpop.permute.xlu1 %4936 }
0x199a   : > { %4948 = vst.msk [vmem:[#allocation3] sm:$0xff] %vm7983_vm8, %v4937_v43  ;;  %vm7997_vm8 = vmmov %vm7992_vm0 }
0x199b   : > { %v4963_v48 = vpop.permute.xlu0 %4962 }
0x199c   : > { %4973 = vst.msk [vmem:[#allocation3 + $0x10] sm:$0xff] %vm7984_vm15, %v4963_v48  ;;  %vm7998_vm15 = vmmov %vm7992_vm0 }
0x199d   : > { %v4961_v45 = vpop.permute.xlu1 %4960 }
0x199e   : > { %4972 = vst.msk [vmem:[#allocation3] sm:$0xff] %vm7985_vm11, %v4961_v45  ;;  %vm7999_vm11 = vmmov %vm7992_vm0 }
0x199f   : > { %v4943_v47 = vpop.permute.xlu0 %4942 }
0x19a0   : > { %4951 = vst.msk [vmem:[#allocation3 + $0x30] sm:$0xff] %vm7986_vm2, %v4943_v47  ;;  %vm8000_vm2 = vmmov %vm7992_vm0 }
0x19a1   : > { %v4941_v50 = vpop.permute.xlu1 %4940 }
0x19a2   : > { %4950 = vst.msk [vmem:[#allocation3 + $0x20] sm:$0xff] %vm7987_vm9, %v4941_v50  ;;  %vm8001_vm9 = vmmov %vm7992_vm0 }
0x19a3   : > { %v4967_v44 = vpop.permute.xlu0 %4966  ;;  %v4977_v52 = vld [vmem:[#allocation3 + $0x10] sm:$0xff] }
0x19a4   : > { %4975 = vst.msk [vmem:[#allocation3 + $0x30] sm:$0xff] %vm7988_vm3, %v4967_v44  ;;  %vm8003_vm3 = vmmov %vm7992_vm0 }
0x19a5   : > { %v4965_v46 = vpop.permute.xlu1 %4964  ;;  %v4976_v51 = vld [vmem:[#allocation3] sm:$0xff] }
0x19a6   : > { %4974 = vst.msk [vmem:[#allocation3 + $0x20] sm:$0xff] %vm7989_vm4, %v4965_v46  ;;  %6379 = vmatprep.mubr.msk.f32.mxu1 %vm4986_vm14, %v4976_v51  ;;  %6393 = vmatprep.mubr.msk.f32.mxu0 %vm7969_vm10, %v4976_v51  ;;  %vm8004_vm4 = vmmov %vm7992_vm0 }
0x19a7   : > { %6380 = vmatmul.mubr.msk.f32.vlgmr.msra.gmra.mxu1 %vm4986_vm14, %v4977_v52  ;;  %6394 = vmatmul.mubr.msk.f32.vlgmr.msra.gmra.mxu0 %vm7990_vm1, %v4977_v52  ;;  %vm8005_vm10 = vmmov %vm7992_vm0 }
0x19a8   : > { %vm8006_vm1 = vmmov %vm7992_vm0 }
0x19ab   : > { %v4979_v59 = vld [vmem:[#allocation3 + $0x30] sm:$0xff] }
0x19ad   : > { %v4978_v57 = vld [vmem:[#allocation3 + $0x20] sm:$0xff] }
0x19ae   : > { %6382 = vmatprep.mubr.msk.f32.mxu1 %vm4986_vm14, %v4978_v57  ;;  %6396 = vmatprep.mubr.msk.f32.mxu0 %vm7991_vm12, %v4978_v57  ;;  %vm8007_vm12 = vmmov %vm7992_vm0 }
0x19af   : > { %6383 = vmatmul.mubr.msk.f32.gmra.mxu1 %vm4986_vm14, %v4979_v59  ;;  %6397 = vmatmul.mubr.msk.f32.gmra.mxu0 %vm7992_vm0, %v4979_v59  ;;  %vm8002_vm14 = vmmov %vm7992_vm0 }
0x19b0   : > { %6407 = vmatprep.mubr.msk.f32.mxu1 %vm7993_vm13, %v5189_v60  ;;  %6427 = vmatprep.mubr.msk.f32.mxu0 %vm7994_vm5, %v5181_v0  ;;  %vm8009_vm13 = vcmask 64512  }
0x19b1   : > { %5487 = vst.msk [vmem:[%s7797_s18 + $0x8] sm:$0xff] %vm8009_vm13, %v5479_v14  ;;  %vm8010_vm5 = vmmov %vm8009_vm13 }
0x19b2   : > { %5486 = vst.msk [vmem:[%s7797_s18] sm:$0xff] %vm8010_vm5, %v5478_v15 }
0x1a67   : > { %v6381_v61 = vpop.f32.mrf.mxu1  ;;  %v6395_v62 = vpop.f32.mrf.mxu0 }
0x1a69   : > { %v5065_v56 = vpop.f32.mrf.mxu1  ;;  %v5162_v49 = vpop.f32.mrf.mxu0 }
0x1a6f   : > { %v6384_v53 = vpop.f32.mrf.mxu1  ;;  %v6398_v58 = vpop.f32.mrf.mxu0 }
0x1a70   : > { %6399 = vmatprep.subr.mxu1 %v6398_v58  ;;  %6419 = vmatprep.subr.mxu0 %v6384_v53 }
0x1a71   : > { %v5075_v63 = vpop.f32.mrf.mxu1  ;;  %v5172_v1 = vpop.f32.mrf.mxu0  ;;  %6400 = vmatpush3.msra.mxu1 %v6398_v58  ;;  %6420 = vmatpush3.msra.mxu0 %v6384_v53 }
0x1a72   : > { %6401 = vmatprep.subr.mxu1 %v5172_v1  ;;  %6421 = vmatprep.subr.mxu0 %v5075_v63 }
0x1a73   : > { %6402 = vmatpush3.msra.mxu1 %v5172_v1  ;;  %6422 = vmatpush3.msra.mxu0 %v5075_v63 }
0x1a74   : > { %6403 = vmatprep.subr.mxu1 %v6395_v62  ;;  %6423 = vmatprep.subr.mxu0 %v6381_v61 }
0x1a75   : > { %6404 = vmatpush3.msra.mxu1 %v6395_v62  ;;  %6424 = vmatpush3.msra.mxu0 %v6381_v61 }
0x1a76   : > { %6405 = vmatprep.subr.mxu1 %v5162_v49  ;;  %6425 = vmatprep.subr.mxu0 %v5065_v56 }
0x1a77   : > { %6406 = vmatpush3.msra.mxu1 %v5162_v49  ;;  %6426 = vmatpush3.msra.mxu0 %v5065_v56 }
0x1a78   : > { %6408 = vmatmul.mubr.msk.f32.vlgmr.msra.gmra.mxu1 %vm7995_vm6, %v5190_v2  ;;  %6428 = vmatmul.mubr.msk.f32.vlgmr.msra.gmra.mxu0 %vm7996_vm7, %v5182_v3  ;;  %vm8011_vm6 = vmmov %vm8010_vm5 }
0x1a79   : > { %6410 = vmatprep.mubr.msk.f32.mxu1 %vm7997_vm8, %v5191_v19  ;;  %6430 = vmatprep.mubr.msk.f32.mxu0 %vm7998_vm15, %v5183_v22  ;;  %5489 = vst.msk [vmem:[%s7797_s18 + $0x18] sm:$0xff] %vm8011_vm6, %v5481_v16  ;;  %vm8012_vm7 = vmmov %vm8010_vm5 }
0x1a7a   : > { %5488 = vst.msk [vmem:[%s7797_s18 + $0x10] sm:$0xff] %vm8012_vm7, %v5480_v17  ;;  %vm8013_vm8 = vmmov %vm8010_vm5 }
0x1a7b   : > { %5491 = vst.msk [vmem:[%s7797_s18 + $0x28] sm:$0xff] %vm8013_vm8, %v5483_v23  ;;  %vm8014_vm15 = vmmov %vm8010_vm5 }
0x1a7c   : > { %6411 = vmatmul.mubr.msk.f32.gmra.mxu1 %vm7999_vm11, %v5192_v4  ;;  %6431 = vmatmul.mubr.msk.f32.gmra.mxu0 %vm8000_vm2, %v5184_v5  ;;  %5490 = vst.msk [vmem:[%s7797_s18 + $0x20] sm:$0xff] %vm8014_vm15, %v5482_v27  ;;  %vm8015_vm11 = vmmov %vm8010_vm5 }
0x1a7d   : > { %6413 = vmatprep.mubr.msk.f32.mxu1 %vm8001_vm9, %v5193_v6  ;;  %6433 = vmatprep.mubr.msk.f32.mxu0 %vm8002_vm14, %v5185_v7  ;;  %5493 = vst.msk [vmem:[%s7797_s18 + $0x38] sm:$0xff] %vm8015_vm11, %v5485_v33  ;;  %vm8016_vm2 = vmmov %vm8010_vm5  ;;  %vm8017_vm9 = vcmask 130112  }
0x1a7e   : > { %5492 = vst.msk [vmem:[%s7797_s18 + $0x30] sm:$0xff] %vm8016_vm2, %v5484_v40  ;;  %vm8018_vm14 = vmmov %vm8017_vm9 }
0x1a80   : > { %6414 = vmatmul.mubr.msk.f32.gmra.mxu1 %vm8003_vm3, %v5194_v9  ;;  %6434 = vmatmul.mubr.msk.f32.gmra.mxu0 %vm8004_vm4, %v5186_v10  ;;  %vm8019_vm3 = vmmov %vm8017_vm9 }
0x1a81   : > { %6416 = vmatprep.mubr.msk.f32.mxu1 %vm8005_vm10, %v5195_v12  ;;  %6436 = vmatprep.mubr.msk.f32.mxu0 %vm8006_vm1, %v5187_v32  ;;  %vm8020_vm4 = vmmov %vm8019_vm3 }
0x1a82   : > { %vm8021_vm10 = vmmov %vm8019_vm3 }
0x1a83   : > { %vm8022_vm1 = vmmov %vm8019_vm3 }
0x1a84   : > { %6417 = vmatmul.mubr.msk.f32.gmra.mxu1 %vm8007_vm12, %v5196_v13  ;;  %6437 = vmatmul.mubr.msk.f32.gmra.mxu0 %vm7992_vm0, %v5188_v36  ;;  %vm8023_vm12 = vmmov %vm8022_vm1 }
0x1a85   : > { %vm8024_vm0 = vmmov %vm8022_vm1 }
0x1b38   : > { %v6409_v18 = vpop.f32.mrf.mxu1  ;;  %v6429_v20 = vpop.f32.mrf.mxu0 }
0x1b39   : > { %v5422_v24 = vadd.f32 %v6429_v20, %v6409_v18 }
0x1b3a   : > { %v5287_v25 = vpop.f32.mrf.mxu1  ;;  %v5416_v26 = vpop.f32.mrf.mxu0 }
0x1b3b   : > { %v5463_v28 = vadd.f32 %v5739_v21, %v5422_v24  ;;  %v5417_v29 = vadd.f32 %v5416_v26, %v5287_v25 }
0x1b3c   : > { %v6412_v30 = vpop.f32.mrf.mxu1  ;;  %v6432_v31 = vpop.f32.mrf.mxu0 }
0x1b3d   : > { %v5471_v34 = vmax.f32 %v5463_v28, 0.0  ;;  %v5462_v35 = vadd.f32 %v5739_v21, %v5417_v29  ;;  %v5432_v37 = vadd.f32 %v6432_v31, %v6412_v30 }
0x1b3e   : > { %v5297_v38 = vpop.f32.mrf.mxu1  ;;  %v5426_v39 = vpop.f32.mrf.mxu0 }
0x1b3f   : > { %v5470_v41 = vmax.f32 %v5462_v35, 0.0  ;;  %v5465_v42 = vadd.f32 %v5739_v21, %v5432_v37  ;;  %v5427_v8 = vadd.f32 %v5426_v39, %v5297_v38  ;;  %5504 = vrot.lane.b32.xlu0 %v5471_v34, %s7976_s1 }
0x1b40   : > { %v6415_v11 = vpop.f32.mrf.mxu1  ;;  %v6435_v54 = vpop.f32.mrf.mxu0 }
0x1b41   : > { %v5473_v55 = vmax.f32 %v5465_v42, 0.0  ;;  %v5464_v43 = vadd.f32 %v5739_v21, %v5427_v8  ;;  %v5442_v48 = vadd.f32 %v6435_v54, %v6415_v11  ;;  %5502 = vrot.lane.b32.xlu1 %v5470_v41, %s7976_s1 }
0x1b42   : > { %v5307_v45 = vpop.f32.mrf.mxu1  ;;  %v5436_v47 = vpop.f32.mrf.mxu0 }
0x1b43   : > { %v5472_v50 = vmax.f32 %v5464_v43, 0.0  ;;  %v5467_v44 = vadd.f32 %v5739_v21, %v5442_v48  ;;  %v5437_v46 = vadd.f32 %v5436_v47, %v5307_v45  ;;  %5508 = vrot.lane.b32.xlu0 %v5473_v55, %s7976_s1 }
0x1b44   : > { %v6418_v51 = vpop.f32.mrf.mxu1  ;;  %v6438_v52 = vpop.f32.mrf.mxu0 }
0x1b45   : > { %v5475_v57 = vmax.f32 %v5467_v44, 0.0  ;;  %v5466_v59 = vadd.f32 %v5739_v21, %v5437_v46  ;;  %v5452_v60 = vadd.f32 %v6438_v52, %v6418_v51  ;;  %5506 = vrot.lane.b32.xlu1 %v5472_v50, %s7976_s1 }
0x1b46   : > { %v5317_v0 = vpop.f32.mrf.mxu1  ;;  %v5446_v61 = vpop.f32.mrf.mxu0 }
0x1b47   : > { %v5474_v62 = vmax.f32 %v5466_v59, 0.0  ;;  %v5469_v56 = vadd.f32 %v5739_v21, %v5452_v60  ;;  %v5447_v49 = vadd.f32 %v5446_v61, %v5317_v0  ;;  %5512 = vrot.lane.b32.xlu0 %v5475_v57, %s7976_s1 }
0x1b49   : > { %v5477_v53 = vmax.f32 %v5469_v56, 0.0  ;;  %v5468_v58 = vadd.f32 %v5739_v21, %v5447_v49  ;;  %5510 = vrot.lane.b32.xlu1 %v5474_v62, %s7976_s1 }
0x1b4b   : > { %v5476_v63 = vmax.f32 %v5468_v58, 0.0  ;;  %5516 = vrot.lane.b32.xlu0 %v5477_v53, %s7976_s1 }
0x1b4d   : > { %5514 = vrot.lane.b32.xlu1 %v5476_v63, %s7976_s1 }
0x1bb1   : > { %v5505_v1 = vpop.permute.xlu0 %5504 }
0x1bb2   : > { %5527 = vst.msk [vmem:[%s7797_s18 + $0x8] sm:$0xff] %vm8017_vm9, %v5505_v1 }
0x1bb3   : > { %v5503_v2 = vpop.permute.xlu1 %5502 }
0x1bb4   : > { %5526 = vst.msk [vmem:[%s7797_s18] sm:$0xff] %vm8018_vm14, %v5503_v2 }
0x1bb5   : > { %v5509_v3 = vpop.permute.xlu0 %5508 }
0x1bb6   : > { %5529 = vst.msk [vmem:[%s7797_s18 + $0x18] sm:$0xff] %vm8019_vm3, %v5509_v3 }
0x1bb7   : > { %v5507_v19 = vpop.permute.xlu1 %5506 }
0x1bb8   : > { %5528 = vst.msk [vmem:[%s7797_s18 + $0x10] sm:$0xff] %vm8020_vm4, %v5507_v19 }
0x1bb9   : > { %v5513_v22 = vpop.permute.xlu0 %5512 }
0x1bba   : > { %5531 = vst.msk [vmem:[%s7797_s18 + $0x28] sm:$0xff] %vm8021_vm10, %v5513_v22 }
0x1bbb   : > { %v5511_v4 = vpop.permute.xlu1 %5510 }
0x1bbc   : > { %5530 = vst.msk [vmem:[%s7797_s18 + $0x20] sm:$0xff] %vm8022_vm1, %v5511_v4 }
0x1bbd   : > { %v5517_v5 = vpop.permute.xlu0 %5516 }
0x1bbe   : > { %5533 = vst.msk [vmem:[%s7797_s18 + $0x38] sm:$0xff] %vm8023_vm12, %v5517_v5 }
0x1bbf   : > { %v5515_v6 = vpop.permute.xlu1 %5514 }
0x1bc0   : > { %5532 = vst.msk [vmem:[%s7797_s18 + $0x30] sm:$0xff] %vm8024_vm0, %v5515_v6 }
0x1bc1 PF: > { %s109_s7 = sadd.s32 1, %s6514_s7  }
0x1bc2   : > { %p106_p4 = scmp.ge.s32.totalorder %s109_s7, 4  }
0x1bc4   :  { %108 = sbr.rel (!%p106_p4) target bundleno = 101 (0x65), region = 295 }

</bundles_post_ra>
